<compile_context>
chip_gen: v6e
topology: v6e:2x2x1
jax: 0.10.0
libtpu: 0.0.40
codegen_flags: <defaults>
</compile_context>

<pallas_src>
import functools

import jax
import jax.numpy as jnp
from jax import lax
from jax.experimental import pallas as pl
from jax.experimental.pallas import tpu as pltpu


# --------------------------------------------------------------------------
# Kernel: all L decoder layers in one invocation.
# --------------------------------------------------------------------------
def decoder_kernel(x0_ref, enc_ref,
                   wqkv_s_ref, wo_s_ref,
                   wq_c_ref, wkv_c_ref, wo_c_ref,
                   w1_ref, b1_ref, w2_ref, b2_ref,
                   ln_g_ref, ln_b_ref,
                   o_ref, *, B, S, S_enc, H):
    f32 = jnp.float32
    bf16 = jnp.bfloat16
    BS, D = x0_ref.shape
    kd = D // H
    L = w1_ref.shape[0]

    def mm(a, b):
        # MXU matmul: bf16 operands, f32 accumulation (perf review: bf16 cast).
        return jnp.dot(a.astype(bf16), b.astype(bf16),
                       preferred_element_type=f32)

    def layer_norm(y, g, b):                     # all in f32
        mu = jnp.mean(y, axis=-1, keepdims=True)
        yc = y - mu
        var = jnp.mean(yc * yc, axis=-1, keepdims=True)
        return yc * lax.rsqrt(var + 1e-5) * g + b

    def split_heads(y, seq):
        # (B*seq, D) f32 -> (H*B, seq, kd) f32, leading index = h*B + b.
        # Built from static lane slices + a leading-axis stack + a
        # tile-aligned reshape (no lane-dim reshape, no 4-D transpose).
        yh = jnp.stack([y[:, h * kd:(h + 1) * kd] for h in range(H)], axis=0)
        return yh.reshape(H * B, seq, kd)

    def attend(q, k, v):
        # q (H*B, S, kd), k/v (H*B, Skv, kd): one batched contraction over all
        # (head, batch) pairs; softmax in f32; approx reciprocal on the EUP.
        s = jnp.einsum('nqc,nkc->nqk', q.astype(bf16), k.astype(bf16),
                       preferred_element_type=f32)
        m = jnp.max(s, axis=-1, keepdims=True)
        p = jnp.exp(s - m)
        p = p * pl.reciprocal(jnp.sum(p, axis=-1, keepdims=True), approx=True)
        return jnp.einsum('nqk,nkc->nqc', p.astype(bf16), v.astype(bf16),
                          preferred_element_type=f32)

    def out_proj(ctx, wo_h):
        # ctx (H*B, S, kd) f32, wo_h (H, kd, D) bf16: the head merge is folded
        # into the output projection (no per-head lane concat).
        ctx_h = ctx.reshape(H, B * S, kd)        # tile-aligned regroup
        attn_h = jnp.einsum('hnc,hcd->hnd', ctx_h.astype(bf16), wo_h,
                            preferred_element_type=f32)
        return jnp.sum(attn_h, axis=0)           # (B*S, D)

    x = x0_ref[...]                              # (B*S, D) f32: emb + PE
    enc = enc_ref[...]                           # (B*S_enc, D) bf16

    # L is tiny (2) -> statically unrolled.  TODO(synk): switch to
    # lax.fori_loop over stacked weight refs if layer_num grows beyond ~4.
    for l in range(L):
        g = ln_g_ref[l]                          # (3, D)
        be = ln_b_ref[l]                         # (3, D)

        # -- masked self-attention (mask=None path) + add & norm ------------
        qkv = mm(x, wqkv_s_ref[l])               # ONE fused (BS,D)@(D,3D)
        q = split_heads(qkv[:, 0:D], S)
        k = split_heads(qkv[:, D:2 * D], S)
        v = split_heads(qkv[:, 2 * D:3 * D], S)
        attn = out_proj(attend(q, k, v), wo_s_ref[l])
        x = layer_norm(x + attn, g[0:1], be[0:1])

        # -- cross-attention over encoder_kv + add & norm --------------------
        q = split_heads(mm(x, wq_c_ref[l]), S)
        kv = mm(enc, wkv_c_ref[l])               # fused (B*Se,D)@(D,2D)
        k = split_heads(kv[:, 0:D], S_enc)
        v = split_heads(kv[:, D:2 * D], S_enc)
        attn = out_proj(attend(q, k, v), wo_c_ref[l])
        x = layer_norm(x + attn, g[1:2], be[1:2])

        # -- feed-forward + add & norm (dropout = eval identity) -------------
        hid = jnp.maximum(mm(x, w1_ref[l]) + b1_ref[l], 0.0)
        ff = mm(hid, w2_ref[l]) + b2_ref[l]
        x = layer_norm(x + ff, g[2:3], be[2:3])

    o_ref[...] = x.astype(o_ref.dtype)


# --------------------------------------------------------------------------
# One-time parameter packing (parameter-load time, not per call):
# transpose to [in, out], fuse QKV / KV, fold 1/sqrt(k_num) into Wq, pack Wo
# head-major (H, kd, D), cast matmul weights to bf16, stack layers.
# --------------------------------------------------------------------------
def pack_decoder_params(layers, heads_num, wdtype=jnp.bfloat16):
    D = layers[0]['wq_s'].shape[0]
    kd = D // heads_num
    qscale = 1.0 / (kd ** 0.5)

    def t(w, scale=1.0):
        # torch Linear weight [out, in] -> [in, out], optionally pre-scaled.
        return (w.T * scale).astype(wdtype)

    def wo_heads(w):
        # [out, in] -> head-major (H, kd, D): row h*kd+c of w.T -> [h, c, :].
        return w.T.reshape(heads_num, kd, D).astype(wdtype)

    return dict(
        wqkv_s=jnp.stack([jnp.concatenate(
            [t(p['wq_s'], qscale), t(p['wk_s']), t(p['wv_s'])], axis=1)
            for p in layers]),                                     # (L, D, 3D)
        wo_s=jnp.stack([wo_heads(p['wo_s']) for p in layers]),     # (L, H, kd, D)
        wq_c=jnp.stack([t(p['wq_c'], qscale) for p in layers]),    # (L, D, D)
        wkv_c=jnp.stack([jnp.concatenate(
            [t(p['wk_c']), t(p['wv_c'])], axis=1) for p in layers]),  # (L, D, 2D)
        wo_c=jnp.stack([wo_heads(p['wo_c']) for p in layers]),     # (L, H, kd, D)
        w1=jnp.stack([t(p['w1']) for p in layers]),                # (L, D, Dff)
        b1=jnp.stack([p['b1'].reshape(1, -1) for p in layers]),    # (L, 1, Dff) f32
        w2=jnp.stack([t(p['w2']) for p in layers]),                # (L, Dff, D)
        b2=jnp.stack([p['b2'].reshape(1, -1) for p in layers]),    # (L, 1, D)  f32
        ln_g=jnp.stack([p['ln_g'] for p in layers]),               # (L, 3, D)  f32
        ln_b=jnp.stack([p['ln_b'] for p in layers]),               # (L, 3, D)  f32
    )


def decoder_forward(ids, enc_kv, emb_table, pe, packed, heads_num):
    B, S = ids.shape
    S_enc = enc_kv.shape[1]
    D = emb_table.shape[1]
    # XLA-side prep (perf review): embedding gather + PE add done outside the
    # kernel; encoder activations pre-flattened and pre-cast to bf16.
    x0 = (emb_table[ids] + pe[None, :, :]).reshape(B * S, D).astype(jnp.float32)
    enc_flat = enc_kv.reshape(B * S_enc, D).astype(jnp.bfloat16)

    kernel = functools.partial(decoder_kernel, B=B, S=S, S_enc=S_enc, H=heads_num)
    operands = (x0, enc_flat,
                packed['wqkv_s'], packed['wo_s'],
                packed['wq_c'], packed['wkv_c'], packed['wo_c'],
                packed['w1'], packed['b1'], packed['w2'], packed['b2'],
                packed['ln_g'], packed['ln_b'])
    out2d = pl.pallas_call(
        kernel,
        out_shape=jax.ShapeDtypeStruct((B * S, D), jnp.float32),
        in_specs=[pl.BlockSpec(memory_space=pltpu.MemorySpace.VMEM)
                  for _ in operands],
        out_specs=pl.BlockSpec(memory_space=pltpu.MemorySpace.VMEM),
    )(*operands)
    return out2d.reshape(B, S, D)


# --------------------------------------------------------------------------
# Pure-JAX reference (mirrors the PyTorch module, dropout = identity, f32).
# --------------------------------------------------------------------------
def position_encoding(seq_len, d_model):
    position = jnp.arange(seq_len, dtype=jnp.float32).reshape(-1, 1)
    weight = (1.0 / (10000.0 ** (jnp.arange(0, d_model, 2, dtype=jnp.float32)
                                 / d_model))).reshape(1, -1)
    item = position * weight
    pe = jnp.zeros((seq_len, d_model), dtype=jnp.float32)
    pe = pe.at[:, 0::2].set(jnp.sin(item))
    pe = pe.at[:, 1::2].set(jnp.cos(item))
    return pe


def reference_decoder(ids, enc_kv, emb_table, pe, layers, heads_num):
    D = emb_table.shape[1]
    kd = D // heads_num
    x = emb_table[ids] + pe[None, :, :]

    def mha(q_in, kv_in, wq, wk, wv, wo):
        Bq, Sq, _ = q_in.shape
        Skv = kv_in.shape[1]

        def split(y, s_len):
            return y.reshape(Bq, s_len, heads_num, kd).transpose(0, 2, 1, 3)

        q = split(q_in @ wq.T, Sq)
        k = split(kv_in @ wk.T, Skv)
        v = split(kv_in @ wv.T, Skv)
        s = jnp.einsum('bhqc,bhkc->bhqk', q, k) / (kd ** 0.5)
        p = jax.nn.softmax(s, axis=-1)
        o = jnp.einsum('bhqk,bhkc->bhqc', p, v)
        o = o.transpose(0, 2, 1, 3).reshape(Bq, Sq, D)
        return o @ wo.T

    def ln(y, g, b):
        mu = y.mean(-1, keepdims=True)
        yc = y - mu
        var = (yc * yc).mean(-1, keepdims=True)
        return yc * jax.lax.rsqrt(var + 1e-5) * g + b

    for p_ in layers:
        a1 = mha(x, x, p_['wq_s'], p_['wk_s'], p_['wv_s'], p_['wo_s'])
        x = ln(x + a1, p_['ln_g'][0], p_['ln_b'][0])
        a2 = mha(x, enc_kv, p_['wq_c'], p_['wk_c'], p_['wv_c'], p_['wo_c'])
        x = ln(x + a2, p_['ln_g'][1], p_['ln_b'][1])
        ff = jnp.maximum(x @ p_['w1'].T + p_['b1'], 0.0) @ p_['w2'].T + p_['b2']
        x = ln(x + ff, p_['ln_g'][2], p_['ln_b'][2])
    return x


if __name__ == "__main__":
    B, S, S_enc = 2, 8, 16
    D, Dff, H, L = 32, 64, 4, 2
    V, padding_idx = 64, 0

    root = jax.random.PRNGKey(0)
    k_ids, k_enc, k_emb, k_layers = jax.random.split(root, 4)

    ids = jax.random.randint(k_ids, (B, S), 0, V, dtype=jnp.int32)
    ids = ids.at[:, -1].set(padding_idx)                  # exercise padding row
    enc_kv = jax.random.normal(k_enc, (B, S_enc, D), dtype=jnp.float32)
    emb_table = 0.5 * jax.random.normal(k_emb, (V, D), dtype=jnp.float32)
    emb_table = emb_table.at[padding_idx].set(0.0)        # nn.Embedding(padding_idx)
    pe = position_encoding(S, D)

    w_scale = 1.0 / (D ** 0.5)
    layer_keys = jax.random.split(k_layers, L)
    layers = []
    for l in range(L):
        lk = jax.random.split(layer_keys[l], 14)
        layers.append(dict(
            wq_s=w_scale * jax.random.normal(lk[0], (D, D), jnp.float32),
            wk_s=w_scale * jax.random.normal(lk[1], (D, D), jnp.float32),
            wv_s=w_scale * jax.random.normal(lk[2], (D, D), jnp.float32),
            wo_s=w_scale * jax.random.normal(lk[3], (D, D), jnp.float32),
            wq_c=w_scale * jax.random.normal(lk[4], (D, D), jnp.float32),
            wk_c=w_scale * jax.random.normal(lk[5], (D, D), jnp.float32),
            wv_c=w_scale * jax.random.normal(lk[6], (D, D), jnp.float32),
            wo_c=w_scale * jax.random.normal(lk[7], (D, D), jnp.float32),
            w1=w_scale * jax.random.normal(lk[8], (Dff, D), jnp.float32),
            b1=0.1 * jax.random.normal(lk[9], (Dff,), jnp.float32),
            w2=(1.0 / (Dff ** 0.5)) * jax.random.normal(lk[10], (D, Dff), jnp.float32),
            b2=0.1 * jax.random.normal(lk[11], (D,), jnp.float32),
            ln_g=1.0 + 0.1 * jax.random.normal(lk[12], (3, D), jnp.float32),
            ln_b=0.1 * jax.random.normal(lk[13], (3, D), jnp.float32),
        ))

    packed = pack_decoder_params(layers, H)               # one-time layout pack

    out = decoder_forward(ids, enc_kv, emb_table, pe, packed, H)
    out = jax.block_until_ready(out)

    ref = reference_decoder(ids, enc_kv, emb_table, pe, layers, H)
    assert out.shape == (B, S, D)
    # Tolerance widened vs the pure-f32 version because matmul operands are
    # bf16 (f32 accumulation) and the softmax reciprocal is approximate,
    # per the performance review.
    assert jnp.allclose(out, ref, atol=3e-2, rtol=3e-2), "mismatch vs JAX reference"

    print("KERNEL_OK")
</pallas_src>

<mosaic_0001>
module attributes {stable_mosaic.version = 11 : i64} {
  func.func @decoder_kernel(%arg0: memref<16x32xf32, #tpu.memory_space<vmem>>, %arg1: memref<32x32xbf16, #tpu.memory_space<vmem>>, %arg2: memref<2x32x96xbf16, #tpu.memory_space<vmem>>, %arg3: memref<2x4x8x32xbf16, #tpu.memory_space<vmem>>, %arg4: memref<2x32x32xbf16, #tpu.memory_space<vmem>>, %arg5: memref<2x32x64xbf16, #tpu.memory_space<vmem>>, %arg6: memref<2x4x8x32xbf16, #tpu.memory_space<vmem>>, %arg7: memref<2x32x64xbf16, #tpu.memory_space<vmem>>, %arg8: memref<2x1x64xf32, #tpu.memory_space<vmem>>, %arg9: memref<2x64x32xbf16, #tpu.memory_space<vmem>>, %arg10: memref<2x1x32xf32, #tpu.memory_space<vmem>>, %arg11: memref<2x3x32xf32, #tpu.memory_space<vmem>>, %arg12: memref<2x3x32xf32, #tpu.memory_space<vmem>>, %arg13: memref<16x32xf32, #tpu.memory_space<vmem>>) attributes {dimension_semantics = [], scalar_prefetch = 0 : i64, scratch_operands = 0 : i64, tpu.core_type = #tpu.core_type<tc>} {
    %c0 = arith.constant 0 : index
    %c0_0 = arith.constant 0 : index
    %0 = vector.load %arg0[%c0, %c0_0] : memref<16x32xf32, #tpu.memory_space<vmem>>, vector<16x32xf32>
    %c0_1 = arith.constant 0 : index
    %c0_2 = arith.constant 0 : index
    %1 = vector.load %arg1[%c0_1, %c0_2] : memref<32x32xbf16, #tpu.memory_space<vmem>>, vector<32x32xbf16>
    %c0_3 = arith.constant 0 : index
    %c0_4 = arith.constant 0 : index
    %c0_5 = arith.constant 0 : index
    %2 = vector.load %arg11[%c0_3, %c0_4, %c0_5] : memref<2x3x32xf32, #tpu.memory_space<vmem>>, vector<1x3x32xf32>
    %3 = vector.shape_cast %2 : vector<1x3x32xf32> to vector<3x32xf32>
    %c0_6 = arith.constant 0 : index
    %c0_7 = arith.constant 0 : index
    %c0_8 = arith.constant 0 : index
    %4 = vector.load %arg12[%c0_6, %c0_7, %c0_8] : memref<2x3x32xf32, #tpu.memory_space<vmem>>, vector<1x3x32xf32>
    %5 = vector.shape_cast %4 : vector<1x3x32xf32> to vector<3x32xf32>
    %c0_9 = arith.constant 0 : index
    %c0_10 = arith.constant 0 : index
    %c0_11 = arith.constant 0 : index
    %6 = vector.load %arg2[%c0_9, %c0_10, %c0_11] : memref<2x32x96xbf16, #tpu.memory_space<vmem>>, vector<1x32x96xbf16>
    %7 = vector.shape_cast %6 : vector<1x32x96xbf16> to vector<32x96xbf16>
    %8 = arith.truncf %0 : vector<16x32xf32> to vector<16x32xbf16>
    %cst = arith.constant dense<0.000000e+00> : vector<16x96xf32>
    %9 = tpu.matmul %8, %7, %cst {dimension_numbers = #tpu.dot_dimension_numbers<[1], [0], [0], [1], [0, 0, 1, 1], [], []>} : vector<16x32xbf16>, vector<32x96xbf16>, vector<16x96xf32> -> vector<16x96xf32>
    %10 = vector.extract_strided_slice %9 {offsets = [0, 0], sizes = [16, 32], strides = [1, 1]} : vector<16x96xf32> to vector<16x32xf32>
    %11 = vector.extract_strided_slice %10 {offsets = [0, 0], sizes = [16, 8], strides = [1, 1]} : vector<16x32xf32> to vector<16x8xf32>
    %12 = vector.extract_strided_slice %10 {offsets = [0, 8], sizes = [16, 8], strides = [1, 1]} : vector<16x32xf32> to vector<16x8xf32>
    %13 = vector.extract_strided_slice %10 {offsets = [0, 16], sizes = [16, 8], strides = [1, 1]} : vector<16x32xf32> to vector<16x8xf32>
    %14 = vector.extract_strided_slice %10 {offsets = [0, 24], sizes = [16, 8], strides = [1, 1]} : vector<16x32xf32> to vector<16x8xf32>
    %15 = vector.shape_cast %11 : vector<16x8xf32> to vector<1x16x8xf32>
    %16 = vector.shape_cast %12 : vector<16x8xf32> to vector<1x16x8xf32>
    %17 = vector.shape_cast %13 : vector<16x8xf32> to vector<1x16x8xf32>
    %18 = vector.shape_cast %14 : vector<16x8xf32> to vector<1x16x8xf32>
    %19 = tpu.concatenate %15, %16, %17, %18 in 0 : vector<1x16x8xf32>, vector<1x16x8xf32>, vector<1x16x8xf32>, vector<1x16x8xf32> -> vector<4x16x8xf32>
    %20 = vector.shape_cast %19 : vector<4x16x8xf32> to vector<8x8x8xf32>
    %21 = vector.extract_strided_slice %9 {offsets = [0, 32], sizes = [16, 32], strides = [1, 1]} : vector<16x96xf32> to vector<16x32xf32>
    %22 = vector.extract_strided_slice %21 {offsets = [0, 0], sizes = [16, 8], strides = [1, 1]} : vector<16x32xf32> to vector<16x8xf32>
    %23 = vector.extract_strided_slice %21 {offsets = [0, 8], sizes = [16, 8], strides = [1, 1]} : vector<16x32xf32> to vector<16x8xf32>
    %24 = vector.extract_strided_slice %21 {offsets = [0, 16], sizes = [16, 8], strides = [1, 1]} : vector<16x32xf32> to vector<16x8xf32>
    %25 = vector.extract_strided_slice %21 {offsets = [0, 24], sizes = [16, 8], strides = [1, 1]} : vector<16x32xf32> to vector<16x8xf32>
    %26 = vector.shape_cast %22 : vector<16x8xf32> to vector<1x16x8xf32>
    %27 = vector.shape_cast %23 : vector<16x8xf32> to vector<1x16x8xf32>
    %28 = vector.shape_cast %24 : vector<16x8xf32> to vector<1x16x8xf32>
    %29 = vector.shape_cast %25 : vector<16x8xf32> to vector<1x16x8xf32>
    %30 = tpu.concatenate %26, %27, %28, %29 in 0 : vector<1x16x8xf32>, vector<1x16x8xf32>, vector<1x16x8xf32>, vector<1x16x8xf32> -> vector<4x16x8xf32>
    %31 = vector.shape_cast %30 : vector<4x16x8xf32> to vector<8x8x8xf32>
    %32 = vector.extract_strided_slice %9 {offsets = [0, 64], sizes = [16, 32], strides = [1, 1]} : vector<16x96xf32> to vector<16x32xf32>
    %33 = vector.extract_strided_slice %32 {offsets = [0, 0], sizes = [16, 8], strides = [1, 1]} : vector<16x32xf32> to vector<16x8xf32>
    %34 = vector.extract_strided_slice %32 {offsets = [0, 8], sizes = [16, 8], strides = [1, 1]} : vector<16x32xf32> to vector<16x8xf32>
    %35 = vector.extract_strided_slice %32 {offsets = [0, 16], sizes = [16, 8], strides = [1, 1]} : vector<16x32xf32> to vector<16x8xf32>
    %36 = vector.extract_strided_slice %32 {offsets = [0, 24], sizes = [16, 8], strides = [1, 1]} : vector<16x32xf32> to vector<16x8xf32>
    %37 = vector.shape_cast %33 : vector<16x8xf32> to vector<1x16x8xf32>
    %38 = vector.shape_cast %34 : vector<16x8xf32> to vector<1x16x8xf32>
    %39 = vector.shape_cast %35 : vector<16x8xf32> to vector<1x16x8xf32>
    %40 = vector.shape_cast %36 : vector<16x8xf32> to vector<1x16x8xf32>
    %41 = tpu.concatenate %37, %38, %39, %40 in 0 : vector<1x16x8xf32>, vector<1x16x8xf32>, vector<1x16x8xf32>, vector<1x16x8xf32> -> vector<4x16x8xf32>
    %42 = vector.shape_cast %41 : vector<4x16x8xf32> to vector<8x8x8xf32>
    %43 = arith.truncf %20 : vector<8x8x8xf32> to vector<8x8x8xbf16>
    %44 = arith.truncf %31 : vector<8x8x8xf32> to vector<8x8x8xbf16>
    "tpu.trace_start"() <{level = 10 : i32, message = "nqc,nkc->nqk"}> : () -> ()
    %cst_12 = arith.constant dense<0.000000e+00> : vector<8x8x8xf32>
    %45 = tpu.matmul %43, %44, %cst_12 {dimension_numbers = #tpu.dot_dimension_numbers<[2], [2], [1], [1], [0, 0, 0, 1, 1, 1], [0], [0]>} : vector<8x8x8xbf16>, vector<8x8x8xbf16>, vector<8x8x8xf32> -> vector<8x8x8xf32>
    "tpu.trace_stop"() : () -> ()
    %cst_13 = arith.constant dense<0xFF800000> : vector<8x8xf32>
    %46 = vector.multi_reduction <maximumf>, %45, %cst_13 [2] : vector<8x8x8xf32> to vector<8x8xf32>
    %47 = vector.shape_cast %46 : vector<8x8xf32> to vector<8x8x1xf32>
    %48 = vector.broadcast %47 : vector<8x8x1xf32> to vector<8x8x8xf32>
    %49 = arith.subf %45, %48 : vector<8x8x8xf32>
    %50 = math.exp %49 : vector<8x8x8xf32>
    %cst_14 = arith.constant dense<0.000000e+00> : vector<8x8xf32>
    %51 = vector.multi_reduction <add>, %50, %cst_14 [2] : vector<8x8x8xf32> to vector<8x8xf32>
    %52 = vector.shape_cast %51 : vector<8x8xf32> to vector<8x8x1xf32>
    %53 = tpu.reciprocal %52 {approx = true} : vector<8x8x1xf32> -> vector<8x8x1xf32>
    %54 = vector.broadcast %53 : vector<8x8x1xf32> to vector<8x8x8xf32>
    %55 = arith.mulf %50, %54 : vector<8x8x8xf32>
    %56 = arith.truncf %55 : vector<8x8x8xf32> to vector<8x8x8xbf16>
    %57 = arith.truncf %42 : vector<8x8x8xf32> to vector<8x8x8xbf16>
    "tpu.trace_start"() <{level = 10 : i32, message = "nqk,nkc->nqc"}> : () -> ()
    %cst_15 = arith.constant dense<0.000000e+00> : vector<8x8x8xf32>
    %58 = tpu.matmul %56, %57, %cst_15 {dimension_numbers = #tpu.dot_dimension_numbers<[2], [1], [1], [2], [0, 0, 0, 1, 1, 2], [0], [0]>} : vector<8x8x8xbf16>, vector<8x8x8xbf16>, vector<8x8x8xf32> -> vector<8x8x8xf32>
    "tpu.trace_stop"() : () -> ()
    %c0_16 = arith.constant 0 : index
    %c0_17 = arith.constant 0 : index
    %c0_18 = arith.constant 0 : index
    %c0_19 = arith.constant 0 : index
    %59 = vector.load %arg3[%c0_16, %c0_17, %c0_18, %c0_19] : memref<2x4x8x32xbf16, #tpu.memory_space<vmem>>, vector<1x4x8x32xbf16>
    %60 = vector.shape_cast %59 : vector<1x4x8x32xbf16> to vector<4x8x32xbf16>
    %61 = vector.shape_cast %58 : vector<8x8x8xf32> to vector<4x16x8xf32>
    %62 = arith.truncf %61 : vector<4x16x8xf32> to vector<4x16x8xbf16>
    "tpu.trace_start"() <{level = 10 : i32, message = "hnc,hcd->hnd"}> : () -> ()
    %cst_20 = arith.constant dense<0.000000e+00> : vector<4x16x32xf32>
    %63 = tpu.matmul %62, %60, %cst_20 {dimension_numbers = #tpu.dot_dimension_numbers<[2], [1], [1], [2], [0, 0, 0, 1, 1, 2], [0], [0]>} : vector<4x16x8xbf16>, vector<4x8x32xbf16>, vector<4x16x32xf32> -> vector<4x16x32xf32>
    "tpu.trace_stop"() : () -> ()
    %cst_21 = arith.constant dense<0.000000e+00> : vector<16x32xf32>
    %64 = vector.multi_reduction <add>, %63, %cst_21 [0] : vector<4x16x32xf32> to vector<16x32xf32>
    %65 = arith.addf %0, %64 : vector<16x32xf32>
    %66 = vector.extract_strided_slice %3 {offsets = [0, 0], sizes = [1, 32], strides = [1, 1]} : vector<3x32xf32> to vector<1x32xf32>
    %67 = vector.extract_strided_slice %5 {offsets = [0, 0], sizes = [1, 32], strides = [1, 1]} : vector<3x32xf32> to vector<1x32xf32>
    %cst_22 = arith.constant dense<0.000000e+00> : vector<16xf32>
    %68 = vector.multi_reduction <add>, %65, %cst_22 [1] : vector<16x32xf32> to vector<16xf32>
    %69 = vector.shape_cast %68 : vector<16xf32> to vector<16x1xf32>
    %cst_23 = arith.constant 3.200000e+01 : f32
    %70 = vector.broadcast %cst_23 : f32 to vector<16x1xf32>
    %71 = arith.divf %69, %70 : vector<16x1xf32>
    %72 = vector.broadcast %71 : vector<16x1xf32> to vector<16x32xf32>
    %73 = arith.subf %65, %72 : vector<16x32xf32>
    %74 = arith.mulf %73, %73 : vector<16x32xf32>
    %cst_24 = arith.constant dense<0.000000e+00> : vector<16xf32>
    %75 = vector.multi_reduction <add>, %74, %cst_24 [1] : vector<16x32xf32> to vector<16xf32>
    %76 = vector.shape_cast %75 : vector<16xf32> to vector<16x1xf32>
    %cst_25 = arith.constant 3.200000e+01 : f32
    %77 = vector.broadcast %cst_25 : f32 to vector<16x1xf32>
    %78 = arith.divf %76, %77 : vector<16x1xf32>
    %cst_26 = arith.constant 9.99999974E-6 : f32
    %79 = vector.broadcast %cst_26 : f32 to vector<16x1xf32>
    %80 = arith.addf %78, %79 : vector<16x1xf32>
    %81 = math.rsqrt %80 : vector<16x1xf32>
    %82 = vector.broadcast %81 : vector<16x1xf32> to vector<16x32xf32>
    %83 = arith.mulf %73, %82 : vector<16x32xf32>
    %84 = vector.broadcast %66 : vector<1x32xf32> to vector<16x32xf32>
    %85 = arith.mulf %83, %84 : vector<16x32xf32>
    %86 = vector.broadcast %67 : vector<1x32xf32> to vector<16x32xf32>
    %87 = arith.addf %85, %86 : vector<16x32xf32>
    %c0_27 = arith.constant 0 : index
    %c0_28 = arith.constant 0 : index
    %c0_29 = arith.constant 0 : index
    %88 = vector.load %arg4[%c0_27, %c0_28, %c0_29] : memref<2x32x32xbf16, #tpu.memory_space<vmem>>, vector<1x32x32xbf16>
    %89 = vector.shape_cast %88 : vector<1x32x32xbf16> to vector<32x32xbf16>
    %90 = arith.truncf %87 : vector<16x32xf32> to vector<16x32xbf16>
    %cst_30 = arith.constant dense<0.000000e+00> : vector<16x32xf32>
    %91 = tpu.matmul %90, %89, %cst_30 {dimension_numbers = #tpu.dot_dimension_numbers<[1], [0], [0], [1], [0, 0, 1, 1], [], []>} : vector<16x32xbf16>, vector<32x32xbf16>, vector<16x32xf32> -> vector<16x32xf32>
    %92 = vector.extract_strided_slice %91 {offsets = [0, 0], sizes = [16, 8], strides = [1, 1]} : vector<16x32xf32> to vector<16x8xf32>
    %93 = vector.extract_strided_slice %91 {offsets = [0, 8], sizes = [16, 8], strides = [1, 1]} : vector<16x32xf32> to vector<16x8xf32>
    %94 = vector.extract_strided_slice %91 {offsets = [0, 16], sizes = [16, 8], strides = [1, 1]} : vector<16x32xf32> to vector<16x8xf32>
    %95 = vector.extract_strided_slice %91 {offsets = [0, 24], sizes = [16, 8], strides = [1, 1]} : vector<16x32xf32> to vector<16x8xf32>
    %96 = vector.shape_cast %92 : vector<16x8xf32> to vector<1x16x8xf32>
    %97 = vector.shape_cast %93 : vector<16x8xf32> to vector<1x16x8xf32>
    %98 = vector.shape_cast %94 : vector<16x8xf32> to vector<1x16x8xf32>
    %99 = vector.shape_cast %95 : vector<16x8xf32> to vector<1x16x8xf32>
    %100 = tpu.concatenate %96, %97, %98, %99 in 0 : vector<1x16x8xf32>, vector<1x16x8xf32>, vector<1x16x8xf32>, vector<1x16x8xf32> -> vector<4x16x8xf32>
    %101 = vector.shape_cast %100 : vector<4x16x8xf32> to vector<8x8x8xf32>
    %c0_31 = arith.constant 0 : index
    %c0_32 = arith.constant 0 : index
    %c0_33 = arith.constant 0 : index
    %102 = vector.load %arg5[%c0_31, %c0_32, %c0_33] : memref<2x32x64xbf16, #tpu.memory_space<vmem>>, vector<1x32x64xbf16>
    %103 = vector.shape_cast %102 : vector<1x32x64xbf16> to vector<32x64xbf16>
    %cst_34 = arith.constant dense<0.000000e+00> : vector<32x64xf32>
    %104 = tpu.matmul %1, %103, %cst_34 {dimension_numbers = #tpu.dot_dimension_numbers<[1], [0], [0], [1], [0, 0, 1, 1], [], []>} : vector<32x32xbf16>, vector<32x64xbf16>, vector<32x64xf32> -> vector<32x64xf32>
    %105 = vector.extract_strided_slice %104 {offsets = [0, 0], sizes = [32, 32], strides = [1, 1]} : vector<32x64xf32> to vector<32x32xf32>
    %106 = vector.extract_strided_slice %105 {offsets = [0, 0], sizes = [32, 8], strides = [1, 1]} : vector<32x32xf32> to vector<32x8xf32>
    %107 = vector.extract_strided_slice %105 {offsets = [0, 8], sizes = [32, 8], strides = [1, 1]} : vector<32x32xf32> to vector<32x8xf32>
    %108 = vector.extract_strided_slice %105 {offsets = [0, 16], sizes = [32, 8], strides = [1, 1]} : vector<32x32xf32> to vector<32x8xf32>
    %109 = vector.extract_strided_slice %105 {offsets = [0, 24], sizes = [32, 8], strides = [1, 1]} : vector<32x32xf32> to vector<32x8xf32>
    %110 = vector.shape_cast %106 : vector<32x8xf32> to vector<1x32x8xf32>
    %111 = vector.shape_cast %107 : vector<32x8xf32> to vector<1x32x8xf32>
    %112 = vector.shape_cast %108 : vector<32x8xf32> to vector<1x32x8xf32>
    %113 = vector.shape_cast %109 : vector<32x8xf32> to vector<1x32x8xf32>
    %114 = tpu.concatenate %110, %111, %112, %113 in 0 : vector<1x32x8xf32>, vector<1x32x8xf32>, vector<1x32x8xf32>, vector<1x32x8xf32> -> vector<4x32x8xf32>
    %115 = vector.shape_cast %114 : vector<4x32x8xf32> to vector<8x16x8xf32>
    %116 = vector.extract_strided_slice %104 {offsets = [0, 32], sizes = [32, 32], strides = [1, 1]} : vector<32x64xf32> to vector<32x32xf32>
    %117 = vector.extract_strided_slice %116 {offsets = [0, 0], sizes = [32, 8], strides = [1, 1]} : vector<32x32xf32> to vector<32x8xf32>
    %118 = vector.extract_strided_slice %116 {offsets = [0, 8], sizes = [32, 8], strides = [1, 1]} : vector<32x32xf32> to vector<32x8xf32>
    %119 = vector.extract_strided_slice %116 {offsets = [0, 16], sizes = [32, 8], strides = [1, 1]} : vector<32x32xf32> to vector<32x8xf32>
    %120 = vector.extract_strided_slice %116 {offsets = [0, 24], sizes = [32, 8], strides = [1, 1]} : vector<32x32xf32> to vector<32x8xf32>
    %121 = vector.shape_cast %117 : vector<32x8xf32> to vector<1x32x8xf32>
    %122 = vector.shape_cast %118 : vector<32x8xf32> to vector<1x32x8xf32>
    %123 = vector.shape_cast %119 : vector<32x8xf32> to vector<1x32x8xf32>
    %124 = vector.shape_cast %120 : vector<32x8xf32> to vector<1x32x8xf32>
    %125 = tpu.concatenate %121, %122, %123, %124 in 0 : vector<1x32x8xf32>, vector<1x32x8xf32>, vector<1x32x8xf32>, vector<1x32x8xf32> -> vector<4x32x8xf32>
    %126 = vector.shape_cast %125 : vector<4x32x8xf32> to vector<8x16x8xf32>
    %127 = arith.truncf %101 : vector<8x8x8xf32> to vector<8x8x8xbf16>
    %128 = arith.truncf %115 : vector<8x16x8xf32> to vector<8x16x8xbf16>
    "tpu.trace_start"() <{level = 10 : i32, message = "nqc,nkc->nqk"}> : () -> ()
    %cst_35 = arith.constant dense<0.000000e+00> : vector<8x8x16xf32>
    %129 = tpu.matmul %127, %128, %cst_35 {dimension_numbers = #tpu.dot_dimension_numbers<[2], [2], [1], [1], [0, 0, 0, 1, 1, 1], [0], [0]>} : vector<8x8x8xbf16>, vector<8x16x8xbf16>, vector<8x8x16xf32> -> vector<8x8x16xf32>
    "tpu.trace_stop"() : () -> ()
    %cst_36 = arith.constant dense<0xFF800000> : vector<8x8xf32>
    %130 = vector.multi_reduction <maximumf>, %129, %cst_36 [2] : vector<8x8x16xf32> to vector<8x8xf32>
    %131 = vector.shape_cast %130 : vector<8x8xf32> to vector<8x8x1xf32>
    %132 = vector.broadcast %131 : vector<8x8x1xf32> to vector<8x8x16xf32>
    %133 = arith.subf %129, %132 : vector<8x8x16xf32>
    %134 = math.exp %133 : vector<8x8x16xf32>
    %cst_37 = arith.constant dense<0.000000e+00> : vector<8x8xf32>
    %135 = vector.multi_reduction <add>, %134, %cst_37 [2] : vector<8x8x16xf32> to vector<8x8xf32>
    %136 = vector.shape_cast %135 : vector<8x8xf32> to vector<8x8x1xf32>
    %137 = tpu.reciprocal %136 {approx = true} : vector<8x8x1xf32> -> vector<8x8x1xf32>
    %138 = vector.broadcast %137 : vector<8x8x1xf32> to vector<8x8x16xf32>
    %139 = arith.mulf %134, %138 : vector<8x8x16xf32>
    %140 = arith.truncf %139 : vector<8x8x16xf32> to vector<8x8x16xbf16>
    %141 = arith.truncf %126 : vector<8x16x8xf32> to vector<8x16x8xbf16>
    "tpu.trace_start"() <{level = 10 : i32, message = "nqk,nkc->nqc"}> : () -> ()
    %cst_38 = arith.constant dense<0.000000e+00> : vector<8x8x8xf32>
    %142 = tpu.matmul %140, %141, %cst_38 {dimension_numbers = #tpu.dot_dimension_numbers<[2], [1], [1], [2], [0, 0, 0, 1, 1, 2], [0], [0]>} : vector<8x8x16xbf16>, vector<8x16x8xbf16>, vector<8x8x8xf32> -> vector<8x8x8xf32>
    "tpu.trace_stop"() : () -> ()
    %c0_39 = arith.constant 0 : index
    %c0_40 = arith.constant 0 : index
    %c0_41 = arith.constant 0 : index
    %c0_42 = arith.constant 0 : index
    %143 = vector.load %arg6[%c0_39, %c0_40, %c0_41, %c0_42] : memref<2x4x8x32xbf16, #tpu.memory_space<vmem>>, vector<1x4x8x32xbf16>
    %144 = vector.shape_cast %143 : vector<1x4x8x32xbf16> to vector<4x8x32xbf16>
    %145 = vector.shape_cast %142 : vector<8x8x8xf32> to vector<4x16x8xf32>
    %146 = arith.truncf %145 : vector<4x16x8xf32> to vector<4x16x8xbf16>
    "tpu.trace_start"() <{level = 10 : i32, message = "hnc,hcd->hnd"}> : () -> ()
    %cst_43 = arith.constant dense<0.000000e+00> : vector<4x16x32xf32>
    %147 = tpu.matmul %146, %144, %cst_43 {dimension_numbers = #tpu.dot_dimension_numbers<[2], [1], [1], [2], [0, 0, 0, 1, 1, 2], [0], [0]>} : vector<4x16x8xbf16>, vector<4x8x32xbf16>, vector<4x16x32xf32> -> vector<4x16x32xf32>
    "tpu.trace_stop"() : () -> ()
    %cst_44 = arith.constant dense<0.000000e+00> : vector<16x32xf32>
    %148 = vector.multi_reduction <add>, %147, %cst_44 [0] : vector<4x16x32xf32> to vector<16x32xf32>
    %149 = arith.addf %87, %148 : vector<16x32xf32>
    %150 = vector.extract_strided_slice %3 {offsets = [1, 0], sizes = [1, 32], strides = [1, 1]} : vector<3x32xf32> to vector<1x32xf32>
    %151 = vector.extract_strided_slice %5 {offsets = [1, 0], sizes = [1, 32], strides = [1, 1]} : vector<3x32xf32> to vector<1x32xf32>
    %cst_45 = arith.constant dense<0.000000e+00> : vector<16xf32>
    %152 = vector.multi_reduction <add>, %149, %cst_45 [1] : vector<16x32xf32> to vector<16xf32>
    %153 = vector.shape_cast %152 : vector<16xf32> to vector<16x1xf32>
    %cst_46 = arith.constant 3.200000e+01 : f32
    %154 = vector.broadcast %cst_46 : f32 to vector<16x1xf32>
    %155 = arith.divf %153, %154 : vector<16x1xf32>
    %156 = vector.broadcast %155 : vector<16x1xf32> to vector<16x32xf32>
    %157 = arith.subf %149, %156 : vector<16x32xf32>
    %158 = arith.mulf %157, %157 : vector<16x32xf32>
    %cst_47 = arith.constant dense<0.000000e+00> : vector<16xf32>
    %159 = vector.multi_reduction <add>, %158, %cst_47 [1] : vector<16x32xf32> to vector<16xf32>
    %160 = vector.shape_cast %159 : vector<16xf32> to vector<16x1xf32>
    %cst_48 = arith.constant 3.200000e+01 : f32
    %161 = vector.broadcast %cst_48 : f32 to vector<16x1xf32>
    %162 = arith.divf %160, %161 : vector<16x1xf32>
    %cst_49 = arith.constant 9.99999974E-6 : f32
    %163 = vector.broadcast %cst_49 : f32 to vector<16x1xf32>
    %164 = arith.addf %162, %163 : vector<16x1xf32>
    %165 = math.rsqrt %164 : vector<16x1xf32>
    %166 = vector.broadcast %165 : vector<16x1xf32> to vector<16x32xf32>
    %167 = arith.mulf %157, %166 : vector<16x32xf32>
    %168 = vector.broadcast %150 : vector<1x32xf32> to vector<16x32xf32>
    %169 = arith.mulf %167, %168 : vector<16x32xf32>
    %170 = vector.broadcast %151 : vector<1x32xf32> to vector<16x32xf32>
    %171 = arith.addf %169, %170 : vector<16x32xf32>
    %c0_50 = arith.constant 0 : index
    %c0_51 = arith.constant 0 : index
    %c0_52 = arith.constant 0 : index
    %172 = vector.load %arg7[%c0_50, %c0_51, %c0_52] : memref<2x32x64xbf16, #tpu.memory_space<vmem>>, vector<1x32x64xbf16>
    %173 = vector.shape_cast %172 : vector<1x32x64xbf16> to vector<32x64xbf16>
    %174 = arith.truncf %171 : vector<16x32xf32> to vector<16x32xbf16>
    %cst_53 = arith.constant dense<0.000000e+00> : vector<16x64xf32>
    %175 = tpu.matmul %174, %173, %cst_53 {dimension_numbers = #tpu.dot_dimension_numbers<[1], [0], [0], [1], [0, 0, 1, 1], [], []>} : vector<16x32xbf16>, vector<32x64xbf16>, vector<16x64xf32> -> vector<16x64xf32>
    %c0_54 = arith.constant 0 : index
    %c0_55 = arith.constant 0 : index
    %c0_56 = arith.constant 0 : index
    %176 = vector.load %arg8[%c0_54, %c0_55, %c0_56] : memref<2x1x64xf32, #tpu.memory_space<vmem>>, vector<1x1x64xf32>
    %177 = vector.shape_cast %176 : vector<1x1x64xf32> to vector<1x64xf32>
    %178 = vector.broadcast %177 : vector<1x64xf32> to vector<16x64xf32>
    %179 = arith.addf %175, %178 : vector<16x64xf32>
    %cst_57 = arith.constant 0.000000e+00 : f32
    %180 = vector.broadcast %cst_57 : f32 to vector<16x64xf32>
    %181 = arith.maximumf %179, %180 : vector<16x64xf32>
    %c0_58 = arith.constant 0 : index
    %c0_59 = arith.constant 0 : index
    %c0_60 = arith.constant 0 : index
    %182 = vector.load %arg9[%c0_58, %c0_59, %c0_60] : memref<2x64x32xbf16, #tpu.memory_space<vmem>>, vector<1x64x32xbf16>
    %183 = vector.shape_cast %182 : vector<1x64x32xbf16> to vector<64x32xbf16>
    %184 = arith.truncf %181 : vector<16x64xf32> to vector<16x64xbf16>
    %cst_61 = arith.constant dense<0.000000e+00> : vector<16x32xf32>
    %185 = tpu.matmul %184, %183, %cst_61 {dimension_numbers = #tpu.dot_dimension_numbers<[1], [0], [0], [1], [0, 0, 1, 1], [], []>} : vector<16x64xbf16>, vector<64x32xbf16>, vector<16x32xf32> -> vector<16x32xf32>
    %c0_62 = arith.constant 0 : index
    %c0_63 = arith.constant 0 : index
    %c0_64 = arith.constant 0 : index
    %186 = vector.load %arg10[%c0_62, %c0_63, %c0_64] : memref<2x1x32xf32, #tpu.memory_space<vmem>>, vector<1x1x32xf32>
    %187 = vector.shape_cast %186 : vector<1x1x32xf32> to vector<1x32xf32>
    %188 = vector.broadcast %187 : vector<1x32xf32> to vector<16x32xf32>
    %189 = arith.addf %185, %188 : vector<16x32xf32>
    %190 = arith.addf %171, %189 : vector<16x32xf32>
    %191 = vector.extract_strided_slice %3 {offsets = [2, 0], sizes = [1, 32], strides = [1, 1]} : vector<3x32xf32> to vector<1x32xf32>
    %192 = vector.extract_strided_slice %5 {offsets = [2, 0], sizes = [1, 32], strides = [1, 1]} : vector<3x32xf32> to vector<1x32xf32>
    %cst_65 = arith.constant dense<0.000000e+00> : vector<16xf32>
    %193 = vector.multi_reduction <add>, %190, %cst_65 [1] : vector<16x32xf32> to vector<16xf32>
    %194 = vector.shape_cast %193 : vector<16xf32> to vector<16x1xf32>
    %cst_66 = arith.constant 3.200000e+01 : f32
    %195 = vector.broadcast %cst_66 : f32 to vector<16x1xf32>
    %196 = arith.divf %194, %195 : vector<16x1xf32>
    %197 = vector.broadcast %196 : vector<16x1xf32> to vector<16x32xf32>
    %198 = arith.subf %190, %197 : vector<16x32xf32>
    %199 = arith.mulf %198, %198 : vector<16x32xf32>
    %cst_67 = arith.constant dense<0.000000e+00> : vector<16xf32>
    %200 = vector.multi_reduction <add>, %199, %cst_67 [1] : vector<16x32xf32> to vector<16xf32>
    %201 = vector.shape_cast %200 : vector<16xf32> to vector<16x1xf32>
    %cst_68 = arith.constant 3.200000e+01 : f32
    %202 = vector.broadcast %cst_68 : f32 to vector<16x1xf32>
    %203 = arith.divf %201, %202 : vector<16x1xf32>
    %cst_69 = arith.constant 9.99999974E-6 : f32
    %204 = vector.broadcast %cst_69 : f32 to vector<16x1xf32>
    %205 = arith.addf %203, %204 : vector<16x1xf32>
    %206 = math.rsqrt %205 : vector<16x1xf32>
    %207 = vector.broadcast %206 : vector<16x1xf32> to vector<16x32xf32>
    %208 = arith.mulf %198, %207 : vector<16x32xf32>
    %209 = vector.broadcast %191 : vector<1x32xf32> to vector<16x32xf32>
    %210 = arith.mulf %208, %209 : vector<16x32xf32>
    %211 = vector.broadcast %192 : vector<1x32xf32> to vector<16x32xf32>
    %212 = arith.addf %210, %211 : vector<16x32xf32>
    %c1 = arith.constant 1 : index
    %c0_70 = arith.constant 0 : index
    %c0_71 = arith.constant 0 : index
    %213 = vector.load %arg11[%c1, %c0_70, %c0_71] : memref<2x3x32xf32, #tpu.memory_space<vmem>>, vector<1x3x32xf32>
    %214 = vector.shape_cast %213 : vector<1x3x32xf32> to vector<3x32xf32>
    %c1_72 = arith.constant 1 : index
    %c0_73 = arith.constant 0 : index
    %c0_74 = arith.constant 0 : index
    %215 = vector.load %arg12[%c1_72, %c0_73, %c0_74] : memref<2x3x32xf32, #tpu.memory_space<vmem>>, vector<1x3x32xf32>
    %216 = vector.shape_cast %215 : vector<1x3x32xf32> to vector<3x32xf32>
    %c1_75 = arith.constant 1 : index
    %c0_76 = arith.constant 0 : index
    %c0_77 = arith.constant 0 : index
    %217 = vector.load %arg2[%c1_75, %c0_76, %c0_77] : memref<2x32x96xbf16, #tpu.memory_space<vmem>>, vector<1x32x96xbf16>
    %218 = vector.shape_cast %217 : vector<1x32x96xbf16> to vector<32x96xbf16>
    %219 = arith.truncf %212 : vector<16x32xf32> to vector<16x32xbf16>
    %cst_78 = arith.constant dense<0.000000e+00> : vector<16x96xf32>
    %220 = tpu.matmul %219, %218, %cst_78 {dimension_numbers = #tpu.dot_dimension_numbers<[1], [0], [0], [1], [0, 0, 1, 1], [], []>} : vector<16x32xbf16>, vector<32x96xbf16>, vector<16x96xf32> -> vector<16x96xf32>
    %221 = vector.extract_strided_slice %220 {offsets = [0, 0], sizes = [16, 32], strides = [1, 1]} : vector<16x96xf32> to vector<16x32xf32>
    %222 = vector.extract_strided_slice %221 {offsets = [0, 0], sizes = [16, 8], strides = [1, 1]} : vector<16x32xf32> to vector<16x8xf32>
    %223 = vector.extract_strided_slice %221 {offsets = [0, 8], sizes = [16, 8], strides = [1, 1]} : vector<16x32xf32> to vector<16x8xf32>
    %224 = vector.extract_strided_slice %221 {offsets = [0, 16], sizes = [16, 8], strides = [1, 1]} : vector<16x32xf32> to vector<16x8xf32>
    %225 = vector.extract_strided_slice %221 {offsets = [0, 24], sizes = [16, 8], strides = [1, 1]} : vector<16x32xf32> to vector<16x8xf32>
    %226 = vector.shape_cast %222 : vector<16x8xf32> to vector<1x16x8xf32>
    %227 = vector.shape_cast %223 : vector<16x8xf32> to vector<1x16x8xf32>
    %228 = vector.shape_cast %224 : vector<16x8xf32> to vector<1x16x8xf32>
    %229 = vector.shape_cast %225 : vector<16x8xf32> to vector<1x16x8xf32>
    %230 = tpu.concatenate %226, %227, %228, %229 in 0 : vector<1x16x8xf32>, vector<1x16x8xf32>, vector<1x16x8xf32>, vector<1x16x8xf32> -> vector<4x16x8xf32>
    %231 = vector.shape_cast %230 : vector<4x16x8xf32> to vector<8x8x8xf32>
    %232 = vector.extract_strided_slice %220 {offsets = [0, 32], sizes = [16, 32], strides = [1, 1]} : vector<16x96xf32> to vector<16x32xf32>
    %233 = vector.extract_strided_slice %232 {offsets = [0, 0], sizes = [16, 8], strides = [1, 1]} : vector<16x32xf32> to vector<16x8xf32>
    %234 = vector.extract_strided_slice %232 {offsets = [0, 8], sizes = [16, 8], strides = [1, 1]} : vector<16x32xf32> to vector<16x8xf32>
    %235 = vector.extract_strided_slice %232 {offsets = [0, 16], sizes = [16, 8], strides = [1, 1]} : vector<16x32xf32> to vector<16x8xf32>
    %236 = vector.extract_strided_slice %232 {offsets = [0, 24], sizes = [16, 8], strides = [1, 1]} : vector<16x32xf32> to vector<16x8xf32>
    %237 = vector.shape_cast %233 : vector<16x8xf32> to vector<1x16x8xf32>
    %238 = vector.shape_cast %234 : vector<16x8xf32> to vector<1x16x8xf32>
    %239 = vector.shape_cast %235 : vector<16x8xf32> to vector<1x16x8xf32>
    %240 = vector.shape_cast %236 : vector<16x8xf32> to vector<1x16x8xf32>
    %241 = tpu.concatenate %237, %238, %239, %240 in 0 : vector<1x16x8xf32>, vector<1x16x8xf32>, vector<1x16x8xf32>, vector<1x16x8xf32> -> vector<4x16x8xf32>
    %242 = vector.shape_cast %241 : vector<4x16x8xf32> to vector<8x8x8xf32>
    %243 = vector.extract_strided_slice %220 {offsets = [0, 64], sizes = [16, 32], strides = [1, 1]} : vector<16x96xf32> to vector<16x32xf32>
    %244 = vector.extract_strided_slice %243 {offsets = [0, 0], sizes = [16, 8], strides = [1, 1]} : vector<16x32xf32> to vector<16x8xf32>
    %245 = vector.extract_strided_slice %243 {offsets = [0, 8], sizes = [16, 8], strides = [1, 1]} : vector<16x32xf32> to vector<16x8xf32>
    %246 = vector.extract_strided_slice %243 {offsets = [0, 16], sizes = [16, 8], strides = [1, 1]} : vector<16x32xf32> to vector<16x8xf32>
    %247 = vector.extract_strided_slice %243 {offsets = [0, 24], sizes = [16, 8], strides = [1, 1]} : vector<16x32xf32> to vector<16x8xf32>
    %248 = vector.shape_cast %244 : vector<16x8xf32> to vector<1x16x8xf32>
    %249 = vector.shape_cast %245 : vector<16x8xf32> to vector<1x16x8xf32>
    %250 = vector.shape_cast %246 : vector<16x8xf32> to vector<1x16x8xf32>
    %251 = vector.shape_cast %247 : vector<16x8xf32> to vector<1x16x8xf32>
    %252 = tpu.concatenate %248, %249, %250, %251 in 0 : vector<1x16x8xf32>, vector<1x16x8xf32>, vector<1x16x8xf32>, vector<1x16x8xf32> -> vector<4x16x8xf32>
    %253 = vector.shape_cast %252 : vector<4x16x8xf32> to vector<8x8x8xf32>
    %254 = arith.truncf %231 : vector<8x8x8xf32> to vector<8x8x8xbf16>
    %255 = arith.truncf %242 : vector<8x8x8xf32> to vector<8x8x8xbf16>
    "tpu.trace_start"() <{level = 10 : i32, message = "nqc,nkc->nqk"}> : () -> ()
    %cst_79 = arith.constant dense<0.000000e+00> : vector<8x8x8xf32>
    %256 = tpu.matmul %254, %255, %cst_79 {dimension_numbers = #tpu.dot_dimension_numbers<[2], [2], [1], [1], [0, 0, 0, 1, 1, 1], [0], [0]>} : vector<8x8x8xbf16>, vector<8x8x8xbf16>, vector<8x8x8xf32> -> vector<8x8x8xf32>
    "tpu.trace_stop"() : () -> ()
    %cst_80 = arith.constant dense<0xFF800000> : vector<8x8xf32>
    %257 = vector.multi_reduction <maximumf>, %256, %cst_80 [2] : vector<8x8x8xf32> to vector<8x8xf32>
    %258 = vector.shape_cast %257 : vector<8x8xf32> to vector<8x8x1xf32>
    %259 = vector.broadcast %258 : vector<8x8x1xf32> to vector<8x8x8xf32>
    %260 = arith.subf %256, %259 : vector<8x8x8xf32>
    %261 = math.exp %260 : vector<8x8x8xf32>
    %cst_81 = arith.constant dense<0.000000e+00> : vector<8x8xf32>
    %262 = vector.multi_reduction <add>, %261, %cst_81 [2] : vector<8x8x8xf32> to vector<8x8xf32>
    %263 = vector.shape_cast %262 : vector<8x8xf32> to vector<8x8x1xf32>
    %264 = tpu.reciprocal %263 {approx = true} : vector<8x8x1xf32> -> vector<8x8x1xf32>
    %265 = vector.broadcast %264 : vector<8x8x1xf32> to vector<8x8x8xf32>
    %266 = arith.mulf %261, %265 : vector<8x8x8xf32>
    %267 = arith.truncf %266 : vector<8x8x8xf32> to vector<8x8x8xbf16>
    %268 = arith.truncf %253 : vector<8x8x8xf32> to vector<8x8x8xbf16>
    "tpu.trace_start"() <{level = 10 : i32, message = "nqk,nkc->nqc"}> : () -> ()
    %cst_82 = arith.constant dense<0.000000e+00> : vector<8x8x8xf32>
    %269 = tpu.matmul %267, %268, %cst_82 {dimension_numbers = #tpu.dot_dimension_numbers<[2], [1], [1], [2], [0, 0, 0, 1, 1, 2], [0], [0]>} : vector<8x8x8xbf16>, vector<8x8x8xbf16>, vector<8x8x8xf32> -> vector<8x8x8xf32>
    "tpu.trace_stop"() : () -> ()
    %c1_83 = arith.constant 1 : index
    %c0_84 = arith.constant 0 : index
    %c0_85 = arith.constant 0 : index
    %c0_86 = arith.constant 0 : index
    %270 = vector.load %arg3[%c1_83, %c0_84, %c0_85, %c0_86] : memref<2x4x8x32xbf16, #tpu.memory_space<vmem>>, vector<1x4x8x32xbf16>
    %271 = vector.shape_cast %270 : vector<1x4x8x32xbf16> to vector<4x8x32xbf16>
    %272 = vector.shape_cast %269 : vector<8x8x8xf32> to vector<4x16x8xf32>
    %273 = arith.truncf %272 : vector<4x16x8xf32> to vector<4x16x8xbf16>
    "tpu.trace_start"() <{level = 10 : i32, message = "hnc,hcd->hnd"}> : () -> ()
    %cst_87 = arith.constant dense<0.000000e+00> : vector<4x16x32xf32>
    %274 = tpu.matmul %273, %271, %cst_87 {dimension_numbers = #tpu.dot_dimension_numbers<[2], [1], [1], [2], [0, 0, 0, 1, 1, 2], [0], [0]>} : vector<4x16x8xbf16>, vector<4x8x32xbf16>, vector<4x16x32xf32> -> vector<4x16x32xf32>
    "tpu.trace_stop"() : () -> ()
    %cst_88 = arith.constant dense<0.000000e+00> : vector<16x32xf32>
    %275 = vector.multi_reduction <add>, %274, %cst_88 [0] : vector<4x16x32xf32> to vector<16x32xf32>
    %276 = arith.addf %212, %275 : vector<16x32xf32>
    %277 = vector.extract_strided_slice %214 {offsets = [0, 0], sizes = [1, 32], strides = [1, 1]} : vector<3x32xf32> to vector<1x32xf32>
    %278 = vector.extract_strided_slice %216 {offsets = [0, 0], sizes = [1, 32], strides = [1, 1]} : vector<3x32xf32> to vector<1x32xf32>
    %cst_89 = arith.constant dense<0.000000e+00> : vector<16xf32>
    %279 = vector.multi_reduction <add>, %276, %cst_89 [1] : vector<16x32xf32> to vector<16xf32>
    %280 = vector.shape_cast %279 : vector<16xf32> to vector<16x1xf32>
    %cst_90 = arith.constant 3.200000e+01 : f32
    %281 = vector.broadcast %cst_90 : f32 to vector<16x1xf32>
    %282 = arith.divf %280, %281 : vector<16x1xf32>
    %283 = vector.broadcast %282 : vector<16x1xf32> to vector<16x32xf32>
    %284 = arith.subf %276, %283 : vector<16x32xf32>
    %285 = arith.mulf %284, %284 : vector<16x32xf32>
    %cst_91 = arith.constant dense<0.000000e+00> : vector<16xf32>
    %286 = vector.multi_reduction <add>, %285, %cst_91 [1] : vector<16x32xf32> to vector<16xf32>
    %287 = vector.shape_cast %286 : vector<16xf32> to vector<16x1xf32>
    %cst_92 = arith.constant 3.200000e+01 : f32
    %288 = vector.broadcast %cst_92 : f32 to vector<16x1xf32>
    %289 = arith.divf %287, %288 : vector<16x1xf32>
    %cst_93 = arith.constant 9.99999974E-6 : f32
    %290 = vector.broadcast %cst_93 : f32 to vector<16x1xf32>
    %291 = arith.addf %289, %290 : vector<16x1xf32>
    %292 = math.rsqrt %291 : vector<16x1xf32>
    %293 = vector.broadcast %292 : vector<16x1xf32> to vector<16x32xf32>
    %294 = arith.mulf %284, %293 : vector<16x32xf32>
    %295 = vector.broadcast %277 : vector<1x32xf32> to vector<16x32xf32>
    %296 = arith.mulf %294, %295 : vector<16x32xf32>
    %297 = vector.broadcast %278 : vector<1x32xf32> to vector<16x32xf32>
    %298 = arith.addf %296, %297 : vector<16x32xf32>
    %c1_94 = arith.constant 1 : index
    %c0_95 = arith.constant 0 : index
    %c0_96 = arith.constant 0 : index
    %299 = vector.load %arg4[%c1_94, %c0_95, %c0_96] : memref<2x32x32xbf16, #tpu.memory_space<vmem>>, vector<1x32x32xbf16>
    %300 = vector.shape_cast %299 : vector<1x32x32xbf16> to vector<32x32xbf16>
    %301 = arith.truncf %298 : vector<16x32xf32> to vector<16x32xbf16>
    %cst_97 = arith.constant dense<0.000000e+00> : vector<16x32xf32>
    %302 = tpu.matmul %301, %300, %cst_97 {dimension_numbers = #tpu.dot_dimension_numbers<[1], [0], [0], [1], [0, 0, 1, 1], [], []>} : vector<16x32xbf16>, vector<32x32xbf16>, vector<16x32xf32> -> vector<16x32xf32>
    %303 = vector.extract_strided_slice %302 {offsets = [0, 0], sizes = [16, 8], strides = [1, 1]} : vector<16x32xf32> to vector<16x8xf32>
    %304 = vector.extract_strided_slice %302 {offsets = [0, 8], sizes = [16, 8], strides = [1, 1]} : vector<16x32xf32> to vector<16x8xf32>
    %305 = vector.extract_strided_slice %302 {offsets = [0, 16], sizes = [16, 8], strides = [1, 1]} : vector<16x32xf32> to vector<16x8xf32>
    %306 = vector.extract_strided_slice %302 {offsets = [0, 24], sizes = [16, 8], strides = [1, 1]} : vector<16x32xf32> to vector<16x8xf32>
    %307 = vector.shape_cast %303 : vector<16x8xf32> to vector<1x16x8xf32>
    %308 = vector.shape_cast %304 : vector<16x8xf32> to vector<1x16x8xf32>
    %309 = vector.shape_cast %305 : vector<16x8xf32> to vector<1x16x8xf32>
    %310 = vector.shape_cast %306 : vector<16x8xf32> to vector<1x16x8xf32>
    %311 = tpu.concatenate %307, %308, %309, %310 in 0 : vector<1x16x8xf32>, vector<1x16x8xf32>, vector<1x16x8xf32>, vector<1x16x8xf32> -> vector<4x16x8xf32>
    %312 = vector.shape_cast %311 : vector<4x16x8xf32> to vector<8x8x8xf32>
    %c1_98 = arith.constant 1 : index
    %c0_99 = arith.constant 0 : index
    %c0_100 = arith.constant 0 : index
    %313 = vector.load %arg5[%c1_98, %c0_99, %c0_100] : memref<2x32x64xbf16, #tpu.memory_space<vmem>>, vector<1x32x64xbf16>
    %314 = vector.shape_cast %313 : vector<1x32x64xbf16> to vector<32x64xbf16>
    %cst_101 = arith.constant dense<0.000000e+00> : vector<32x64xf32>
    %315 = tpu.matmul %1, %314, %cst_101 {dimension_numbers = #tpu.dot_dimension_numbers<[1], [0], [0], [1], [0, 0, 1, 1], [], []>} : vector<32x32xbf16>, vector<32x64xbf16>, vector<32x64xf32> -> vector<32x64xf32>
    %316 = vector.extract_strided_slice %315 {offsets = [0, 0], sizes = [32, 32], strides = [1, 1]} : vector<32x64xf32> to vector<32x32xf32>
    %317 = vector.extract_strided_slice %316 {offsets = [0, 0], sizes = [32, 8], strides = [1, 1]} : vector<32x32xf32> to vector<32x8xf32>
    %318 = vector.extract_strided_slice %316 {offsets = [0, 8], sizes = [32, 8], strides = [1, 1]} : vector<32x32xf32> to vector<32x8xf32>
    %319 = vector.extract_strided_slice %316 {offsets = [0, 16], sizes = [32, 8], strides = [1, 1]} : vector<32x32xf32> to vector<32x8xf32>
    %320 = vector.extract_strided_slice %316 {offsets = [0, 24], sizes = [32, 8], strides = [1, 1]} : vector<32x32xf32> to vector<32x8xf32>
    %321 = vector.shape_cast %317 : vector<32x8xf32> to vector<1x32x8xf32>
    %322 = vector.shape_cast %318 : vector<32x8xf32> to vector<1x32x8xf32>
    %323 = vector.shape_cast %319 : vector<32x8xf32> to vector<1x32x8xf32>
    %324 = vector.shape_cast %320 : vector<32x8xf32> to vector<1x32x8xf32>
    %325 = tpu.concatenate %321, %322, %323, %324 in 0 : vector<1x32x8xf32>, vector<1x32x8xf32>, vector<1x32x8xf32>, vector<1x32x8xf32> -> vector<4x32x8xf32>
    %326 = vector.shape_cast %325 : vector<4x32x8xf32> to vector<8x16x8xf32>
    %327 = vector.extract_strided_slice %315 {offsets = [0, 32], sizes = [32, 32], strides = [1, 1]} : vector<32x64xf32> to vector<32x32xf32>
    %328 = vector.extract_strided_slice %327 {offsets = [0, 0], sizes = [32, 8], strides = [1, 1]} : vector<32x32xf32> to vector<32x8xf32>
    %329 = vector.extract_strided_slice %327 {offsets = [0, 8], sizes = [32, 8], strides = [1, 1]} : vector<32x32xf32> to vector<32x8xf32>
    %330 = vector.extract_strided_slice %327 {offsets = [0, 16], sizes = [32, 8], strides = [1, 1]} : vector<32x32xf32> to vector<32x8xf32>
    %331 = vector.extract_strided_slice %327 {offsets = [0, 24], sizes = [32, 8], strides = [1, 1]} : vector<32x32xf32> to vector<32x8xf32>
    %332 = vector.shape_cast %328 : vector<32x8xf32> to vector<1x32x8xf32>
    %333 = vector.shape_cast %329 : vector<32x8xf32> to vector<1x32x8xf32>
    %334 = vector.shape_cast %330 : vector<32x8xf32> to vector<1x32x8xf32>
    %335 = vector.shape_cast %331 : vector<32x8xf32> to vector<1x32x8xf32>
    %336 = tpu.concatenate %332, %333, %334, %335 in 0 : vector<1x32x8xf32>, vector<1x32x8xf32>, vector<1x32x8xf32>, vector<1x32x8xf32> -> vector<4x32x8xf32>
    %337 = vector.shape_cast %336 : vector<4x32x8xf32> to vector<8x16x8xf32>
    %338 = arith.truncf %312 : vector<8x8x8xf32> to vector<8x8x8xbf16>
    %339 = arith.truncf %326 : vector<8x16x8xf32> to vector<8x16x8xbf16>
    "tpu.trace_start"() <{level = 10 : i32, message = "nqc,nkc->nqk"}> : () -> ()
    %cst_102 = arith.constant dense<0.000000e+00> : vector<8x8x16xf32>
    %340 = tpu.matmul %338, %339, %cst_102 {dimension_numbers = #tpu.dot_dimension_numbers<[2], [2], [1], [1], [0, 0, 0, 1, 1, 1], [0], [0]>} : vector<8x8x8xbf16>, vector<8x16x8xbf16>, vector<8x8x16xf32> -> vector<8x8x16xf32>
    "tpu.trace_stop"() : () -> ()
    %cst_103 = arith.constant dense<0xFF800000> : vector<8x8xf32>
    %341 = vector.multi_reduction <maximumf>, %340, %cst_103 [2] : vector<8x8x16xf32> to vector<8x8xf32>
    %342 = vector.shape_cast %341 : vector<8x8xf32> to vector<8x8x1xf32>
    %343 = vector.broadcast %342 : vector<8x8x1xf32> to vector<8x8x16xf32>
    %344 = arith.subf %340, %343 : vector<8x8x16xf32>
    %345 = math.exp %344 : vector<8x8x16xf32>
    %cst_104 = arith.constant dense<0.000000e+00> : vector<8x8xf32>
    %346 = vector.multi_reduction <add>, %345, %cst_104 [2] : vector<8x8x16xf32> to vector<8x8xf32>
    %347 = vector.shape_cast %346 : vector<8x8xf32> to vector<8x8x1xf32>
    %348 = tpu.reciprocal %347 {approx = true} : vector<8x8x1xf32> -> vector<8x8x1xf32>
    %349 = vector.broadcast %348 : vector<8x8x1xf32> to vector<8x8x16xf32>
    %350 = arith.mulf %345, %349 : vector<8x8x16xf32>
    %351 = arith.truncf %350 : vector<8x8x16xf32> to vector<8x8x16xbf16>
    %352 = arith.truncf %337 : vector<8x16x8xf32> to vector<8x16x8xbf16>
    "tpu.trace_start"() <{level = 10 : i32, message = "nqk,nkc->nqc"}> : () -> ()
    %cst_105 = arith.constant dense<0.000000e+00> : vector<8x8x8xf32>
    %353 = tpu.matmul %351, %352, %cst_105 {dimension_numbers = #tpu.dot_dimension_numbers<[2], [1], [1], [2], [0, 0, 0, 1, 1, 2], [0], [0]>} : vector<8x8x16xbf16>, vector<8x16x8xbf16>, vector<8x8x8xf32> -> vector<8x8x8xf32>
    "tpu.trace_stop"() : () -> ()
    %c1_106 = arith.constant 1 : index
    %c0_107 = arith.constant 0 : index
    %c0_108 = arith.constant 0 : index
    %c0_109 = arith.constant 0 : index
    %354 = vector.load %arg6[%c1_106, %c0_107, %c0_108, %c0_109] : memref<2x4x8x32xbf16, #tpu.memory_space<vmem>>, vector<1x4x8x32xbf16>
    %355 = vector.shape_cast %354 : vector<1x4x8x32xbf16> to vector<4x8x32xbf16>
    %356 = vector.shape_cast %353 : vector<8x8x8xf32> to vector<4x16x8xf32>
    %357 = arith.truncf %356 : vector<4x16x8xf32> to vector<4x16x8xbf16>
    "tpu.trace_start"() <{level = 10 : i32, message = "hnc,hcd->hnd"}> : () -> ()
    %cst_110 = arith.constant dense<0.000000e+00> : vector<4x16x32xf32>
    %358 = tpu.matmul %357, %355, %cst_110 {dimension_numbers = #tpu.dot_dimension_numbers<[2], [1], [1], [2], [0, 0, 0, 1, 1, 2], [0], [0]>} : vector<4x16x8xbf16>, vector<4x8x32xbf16>, vector<4x16x32xf32> -> vector<4x16x32xf32>
    "tpu.trace_stop"() : () -> ()
    %cst_111 = arith.constant dense<0.000000e+00> : vector<16x32xf32>
    %359 = vector.multi_reduction <add>, %358, %cst_111 [0] : vector<4x16x32xf32> to vector<16x32xf32>
    %360 = arith.addf %298, %359 : vector<16x32xf32>
    %361 = vector.extract_strided_slice %214 {offsets = [1, 0], sizes = [1, 32], strides = [1, 1]} : vector<3x32xf32> to vector<1x32xf32>
    %362 = vector.extract_strided_slice %216 {offsets = [1, 0], sizes = [1, 32], strides = [1, 1]} : vector<3x32xf32> to vector<1x32xf32>
    %cst_112 = arith.constant dense<0.000000e+00> : vector<16xf32>
    %363 = vector.multi_reduction <add>, %360, %cst_112 [1] : vector<16x32xf32> to vector<16xf32>
    %364 = vector.shape_cast %363 : vector<16xf32> to vector<16x1xf32>
    %cst_113 = arith.constant 3.200000e+01 : f32
    %365 = vector.broadcast %cst_113 : f32 to vector<16x1xf32>
    %366 = arith.divf %364, %365 : vector<16x1xf32>
    %367 = vector.broadcast %366 : vector<16x1xf32> to vector<16x32xf32>
    %368 = arith.subf %360, %367 : vector<16x32xf32>
    %369 = arith.mulf %368, %368 : vector<16x32xf32>
    %cst_114 = arith.constant dense<0.000000e+00> : vector<16xf32>
    %370 = vector.multi_reduction <add>, %369, %cst_114 [1] : vector<16x32xf32> to vector<16xf32>
    %371 = vector.shape_cast %370 : vector<16xf32> to vector<16x1xf32>
    %cst_115 = arith.constant 3.200000e+01 : f32
    %372 = vector.broadcast %cst_115 : f32 to vector<16x1xf32>
    %373 = arith.divf %371, %372 : vector<16x1xf32>
    %cst_116 = arith.constant 9.99999974E-6 : f32
    %374 = vector.broadcast %cst_116 : f32 to vector<16x1xf32>
    %375 = arith.addf %373, %374 : vector<16x1xf32>
    %376 = math.rsqrt %375 : vector<16x1xf32>
    %377 = vector.broadcast %376 : vector<16x1xf32> to vector<16x32xf32>
    %378 = arith.mulf %368, %377 : vector<16x32xf32>
    %379 = vector.broadcast %361 : vector<1x32xf32> to vector<16x32xf32>
    %380 = arith.mulf %378, %379 : vector<16x32xf32>
    %381 = vector.broadcast %362 : vector<1x32xf32> to vector<16x32xf32>
    %382 = arith.addf %380, %381 : vector<16x32xf32>
    %c1_117 = arith.constant 1 : index
    %c0_118 = arith.constant 0 : index
    %c0_119 = arith.constant 0 : index
    %383 = vector.load %arg7[%c1_117, %c0_118, %c0_119] : memref<2x32x64xbf16, #tpu.memory_space<vmem>>, vector<1x32x64xbf16>
    %384 = vector.shape_cast %383 : vector<1x32x64xbf16> to vector<32x64xbf16>
    %385 = arith.truncf %382 : vector<16x32xf32> to vector<16x32xbf16>
    %cst_120 = arith.constant dense<0.000000e+00> : vector<16x64xf32>
    %386 = tpu.matmul %385, %384, %cst_120 {dimension_numbers = #tpu.dot_dimension_numbers<[1], [0], [0], [1], [0, 0, 1, 1], [], []>} : vector<16x32xbf16>, vector<32x64xbf16>, vector<16x64xf32> -> vector<16x64xf32>
    %c1_121 = arith.constant 1 : index
    %c0_122 = arith.constant 0 : index
    %c0_123 = arith.constant 0 : index
    %387 = vector.load %arg8[%c1_121, %c0_122, %c0_123] : memref<2x1x64xf32, #tpu.memory_space<vmem>>, vector<1x1x64xf32>
    %388 = vector.shape_cast %387 : vector<1x1x64xf32> to vector<1x64xf32>
    %389 = vector.broadcast %388 : vector<1x64xf32> to vector<16x64xf32>
    %390 = arith.addf %386, %389 : vector<16x64xf32>
    %cst_124 = arith.constant 0.000000e+00 : f32
    %391 = vector.broadcast %cst_124 : f32 to vector<16x64xf32>
    %392 = arith.maximumf %390, %391 : vector<16x64xf32>
    %c1_125 = arith.constant 1 : index
    %c0_126 = arith.constant 0 : index
    %c0_127 = arith.constant 0 : index
    %393 = vector.load %arg9[%c1_125, %c0_126, %c0_127] : memref<2x64x32xbf16, #tpu.memory_space<vmem>>, vector<1x64x32xbf16>
    %394 = vector.shape_cast %393 : vector<1x64x32xbf16> to vector<64x32xbf16>
    %395 = arith.truncf %392 : vector<16x64xf32> to vector<16x64xbf16>
    %cst_128 = arith.constant dense<0.000000e+00> : vector<16x32xf32>
    %396 = tpu.matmul %395, %394, %cst_128 {dimension_numbers = #tpu.dot_dimension_numbers<[1], [0], [0], [1], [0, 0, 1, 1], [], []>} : vector<16x64xbf16>, vector<64x32xbf16>, vector<16x32xf32> -> vector<16x32xf32>
    %c1_129 = arith.constant 1 : index
    %c0_130 = arith.constant 0 : index
    %c0_131 = arith.constant 0 : index
    %397 = vector.load %arg10[%c1_129, %c0_130, %c0_131] : memref<2x1x32xf32, #tpu.memory_space<vmem>>, vector<1x1x32xf32>
    %398 = vector.shape_cast %397 : vector<1x1x32xf32> to vector<1x32xf32>
    %399 = vector.broadcast %398 : vector<1x32xf32> to vector<16x32xf32>
    %400 = arith.addf %396, %399 : vector<16x32xf32>
    %401 = arith.addf %382, %400 : vector<16x32xf32>
    %402 = vector.extract_strided_slice %214 {offsets = [2, 0], sizes = [1, 32], strides = [1, 1]} : vector<3x32xf32> to vector<1x32xf32>
    %403 = vector.extract_strided_slice %216 {offsets = [2, 0], sizes = [1, 32], strides = [1, 1]} : vector<3x32xf32> to vector<1x32xf32>
    %cst_132 = arith.constant dense<0.000000e+00> : vector<16xf32>
    %404 = vector.multi_reduction <add>, %401, %cst_132 [1] : vector<16x32xf32> to vector<16xf32>
    %405 = vector.shape_cast %404 : vector<16xf32> to vector<16x1xf32>
    %cst_133 = arith.constant 3.200000e+01 : f32
    %406 = vector.broadcast %cst_133 : f32 to vector<16x1xf32>
    %407 = arith.divf %405, %406 : vector<16x1xf32>
    %408 = vector.broadcast %407 : vector<16x1xf32> to vector<16x32xf32>
    %409 = arith.subf %401, %408 : vector<16x32xf32>
    %410 = arith.mulf %409, %409 : vector<16x32xf32>
    %cst_134 = arith.constant dense<0.000000e+00> : vector<16xf32>
    %411 = vector.multi_reduction <add>, %410, %cst_134 [1] : vector<16x32xf32> to vector<16xf32>
    %412 = vector.shape_cast %411 : vector<16xf32> to vector<16x1xf32>
    %cst_135 = arith.constant 3.200000e+01 : f32
    %413 = vector.broadcast %cst_135 : f32 to vector<16x1xf32>
    %414 = arith.divf %412, %413 : vector<16x1xf32>
    %cst_136 = arith.constant 9.99999974E-6 : f32
    %415 = vector.broadcast %cst_136 : f32 to vector<16x1xf32>
    %416 = arith.addf %414, %415 : vector<16x1xf32>
    %417 = math.rsqrt %416 : vector<16x1xf32>
    %418 = vector.broadcast %417 : vector<16x1xf32> to vector<16x32xf32>
    %419 = arith.mulf %409, %418 : vector<16x32xf32>
    %420 = vector.broadcast %402 : vector<1x32xf32> to vector<16x32xf32>
    %421 = arith.mulf %419, %420 : vector<16x32xf32>
    %422 = vector.broadcast %403 : vector<1x32xf32> to vector<16x32xf32>
    %423 = arith.addf %421, %422 : vector<16x32xf32>
    %c0_137 = arith.constant 0 : index
    %c0_138 = arith.constant 0 : index
    %424 = vector.load %arg13[%c0_137, %c0_138] : memref<16x32xf32, #tpu.memory_space<vmem>>, vector<16x32xf32>
    tpu.vector_store %arg13[%c0_137, %c0_138], %423 {strides = array<i32>} : memref<16x32xf32, #tpu.memory_space<vmem>>, vector<16x32xf32>,
    return
  }
}

</mosaic_0001>

<bundles_post_ra>
// kernel: tpu_custom_call.1
= control target key start
LH: loop header
LB: loop body
LE: loop exit
PB: predicated region body
PF: predicated region fallthrough
CT: control target
= control target key end

     0   :  { %18 = vsyncpa [#allocation3], 0  ;;  %s8114_s0 = inlined_call_operand.hbm [shape: f32[16,32], index: 0, kind: input, shape index: {}]   ;;  %s8115_s1 = inlined_call_operand.hbm [shape: bf16[32,32], index: 1, kind: input, shape index: {}]   ;;  %s8116_s2 = inlined_call_operand.vmem [shape: bf16[2,32,96], index: 2, kind: input, shape index: {}]   ;;  %s8117_s3 = inlined_call_operand.vmem [shape: bf16[2,4,8,32], index: 3, kind: input, shape index: {}]   ;;  %s8118_s4 = inlined_call_operand.vmem [shape: bf16[2,32,32], index: 4, kind: input, shape index: {}]   ;;  %s8119_s5 = inlined_call_operand.hbm [shape: bf16[2,32,64], index: 5, kind: input, shape index: {}]   ;;  %s8120_s6 = inlined_call_operand.hbm [shape: bf16[2,4,8,32], index: 6, kind: input, shape index: {}]   ;;  %s8121_s7 = inlined_call_operand.hbm [shape: bf16[2,32,64], index: 7, kind: input, shape index: {}]   ;;  %s8122_s8 = inlined_call_operand.vmem [shape: f32[2,1,64], index: 8, kind: input, shape index: {}]   ;;  %s8123_s9 = inlined_call_operand.vmem [shape: bf16[2,64,32], index: 9, kind: input, shape index: {}]   ;;  %s8124_s10 = inlined_call_operand.hbm [shape: f32[2,1,32], index: 10, kind: input, shape index: {}]   ;;  %s8125_s11 = inlined_call_operand.vmem [shape: f32[2,3,32], index: 11, kind: input, shape index: {}]   ;;  %s8126_s12 = inlined_call_operand.vmem [shape: f32[2,3,32], index: 12, kind: input, shape index: {}]   ;;  %s8127_s13 = inlined_call_operand.hbm [shape: f32[16,32], index: 13, kind: output, shape index: {}]  }
   0x1   :  { %19 = vsyncpa [#allocation6], 0 }
   0x2   :  { %20 = vsyncpa [#allocation9], 0 }
   0x3   :  { %21 = vsyncpa [#allocation12], 0 }
   0x4   :  { %22 = vsyncpa [#allocation4], 0  ;;  %s6967_s25 = smov [#allocation5]  }
   0x5   :  { %s40_s26 = sshll.u32 %s6967_s25, 4  ;;  %s41_s26 = int_to_ptr.vmem [resolvable:$true] %s40_s26 }
   0x6   :  { %s6825_s27 = scalar_lea.vmem %s41_s26, 256  ;;  %p6830_p1 = scmp.lt.s32.totalorder %s41_s26, %s41_s26 }
   0x7   :  { %p6826_p0 = scmp.ne.s32.totalorder %s41_s26, %s6825_s27  ;;  %p6831_p2 = scmp.lt.s32.totalorder %s6825_s27, %s6825_s27 }
   0x9   :  { %p6832_p3 = por %p6831_p2, %p6830_p1 }
   0xb   :  { %p6833_p4 = pnand %p6832_p3, %p6826_p0 }
   0xd   :  { %6836 = shalt.err (!%p6833_p4)
}
   0xe   :  { %s6968_s28 = smov 64   ;;  %s6969_s29 = smov 4  }
   0xf   :  { %46 = dma.hbm_to_vmem [thread:$0]  %s8115_s1, 256, %s41_s26, [#allocation6], %s6968_s28, %s6968_s28, %s6969_s29  }
  0x10   :  { %s6970_s15 = smov [#allocation8]   ;;  %s6971_s17 = smov [#allocation2]  }
  0x11   :  { %s70_s16 = sshll.u32 %s6970_s15, 4  ;;  %s28_s18 = sshll.u32 %s6971_s17, 4  ;;  %s71_s16 = int_to_ptr.vmem [resolvable:$true] %s70_s16  ;;  %s29_s18 = int_to_ptr.vmem [resolvable:$true] %s28_s18 }
  0x12   :  { %s6845_s19 = scalar_lea.vmem %s71_s16, 512  ;;  %p6850_p6 = scmp.lt.s32.totalorder %s71_s16, %s71_s16 }
  0x13   :  { %p6846_p5 = scmp.ne.s32.totalorder %s71_s16, %s6845_s19  ;;  %p6851_p7 = scmp.lt.s32.totalorder %s6845_s19, %s6845_s19 }
  0x15   :  { %p6852_p8 = por %p6851_p7, %p6850_p6 }
  0x17   :  { %p6853_p9 = pnand %p6852_p8, %p6846_p5 }
  0x19   :  { %6856 = shalt.err (!%p6853_p9)
}
  0x1a   :  { %76 = dma.hbm_to_vmem [thread:$0]  %s8120_s6, 512, %s71_s16, [#allocation9], %s6968_s28, %s6968_s28, %s6969_s29  }
  0x1b   :  { %s6865_s1 = scalar_lea.vmem %s29_s18, 256  ;;  %p6870_p11 = scmp.lt.s32.totalorder %s29_s18, %s29_s18 }
  0x1c   :  { %p6866_p10 = scmp.ne.s32.totalorder %s29_s18, %s6865_s1  ;;  %p6871_p12 = scmp.lt.s32.totalorder %s6865_s1, %s6865_s1 }
  0x1e   :  { %p6872_p13 = por %p6871_p12, %p6870_p11 }
  0x20   :  { %p6873_p0 = pnand %p6872_p13, %p6866_p10 }
  0x22   :  { %6876 = shalt.err (!%p6873_p0)
}
  0x23   :  { %s6972_s22 = smov 128   ;;  %s6973_s23 = smov 8  }
  0x24   :  { %34 = dma.hbm_to_vmem [thread:$0]  %s8114_s0, 256, %s29_s18, [#allocation3], %s6972_s22, %s6972_s22, %s6973_s23  }
  0x25   :  { %s6974_s26 = smov [#allocation7]   ;;  %s6975_s6 = smov [#allocation10]  }
  0x26   :  { %s58_s27 = sshll.u32 %s6974_s26, 4  ;;  %s82_s30 = sshll.u32 %s6975_s6, 4  ;;  %s59_s27 = int_to_ptr.vmem [resolvable:$true] %s58_s27  ;;  %s83_s30 = int_to_ptr.vmem [resolvable:$true] %s82_s30 }
  0x27   :  { %s6885_s14 = scalar_lea.vmem %s59_s27, 512  ;;  %p6890_p2 = scmp.lt.s32.totalorder %s59_s27, %s59_s27 }
  0x28   :  { %p6886_p1 = scmp.ne.s32.totalorder %s59_s27, %s6885_s14  ;;  %p6891_p3 = scmp.lt.s32.totalorder %s6885_s14, %s6885_s14 }
  0x2a   :  { %p6892_p4 = por %p6891_p3, %p6890_p2 }
  0x2c   :  { %p6893_p5 = pnand %p6892_p4, %p6886_p1 }
  0x2e   :  { %6896 = shalt.err (!%p6893_p5)
}
  0x2f   :  { %64 = dma.hbm_to_vmem [thread:$0]  %s8119_s5, 512, %s59_s27, [#allocation6], %s6968_s28, %s6968_s28, %s6969_s29  }
  0x30   :  { %s6905_s0 = scalar_lea.vmem %s83_s30, 512  ;;  %p6910_p7 = scmp.lt.s32.totalorder %s83_s30, %s83_s30 }
  0x31   :  { %p6906_p6 = scmp.ne.s32.totalorder %s83_s30, %s6905_s0  ;;  %p6911_p8 = scmp.lt.s32.totalorder %s6905_s0, %s6905_s0 }
  0x33   :  { %p6912_p9 = por %p6911_p8, %p6910_p7 }
  0x35   :  { %p6913_p10 = pnand %p6912_p9, %p6906_p6 }
  0x37   :  { %6916 = shalt.err (!%p6913_p10)
}
  0x38   :  { %88 = dma.hbm_to_vmem [thread:$0]  %s8121_s7, 512, %s83_s30, [#allocation9], %s6968_s28, %s6968_s28, %s6969_s29  }
  0x39   :  { %s6976_s19 = smov [#allocation11]  }
  0x3a   :  { %s98_s20 = sshll.u32 %s6976_s19, 4  ;;  %s99_s20 = int_to_ptr.vmem [resolvable:$true] %s98_s20 }
  0x3b   :  { %s6925_s21 = scalar_lea.vmem %s99_s20, 32  ;;  %p6930_p12 = scmp.lt.s32.totalorder %s99_s20, %s99_s20 }
  0x3c   :  { %p6926_p11 = scmp.ne.s32.totalorder %s99_s20, %s6925_s21  ;;  %p6931_p13 = scmp.lt.s32.totalorder %s6925_s21, %s6925_s21 }
  0x3e   :  { %p6932_p0 = por %p6931_p13, %p6930_p12 }
  0x40   :  { %p6933_p1 = pnand %p6932_p0, %p6926_p11 }
  0x42   :  { %6936 = shalt.err (!%p6933_p1)
}
  0x43   :  { %s6977_s5 = smov 16   ;;  %s6978_s1 = smov 1  }
  0x44   :  { %104 = dma.hbm_to_vmem [thread:$0]  %s8124_s10, 32, %s99_s20, [#allocation12], %s6977_s5, %s6977_s5, %s6978_s1  }
  0x45   :  { %6957 = dma.done.wait [#allocation3], 256  }
  0x46   :  { %6958 = vsyncadd [#allocation3], 4294967040 }
  0x47   :  { %6959 = dma.done.wait [#allocation6], 768  }
  0x48   :  { %6960 = vsyncadd [#allocation6], 4294966528 }
  0x49   :  { %6961 = dma.done.wait [#allocation9], 1024  }
  0x4a   :  { %6962 = vsyncadd [#allocation9], 4294966272 }
  0x4b   :  { %6963 = dma.done.wait [#allocation12], 32  }
  0x4c   :  { %6964 = vsyncadd [#allocation12], 4294967264  ;;  %v6979_v0 = vmov 0.0   ;;  %vm6980_vm0 = vmmov 0   ;;  %v6635_v1 = vld [vmem:[%s8116_s2 + $0x8] sm:$0xff]   ;;  %v6636_v2 = vld [vmem:[%s8116_s2] sm:$0xff]  }
  0x4d   :  { %5928 = vmatprep.subr.bf16.mxu1 %v6979_v0  ;;  %5932 = vmatprep.mubr.msk.bf16.mxu1 %vm6980_vm0, %v6979_v0  ;;  %v7101_v3 = vld [vmem:[#allocation2] sm:$0xff]  ;;  %v7103_v4 = vld [vmem:[#allocation2 + $0x8] sm:$0xff]  ;;  %vm153_vm1 = vcmask 261120   ;;  %s6981_s27 = smov 104   ;;  %s6982_s6 = smov 120   ;;  %vm229_vm2 = vcmask 64512  }
  0x4e   :  { %5942 = vmatprep.subr.bf16.mxu0 %v6979_v0  ;;  %5944 = vmatprep.mubr.msk.bf16.mxu0 %vm6980_vm0, %v6979_v0  ;;  %v140_v5 = vpack.c.bf16 %v7103_v4, %v7101_v3  ;;  %s6983_s30 = smov 96   ;;  %s6984_s14 = smov 112   ;;  %vm720_vm3 = vcmask 1043456   ;;  %vm1937_vm4 = vcmask 130048   ;;  %vm2770_vm5 = vcmask 523264  }
  0x4f   :  { %5929 = vmatpush3.bf16.msra.mxu1 %v6635_v1 }
  0x50   :  { %5930 = vmatprep.subr.bf16.mxu1 %v6979_v0 }
  0x53   :  { %5931 = vmatpush3.bf16.msra.mxu1 %v6636_v2 }
  0x54   :  { %5936 = vmatprep.subr.bf16.mxu1 %v6979_v0 }
  0x56   :  { %5933 = vmatmul.mubr.msk.bf16.vlgmr.msra.gmra.mxu1 %vm153_vm1, %v140_v5 }
  0x57   :  { %5938 = vmatprep.mubr.msk.bf16.mxu1 %vm6980_vm0, %v6979_v0 }
 0x116   :  { %v191_v6 = vpop.f32.mrf.mxu1 }
 0x117   :  { %v218_v11 = vpack.c.bf16 %v191_v6, %v191_v6 }
 0x118   :  { %v5934_v7 = vpop.f32.mrf.mxu1 }
 0x11a   :  { %v194_v8 = vpop.f32.mrf.mxu1 }
 0x11b   :  { %v6525_v9 = vpack.i.bf16 %v194_v8, %v191_v6  ;;  %v219_v12 = vpack.c.bf16 %v194_v8, %v194_v8 }
 0x11c   :  { %v5935_v10 = vpop.f32.mrf.mxu1 }
 0x11d   :  { %6526 = vrot.lane.b32.xlu1 %v6525_v9, %s6981_s27  ;;  %6516 = vrot.lane.b32.xlu0 %v6525_v9, %s6982_s6 }
 0x121   :  { %227 = vrot.lane.b32.xlu1 %v218_v11, %s6983_s30  ;;  %6521 = vrot.lane.b32.xlu0 %v6525_v9, %s6984_s14 }
 0x125   :  { %277 = vrot.lane.b32.xlu0 %v219_v12, %s6983_s30 }
 0x18f   :  { %v6527_v13 = vpop.permute.xlu1 %6526  ;;  %v6517_v14 = vpop.permute.xlu0 %6516 }
 0x190   :  { %v6519_v15 = vunpack.i.h.bf16 %v6517_v14  ;;  %v6518_v16 = vunpack.i.l.bf16 %v6517_v14  ;;  %v6528_v24 = vunpack.i.l.bf16 %v6527_v13  ;;  %v6529_v27 = vunpack.i.h.bf16 %v6527_v13 }
 0x192   :  { %v7117_v17 = vpack.c.bf16 %v6518_v16, %v6518_v16  ;;  %v7119_v18 = vpack.c.bf16 %v6519_v15, %v6519_v15  ;;  %v7136_v30 = vpack.c.bf16 %v6528_v24, %v6528_v24  ;;  %v7139_v31 = vpack.c.bf16 %v6529_v27, %v6529_v27 }
 0x193   :  { %v228_v19 = vpop.permute.xlu1 %227  ;;  %v6522_v20 = vpop.permute.xlu0 %6521 }
 0x194   :  { %v234_v21 = vsel %vm229_vm2, %v228_v19, 0  ;;  %v6524_v22 = vunpack.i.h.bf16 %v6522_v20  ;;  %v6523_v23 = vunpack.i.l.bf16 %v6522_v20  ;;  %326 = vrot.lane.b32.xlu1 %v7117_v17, %s6983_s30  ;;  %375 = vrot.lane.b32.xlu0 %v7119_v18, %s6983_s30 }
 0x195   :  { %5937 = vmatpush3.bf16.xpose.msra.mxu1 %v234_v21 }
 0x196   :  { %v7126_v25 = vpack.c.bf16 %v6523_v23, %v6523_v23  ;;  %v7128_v26 = vpack.c.bf16 %v6524_v22, %v6524_v22  ;;  %5948 = vmatprep.subr.bf16.mxu1 %v6979_v0 }
 0x197   :  { %v278_v28 = vpop.permute.xlu0 %277 }
 0x198   :  { %424 = vrot.lane.b32.xlu1 %v7126_v25, %s6983_s30  ;;  %473 = vrot.lane.b32.xlu0 %v7128_v26, %s6983_s30  ;;  %v283_v29 = vsel %vm229_vm2, %v278_v28, 0 }
 0x199   :  { %5943 = vmatpush3.bf16.xpose.msra.mxu0 %v283_v29 }
 0x19a   :  { %5954 = vmatprep.subr.bf16.mxu0 %v6979_v0 }
 0x19c   :  { %5939 = vmatmul.mubr.msk.bf16.vlgmr.msra.gmra.mxu1 %vm229_vm2, %v218_v11  ;;  %522 = vrot.lane.b32.xlu1 %v7136_v30, %s6983_s30 }
 0x19d   :  { %571 = vrot.lane.b32.xlu0 %v7139_v31, %s6983_s30  ;;  %5950 = vmatprep.mubr.msk.bf16.mxu1 %vm6980_vm0, %v6979_v0 }
 0x1a0   :  { %764 = vrot.lane.b32.xlu1 %v219_v12, %s6968_s28  ;;  %5945 = vmatmul.mubr.msk.bf16.vlgmr.msra.gmra.mxu0 %vm229_vm2, %v219_v12 }
 0x1a1   :  { %715 = vrot.lane.b32.xlu0 %v218_v11, %s6968_s28  ;;  %5956 = vmatprep.mubr.msk.bf16.mxu0 %vm6980_vm0, %v6979_v0 }
 0x206   :  { %v327_v32 = vpop.permute.xlu1 %326  ;;  %v376_v33 = vpop.permute.xlu0 %375 }
 0x207   :  { %v332_v34 = vsel %vm229_vm2, %v327_v32, 0  ;;  %v381_v35 = vsel %vm229_vm2, %v376_v33, 0 }
 0x208   :  { %5949 = vmatpush3.bf16.xpose.msra.mxu1 %v332_v34  ;;  %5955 = vmatpush3.bf16.xpose.msra.mxu0 %v381_v35 }
 0x209   :  { %5960 = vmatprep.subr.bf16.mxu1 %v6979_v0  ;;  %5966 = vmatprep.subr.bf16.mxu0 %v6979_v0 }
 0x20a   :  { %v425_v36 = vpop.permute.xlu1 %424  ;;  %v474_v37 = vpop.permute.xlu0 %473 }
 0x20b   :  { %v430_v38 = vsel %vm229_vm2, %v425_v36, 0  ;;  %v479_v39 = vsel %vm229_vm2, %v474_v37, 0 }
 0x20e   :  { %v523_v40 = vpop.permute.xlu1 %522 }
 0x20f   :  { %5951 = vmatmul.mubr.msk.bf16.vlgmr.msra.gmra.mxu1 %vm229_vm2, %v7117_v17  ;;  %5957 = vmatmul.mubr.msk.bf16.vlgmr.msra.gmra.mxu0 %vm229_vm2, %v7119_v18  ;;  %v572_v41 = vpop.permute.xlu0 %571  ;;  %v528_v42 = vsel %vm229_vm2, %v523_v40, 0 }
 0x210   :  { %5961 = vmatpush3.bf16.xpose.msra.mxu1 %v430_v38  ;;  %5967 = vmatpush3.bf16.xpose.msra.mxu0 %v479_v39  ;;  %v577_v43 = vsel %vm229_vm2, %v572_v41, 0 }
 0x211   :  { %5962 = vmatprep.mubr.msk.bf16.mxu1 %vm6980_vm0, %v6979_v0  ;;  %5968 = vmatprep.mubr.msk.bf16.mxu0 %vm6980_vm0, %v6979_v0 }
 0x212   :  { %5972 = vmatprep.subr.bf16.mxu1 %v6979_v0  ;;  %5978 = vmatprep.subr.bf16.mxu0 %v6979_v0  ;;  %v765_v44 = vpop.permute.xlu1 %764 }
 0x213   :  { %v716_v45 = vpop.permute.xlu0 %715  ;;  %v770_v46 = vsel %vm720_vm3, %v765_v44, 0 }
 0x214   :  { %v722_v47 = vsel %vm720_vm3, %v716_v45, 0 }
 0x217   :  { %5963 = vmatmul.mubr.msk.bf16.vlgmr.msra.gmra.mxu1 %vm229_vm2, %v7126_v25  ;;  %5969 = vmatmul.mubr.msk.bf16.vlgmr.msra.gmra.mxu0 %vm229_vm2, %v7128_v26 }
 0x218   :  { %5973 = vmatpush3.bf16.xpose.msra.mxu1 %v528_v42  ;;  %5979 = vmatpush3.bf16.xpose.msra.mxu0 %v577_v43 }
 0x219   :  { %5974 = vmatprep.mubr.msk.bf16.mxu1 %vm6980_vm0, %v6979_v0  ;;  %5980 = vmatprep.mubr.msk.bf16.mxu0 %vm6980_vm0, %v6979_v0 }
 0x21a   :  { %5984 = vmatprep.subr.bf16.mxu1 %v6979_v0  ;;  %5990 = vmatprep.subr.bf16.mxu0 %v6979_v0 }
 0x21f   :  { %5975 = vmatmul.mubr.msk.bf16.vlgmr.msra.gmra.mxu1 %vm229_vm2, %v7136_v30  ;;  %5981 = vmatmul.mubr.msk.bf16.vlgmr.msra.gmra.mxu0 %vm229_vm2, %v7139_v31 }
 0x220   :  { %5985 = vmatpush3.bf16.msra.mxu1 %v722_v47  ;;  %5991 = vmatpush3.bf16.msra.mxu0 %v770_v46 }
 0x221   :  { %5986 = vmatprep.mubr.msk.bf16.mxu1 %vm6980_vm0, %v6979_v0  ;;  %5992 = vmatprep.mubr.msk.bf16.mxu0 %vm6980_vm0, %v6979_v0 }
 0x222   :  { %5996 = vmatprep.subr.bf16.mxu1 %v6979_v0  ;;  %6002 = vmatprep.subr.bf16.mxu0 %v6979_v0 }
 0x25c   :  { %v270_v48 = vpop.f32.mrf.mxu1 }
 0x25d   :  { %v619_v49 = vsel %vm229_vm2, %v270_v48, -inf }
 0x25e   :  { %620 = vmax.xlane.f32.xlu1 %v619_v49  ;;  %v5940_v50 = vpop.f32.mrf.mxu1 }
 0x260   :  { %v273_v51 = vpop.f32.mrf.mxu1  ;;  %v319_v52 = vpop.f32.mrf.mxu0 }
 0x261   :  { %v622_v53 = vsel %vm229_vm2, %v319_v52, -inf }
 0x262   :  { %623 = vmax.xlane.f32.xlu0 %v622_v53  ;;  %v5941_v54 = vpop.f32.mrf.mxu1  ;;  %v5946_v55 = vpop.f32.mrf.mxu0 }
 0x264   :  { %v322_v56 = vpop.f32.mrf.mxu0 }
 0x266   :  { %v5947_v57 = vpop.f32.mrf.mxu0 }
 0x2cf   :  { %v368_v58 = vpop.f32.mrf.mxu1  ;;  %v417_v59 = vpop.f32.mrf.mxu0 }
 0x2d0   :  { %v628_v60 = vsel %vm229_vm2, %v417_v59, -inf  ;;  %v625_v61 = vsel %vm229_vm2, %v368_v58, -inf }
 0x2d1   :  { %v5958_v62 = vpop.f32.mrf.mxu0  ;;  %629 = vmax.xlane.f32.xlu1 %v628_v60  ;;  %626 = vmax.xlane.f32.xlu0 %v625_v61  ;;  %v5952_v63 = vpop.f32.mrf.mxu1 }
 0x2d3   :  { %v371_v1 = vpop.f32.mrf.mxu1  ;;  %v420_v2 = vpop.f32.mrf.mxu0 }
 0x2d5   :  { %v5953_v5 = vpop.f32.mrf.mxu1  ;;  %v5959_v6 = vpop.f32.mrf.mxu0 }
 0x2d7   :  { %v7197_v7 = vpop.f32.mrf.mxu1  ;;  %v515_v8 = vpop.f32.mrf.mxu0 }
 0x2d8   :  { %v634_v9 = vsel %vm229_vm2, %v515_v8, -inf  ;;  %v631_v10 = vsel %vm229_vm2, %v7197_v7, -inf }
 0x2d9   :  { %v5970_v11 = vpop.f32.mrf.mxu0  ;;  %635 = vmax.xlane.f32.xlu1 %v634_v9  ;;  %632 = vmax.xlane.f32.xlu0 %v631_v10  ;;  %v5964_v12 = vpop.f32.mrf.mxu1 }
 0x2db   :  { %v469_v13 = vpop.f32.mrf.mxu1  ;;  %v518_v14 = vpop.f32.mrf.mxu0 }
 0x2dd   :  { %v5965_v15 = vpop.f32.mrf.mxu1  ;;  %v5971_v16 = vpop.f32.mrf.mxu0 }
 0x2df   :  { %v7202_v19 = vpop.f32.mrf.mxu1  ;;  %v613_v20 = vpop.f32.mrf.mxu0 }
 0x2e0   :  { %v640_v21 = vsel %vm229_vm2, %v613_v20, -inf  ;;  %v637_v22 = vsel %vm229_vm2, %v7202_v19, -inf }
 0x2e1   :  { %v5982_v23 = vpop.f32.mrf.mxu0  ;;  %641 = vmax.xlane.f32.xlu1 %v640_v21  ;;  %638 = vmax.xlane.f32.xlu0 %v637_v22  ;;  %v5976_v24 = vpop.f32.mrf.mxu1 }
 0x2e3   :  { %v567_v27 = vpop.f32.mrf.mxu1  ;;  %v616_v28 = vpop.f32.mrf.mxu0 }
 0x2e5   :  { %v5977_v29 = vpop.f32.mrf.mxu1  ;;  %v5983_v32 = vpop.f32.mrf.mxu0 }
 0x2e7   :  { %v621_v33 = vpop.xlane.xlu1 %620 }
 0x2e8   :  { %v643_v35 = vsub.f32 %v270_v48, %v621_v33 }
 0x2ea   :  { %v651_v37 = vmul.f32 1.442695, %v643_v35 }
 0x2eb   :  { %v624_v34 = vpop.xlane.xlu0 %623 }
 0x2ec   :  { %v644_v36 = vsub.f32 %v319_v52, %v624_v34  ;;  %6661 = vpow2.f32 %v651_v37 }
 0x2ee   :  { %v653_v38 = vmul.f32 1.442695, %v644_v36 }
 0x2f0   :  { %6663 = vpow2.f32 %v653_v38 }
 0x2f2   :  { %812 = vrot.lane.b32.xlu1 %v7117_v17, %s6968_s28 }
 0x2f7   :  { %860 = vrot.lane.b32.xlu0 %v7119_v18, %s6968_s28 }
 0x2f9   :  { %v6662_v39 = vpop.eup %6661 }
 0x2fa   :  { %v667_v42 = vsel %vm229_vm2, %v6662_v39, 0.0 }
 0x2fd   :  { %v6664_v40 = vpop.eup %6663 }
 0x2fe   :  { %v670_v41 = vsel %vm229_vm2, %v6664_v40, 0.0 }
 0x316   :  { %671 = vadd.xlane.f32.xlu1 %v670_v41  ;;  %668 = vadd.xlane.f32.xlu0 %v667_v42 }
 0x327   :  { %908 = vrot.lane.b32.xlu1 %v7126_v25, %s6968_s28 }
 0x35a   :  { %v630_v17 = vpop.xlane.xlu1 %629  ;;  %v627_v18 = vpop.xlane.xlu0 %626 }
 0x35b   :  { %v646_v43 = vsub.f32 %v417_v59, %v630_v17  ;;  %v645_v44 = vsub.f32 %v368_v58, %v627_v18 }
 0x35d   :  { %v657_v45 = vmul.f32 1.442695, %v646_v43  ;;  %v655_v46 = vmul.f32 1.442695, %v645_v44 }
 0x35f   :  { %6665 = vpow2.f32 %v657_v45 }
 0x360   :  { %6667 = vpow2.f32 %v655_v46 }
 0x362   :  { %v636_v47 = vpop.xlane.xlu1 %635  ;;  %v633_v60 = vpop.xlane.xlu0 %632 }
 0x363   :  { %v648_v48 = vsub.f32 %v515_v8, %v636_v47  ;;  %v647_v61 = vsub.f32 %v7197_v7, %v633_v60 }
 0x365   :  { %v661_v49 = vmul.f32 1.442695, %v648_v48  ;;  %v659_v63 = vmul.f32 1.442695, %v647_v61 }
 0x367   :  { %6669 = vpow2.f32 %v661_v49 }
 0x36a   :  { %v642_v50 = vpop.xlane.xlu1 %641  ;;  %v639_v62 = vpop.xlane.xlu0 %638 }
 0x36b   :  { %v650_v51 = vsub.f32 %v613_v20, %v642_v50  ;;  %v649_v1 = vsub.f32 %v7202_v19, %v639_v62 }
 0x36c   :  { %v6666_v52 = vpop.eup %6665 }
 0x36d   :  { %v7215_v53 = vpop.eup %6667  ;;  %v665_v54 = vmul.f32 1.442695, %v650_v51  ;;  %v676_v25 = vsel %vm229_vm2, %v6666_v52, 0.0  ;;  %v663_v2 = vmul.f32 1.442695, %v649_v1 }
 0x36e   :  { %677 = vadd.xlane.f32.xlu1 %v676_v25  ;;  %v673_v55 = vsel %vm229_vm2, %v7215_v53, 0.0  ;;  %v813_v5 = vpop.permute.xlu1 %812  ;;  %v861_v6 = vpop.permute.xlu0 %860 }
 0x36f   :  { %6671 = vpow2.f32 %v665_v54  ;;  %674 = vadd.xlane.f32.xlu0 %v673_v55  ;;  %v866_v19 = vsel %vm720_vm3, %v861_v6, 0  ;;  %v818_v20 = vsel %vm720_vm3, %v813_v5, 0  ;;  %v1101_v55 = vld [vmem:[%s8117_s3 + $0x4] sm:$0xf]  ;;  %v1102_v5 = vld [vmem:[%s8117_s3 + $0x8] sm:$0xf] }
 0x370   :  { %6673 = vpow2.f32 %v659_v63  ;;  %v1206_v6 = vsel %vm720_vm3, %v1102_v5, 0 }
 0x371   :  { %6675 = vpow2.f32 %v663_v2 }
 0x374   :  { %v7220_v56 = vpop.eup %6669 }
 0x375   :  { %v682_v57 = vsel %vm229_vm2, %v7220_v56, 0.0 }
 0x376   :  { %683 = vadd.xlane.f32.xlu1 %v682_v57 }
 0x37c   :  { %v7224_v58 = vpop.eup %6671 }
 0x37d   :  { %v688_v59 = vsel %vm229_vm2, %v7224_v58, 0.0  ;;  %v7234_v10 = vpop.eup %6673 }
 0x37e   :  { %689 = vadd.xlane.f32.xlu1 %v688_v59  ;;  %v7238_v7 = vpop.eup %6675 }
 0x385   :  { %956 = vrot.lane.b32.xlu0 %v7128_v26, %s6968_s28  ;;  %v679_v26 = vsel %vm229_vm2, %v7234_v10, 0.0 }
 0x38f   :  { %1004 = vrot.lane.b32.xlu1 %v7136_v30, %s6968_s28  ;;  %v685_v30 = vsel %vm229_vm2, %v7238_v7, 0.0 }
 0x39f   :  { %v672_v8 = vpop.xlane.xlu1 %671  ;;  %v669_v9 = vpop.xlane.xlu0 %668 }
 0x3a0   :  { %6677 = vrcp.f32 %v672_v8  ;;  %v1103_v8 = vld [vmem:[%s8117_s3 + $0xc] sm:$0xf] }
 0x3a1   :  { %6679 = vrcp.f32 %v669_v9 }
 0x3a3   :  { %v909_v21 = vpop.permute.xlu1 %908 }
 0x3a4   :  { %680 = vadd.xlane.f32.xlu0 %v679_v26 }
 0x3a8   :  { %686 = vadd.xlane.f32.xlu0 %v685_v30  ;;  %v1253_v30 = vsel %vm720_vm3, %v1103_v8, 0 }
 0x3ad   :  { %v6678_v11 = vpop.eup %6677 }
 0x3ae   :  { %v6680_v12 = vpop.eup %6679  ;;  %v700_v13 = vmul.f32 %v6678_v11, %v6664_v40 }
 0x3af   :  { %v699_v14 = vmul.f32 %v6680_v12, %v6662_v39 }
 0x3b0   :  { %v708_v15 = vpack.c.bf16 %v700_v13, %v700_v13 }
 0x3b1   :  { %v707_v16 = vpack.c.bf16 %v699_v14, %v699_v14 }
 0x3b2   :  { %5993 = vmatmul.mubr.msk.bf16.vlgmr.msra.gmra.mxu0 %vm229_vm2, %v708_v15 }
 0x3b3   :  { %5987 = vmatmul.mubr.msk.bf16.vlgmr.msra.gmra.mxu1 %vm229_vm2, %v707_v16  ;;  %6003 = vmatpush3.bf16.msra.mxu0 %v866_v19 }
 0x3b4   :  { %5997 = vmatpush3.bf16.msra.mxu1 %v818_v20  ;;  %5998 = vmatprep.mubr.msk.bf16.mxu1 %vm6980_vm0, %v6979_v0 }
 0x3b5   :  { %6004 = vmatprep.mubr.msk.bf16.mxu0 %vm6980_vm0, %v6979_v0  ;;  %6008 = vmatprep.subr.bf16.mxu1 %v6979_v0 }
 0x3b6   :  { %6014 = vmatprep.subr.bf16.mxu0 %v6979_v0 }
 0x3be   :  { %1052 = vrot.lane.b32.xlu0 %v7139_v31, %s6968_s28  ;;  %v914_v31 = vsel %vm720_vm3, %v909_v21, 0 }
 0x3f7   :  { %v678_v22 = vpop.xlane.xlu1 %677 }
 0x3f8   :  { %6681 = vrcp.f32 %v678_v22  ;;  %v675_v23 = vpop.xlane.xlu0 %674 }
 0x3f9   :  { %6683 = vrcp.f32 %v675_v23 }
 0x3fc   :  { %v957_v32 = vpop.permute.xlu0 %956 }
 0x3fd   :  { %v962_v36 = vsel %vm720_vm3, %v957_v32, 0 }
 0x3ff   :  { %v684_v24 = vpop.xlane.xlu1 %683 }
 0x400   :  { %6685 = vrcp.f32 %v684_v24 }
 0x405   :  { %v6682_v27 = vpop.eup %6681 }
 0x406   :  { %v6684_v28 = vpop.eup %6683  ;;  %v702_v29 = vmul.f32 %v6682_v27, %v6666_v52 }
 0x407   :  { %v701_v33 = vmul.f32 %v6684_v28, %v7215_v53  ;;  %v690_v40 = vpop.xlane.xlu1 %689  ;;  %v1100_v53 = vld [vmem:[%s8117_s3] sm:$0xf] }
 0x408   :  { %v710_v34 = vpack.c.bf16 %v702_v29, %v702_v29  ;;  %6687 = vrcp.f32 %v690_v40  ;;  %v1112_v25 = vsel %vm720_vm3, %v1100_v53, 0 }
 0x409   :  { %v709_v35 = vpack.c.bf16 %v701_v33, %v701_v33 }
 0x40a   :  { %6005 = vmatmul.mubr.msk.bf16.vlgmr.msra.gmra.mxu0 %vm229_vm2, %v710_v34 }
 0x40b   :  { %5999 = vmatmul.mubr.msk.bf16.vlgmr.msra.gmra.mxu1 %vm229_vm2, %v709_v35  ;;  %6015 = vmatpush3.bf16.msra.mxu0 %v962_v36  ;;  %v1005_v48 = vpop.permute.xlu1 %1004 }
 0x40c   :  { %6009 = vmatpush3.bf16.msra.mxu1 %v914_v31  ;;  %6016 = vmatprep.mubr.msk.bf16.mxu0 %vm6980_vm0, %v6979_v0  ;;  %v1010_v51 = vsel %vm720_vm3, %v1005_v48, 0 }
 0x40d   :  { %v6686_v37 = vpop.eup %6685  ;;  %6026 = vmatprep.subr.bf16.mxu0 %v6979_v0  ;;  %6010 = vmatprep.mubr.msk.bf16.mxu1 %vm6980_vm0, %v6979_v0 }
 0x40e   :  { %v704_v38 = vmul.f32 %v6686_v37, %v7220_v56  ;;  %6020 = vmatprep.subr.bf16.mxu1 %v6979_v0  ;;  %v1159_v56 = vsel %vm720_vm3, %v1101_v55, 0 }
 0x410   :  { %v712_v39 = vpack.c.bf16 %v704_v38, %v704_v38 }
 0x412   :  { %6017 = vmatmul.mubr.msk.bf16.vlgmr.msra.gmra.mxu0 %vm229_vm2, %v712_v39 }
 0x413   :  { %6028 = vmatprep.mubr.msk.bf16.mxu0 %vm6980_vm0, %v6979_v0 }
 0x415   :  { %v6688_v42 = vpop.eup %6687 }
 0x416   :  { %v706_v18 = vmul.f32 %v6688_v42, %v7224_v58 }
 0x418   :  { %v714_v45 = vpack.c.bf16 %v706_v18, %v706_v18 }
 0x42d   :  { %v681_v41 = vpop.xlane.xlu0 %680 }
 0x42e   :  { %6689 = vrcp.f32 %v681_v41 }
 0x431   :  { %v687_v17 = vpop.xlane.xlu0 %686 }
 0x432   :  { %6691 = vrcp.f32 %v687_v17 }
 0x435   :  { %v1053_v43 = vpop.permute.xlu0 %1052 }
 0x436   :  { %v1058_v44 = vsel %vm720_vm3, %v1053_v43, 0 }
 0x437   :  { %6027 = vmatpush3.bf16.msra.mxu0 %v1058_v44 }
 0x438   :  { %6038 = vmatprep.subr.bf16.mxu0 %v6979_v0 }
 0x43a   :  { %6029 = vmatmul.mubr.msk.bf16.vlgmr.msra.gmra.mxu0 %vm229_vm2, %v714_v45 }
 0x43b   :  { %v6690_v46 = vpop.eup %6689  ;;  %6040 = vmatprep.mubr.msk.bf16.mxu0 %vm6980_vm0, %v6979_v0  ;;  %6039 = vmatpush3.bf16.msra.mxu0 %v1159_v56 }
 0x43c   :  { %v703_v47 = vmul.f32 %v6690_v46, %v7234_v10  ;;  %6050 = vmatprep.subr.bf16.mxu0 %v6979_v0 }
 0x43e   :  { %v711_v49 = vpack.c.bf16 %v703_v47, %v703_v47 }
 0x43f   :  { %v6692_v50 = vpop.eup %6691 }
 0x440   :  { %6011 = vmatmul.mubr.msk.bf16.vlgmr.msra.gmra.mxu1 %vm229_vm2, %v711_v49  ;;  %v705_v52 = vmul.f32 %v6692_v50, %v7238_v7 }
 0x441   :  { %6021 = vmatpush3.bf16.msra.mxu1 %v1010_v51  ;;  %6022 = vmatprep.mubr.msk.bf16.mxu1 %vm6980_vm0, %v6979_v0 }
 0x442   :  { %6032 = vmatprep.subr.bf16.mxu1 %v6979_v0  ;;  %v713_v54 = vpack.c.bf16 %v705_v52, %v705_v52 }
 0x448   :  { %6023 = vmatmul.mubr.msk.bf16.vlgmr.msra.gmra.mxu1 %vm229_vm2, %v713_v54 }
 0x449   :  { %6033 = vmatpush3.bf16.msra.mxu1 %v1112_v25  ;;  %6034 = vmatprep.mubr.msk.bf16.mxu1 %vm6980_vm0, %v6979_v0 }
 0x44a   :  { %6044 = vmatprep.subr.bf16.mxu1 %v6979_v0 }
 0x472   :  { %v806_v57 = vpop.f32.mrf.mxu0 }
 0x473   :  { %v758_v58 = vpop.f32.mrf.mxu1 }
 0x474   :  { %v1104_v59 = vpack.c.bf16 %v806_v57, %v758_v58  ;;  %v5994_v60 = vpop.f32.mrf.mxu0 }
 0x475   :  { %v5988_v61 = vpop.f32.mrf.mxu1 }
 0x476   :  { %6035 = vmatmul.mubr.msk.bf16.vlgmr.msra.gmra.mxu1 %vm229_vm2, %v1104_v59  ;;  %v809_v62 = vpop.f32.mrf.mxu0 }
 0x477   :  { %v761_v63 = vpop.f32.mrf.mxu1  ;;  %6046 = vmatprep.mubr.msk.bf16.mxu1 %vm6980_vm0, %v6979_v0  ;;  %6045 = vmatpush3.bf16.msra.mxu1 %v1206_v6 }
 0x478   :  { %v5995_v1 = vpop.f32.mrf.mxu0  ;;  %6056 = vmatprep.subr.bf16.mxu1 %v6979_v0 }
 0x479   :  { %v5989_v2 = vpop.f32.mrf.mxu1 }
 0x4ca   :  { %v902_v9 = vpop.f32.mrf.mxu0 }
 0x4cb   :  { %v854_v10 = vpop.f32.mrf.mxu1 }
 0x4cc   :  { %v1105_v26 = vpack.c.bf16 %v902_v9, %v854_v10  ;;  %v6006_v7 = vpop.f32.mrf.mxu0 }
 0x4cd   :  { %v6000_v11 = vpop.f32.mrf.mxu1 }
 0x4ce   :  { %6041 = vmatmul.mubr.msk.bf16.vlgmr.msra.gmra.mxu0 %vm229_vm2, %v1105_v26  ;;  %v905_v12 = vpop.f32.mrf.mxu0 }
 0x4cf   :  { %v857_v13 = vpop.f32.mrf.mxu1  ;;  %6051 = vmatpush3.bf16.msra.mxu0 %v1253_v30  ;;  %6052 = vmatprep.mubr.msk.bf16.mxu0 %vm6980_vm0, %v6979_v0 }
 0x4d0   :  { %v6007_v14 = vpop.f32.mrf.mxu0 }
 0x4d1   :  { %v6001_v15 = vpop.f32.mrf.mxu1 }
 0x4d2   :  { %v998_v16 = vpop.f32.mrf.mxu0 }
 0x4d4   :  { %v6018_v19 = vpop.f32.mrf.mxu0 }
 0x4d5   :  { %v6639_v19 = vld [vmem:[#allocation5] sm:$0xff]  }
 0x4d6   :  { %v1001_v20 = vpop.f32.mrf.mxu0 }
 0x4d7   :  { %v6640_v20 = vld [vmem:[#allocation5 + $0x8] sm:$0xff]  }
 0x4d8   :  { %v6019_v21 = vpop.f32.mrf.mxu0 }
 0x4d9   :  { %v6641_v21 = vld [vmem:[%s8118_s4 + $0x8] sm:$0xff]  }
 0x4fa   :  { %v1094_v22 = vpop.f32.mrf.mxu0 }
 0x4fc   :  { %v6030_v23 = vpop.f32.mrf.mxu0 }
 0x4fe   :  { %v1097_v24 = vpop.f32.mrf.mxu0 }
 0x500   :  { %v950_v27 = vpop.f32.mrf.mxu1  ;;  %v6031_v28 = vpop.f32.mrf.mxu0 }
 0x501   :  { %v1106_v29 = vpack.c.bf16 %v998_v16, %v950_v27  ;;  %v6637_v16 = vld [vmem:[#allocation7 + $0x8] sm:$0xff]  }
 0x502   :  { %v6012_v32 = vpop.f32.mrf.mxu1  ;;  %6064 = vmatprep.subr.bf16.mxu0 %v6637_v16 }
 0x503   :  { %6047 = vmatmul.mubr.msk.bf16.vlgmr.msra.gmra.mxu1 %vm229_vm2, %v1106_v29 }
 0x504   :  { %v953_v33 = vpop.f32.mrf.mxu1  ;;  %6060 = vmatprep.mubr.msk.bf16.mxu1 %vm6980_vm0, %v6979_v0  ;;  %6057 = vmatpush3.bf16.msra.mxu1 %v6641_v21 }
 0x505   :  { %6058 = vmatprep.subr.bf16.mxu1 %v6979_v0  ;;  %v1339_v33 = vlaneseq }
 0x506   :  { %v6013_v34 = vpop.f32.mrf.mxu1 }
 0x507   :  { %v7341_v34 = vshrl.u32 %v1339_v33, 7 }
 0x508   :  { %v1046_v35 = vpop.f32.mrf.mxu1 }
 0x509   :  { %v1107_v36 = vpack.c.bf16 %v1094_v22, %v1046_v35  ;;  %v6642_v22 = vld [vmem:[%s8118_s4] sm:$0xff]   ;;  %v7344_v35 = vsub.s32 0, %v7341_v34 }
 0x50a   :  { %v6024_v31 = vpop.f32.mrf.mxu1  ;;  %6059 = vmatpush3.bf16.msra.mxu1 %v6642_v22 }
 0x50b   :  { %6053 = vmatmul.mubr.msk.bf16.vlgmr.msra.gmra.mxu0 %vm229_vm2, %v1107_v36  ;;  %6072 = vmatprep.subr.bf16.mxu1 %v6979_v0  ;;  %v7349_v36 = vld [vmem:[%s8125_s11] sm:$0x7] }
 0x50c   :  { %v1049_v37 = vpop.f32.mrf.mxu1  ;;  %6065 = vmatpush3.bf16.msra.mxu0 %v6637_v16  ;;  %6068 = vmatprep.mubr.msk.bf16.mxu0 %vm153_vm1, %v6639_v19 }
 0x50e   :  { %v6025_v38 = vpop.f32.mrf.mxu1 }
 0x50f   :  { %v1342_v38 = vrot.slane %v7349_v36, %v7344_v35 }
 0x536   :  { %v1148_v39 = vpop.f32.mrf.mxu1 }
 0x537   :  { %v1296_v49 = vsel %vm153_vm1, %v1148_v39, 0.0  ;;  %v7356_v39 = vld [vmem:[%s8126_s12] sm:$0x7] }
 0x538   :  { %v6036_v40 = vpop.f32.mrf.mxu1 }
 0x53a   :  { %v1151_v41 = vpop.f32.mrf.mxu1 }
 0x53b   :  { %v1303_v55 = vsel %vm153_vm1, %v1151_v41, 0.0 }
 0x53c   :  { %v6037_v42 = vpop.f32.mrf.mxu1 }
 0x58e   :  { %v1195_v17 = vpop.f32.mrf.mxu0 }
 0x58f   :  { %v1297_v47 = vsel %vm153_vm1, %v1195_v17, 0.0  ;;  %v1348_v17 = vrot.slane %v7356_v39, %v7344_v35 }
 0x590   :  { %v6042_v18 = vpop.f32.mrf.mxu0  ;;  %v1298_v51 = vadd.f32 %v1297_v47, %v1296_v49 }
 0x592   :  { %v1198_v43 = vpop.f32.mrf.mxu0 }
 0x593   :  { %v1304_v53 = vsel %vm153_vm1, %v1198_v43, 0.0 }
 0x594   :  { %v6043_v44 = vpop.f32.mrf.mxu0  ;;  %v1305_v58 = vadd.f32 %v1304_v53, %v1303_v55 }
 0x5c3   :  { %v1242_v45 = vpop.f32.mrf.mxu1 }
 0x5c4   :  { %v1299_v50 = vsel %vm153_vm1, %v1242_v45, 0.0 }
 0x5c5   :  { %v6048_v46 = vpop.f32.mrf.mxu1  ;;  %v1300_v54 = vadd.f32 %v1299_v50, %v1298_v51 }
 0x5c7   :  { %v1245_v48 = vpop.f32.mrf.mxu1 }
 0x5c8   :  { %v1306_v56 = vsel %vm153_vm1, %v1245_v48, 0.0 }
 0x5c9   :  { %v6049_v52 = vpop.f32.mrf.mxu1  ;;  %v1307_v61 = vadd.f32 %v1306_v56, %v1305_v58 }
 0x5cb   :  { %v1289_v25 = vpop.f32.mrf.mxu0 }
 0x5cc   :  { %v1301_v57 = vsel %vm153_vm1, %v1289_v25, 0.0 }
 0x5cd   :  { %v1302_v59 = vadd.f32 %v1301_v57, %v1300_v54  ;;  %v6054_v60 = vpop.f32.mrf.mxu0 }
 0x5cf   :  { %v1292_v62 = vpop.f32.mrf.mxu0  ;;  %v1310_v63 = vadd.f32 %v1302_v59, %v7101_v3 }
 0x5d0   :  { %v1308_v1 = vsel %vm153_vm1, %v1292_v62, 0.0 }
 0x5d1   :  { %v1309_v2 = vadd.f32 %v1308_v1, %v1307_v61  ;;  %v6055_v5 = vpop.f32.mrf.mxu0  ;;  %v1312_v6 = vsel %vm153_vm1, %v1310_v63, 0.0 }
 0x5d2   :  { %1313 = vadd.xlane.f32.xlu1 %v1312_v6 }
 0x5d3   :  { %v1311_v8 = vadd.f32 %v1309_v2, %v7103_v4  ;;  %v6638_v4 = vld [vmem:[#allocation7] sm:$0xff]  }
 0x5d4   :  { %6066 = vmatprep.subr.bf16.mxu0 %v6638_v4 }
 0x5d5   :  { %v1315_v9 = vsel %vm153_vm1, %v1311_v8, 0.0  ;;  %6067 = vmatpush3.bf16.msra.mxu0 %v6638_v4 }
 0x5d6   :  { %1316 = vadd.xlane.f32.xlu0 %v1315_v9  ;;  %6078 = vmatprep.subr.bf16.mxu0 %v6979_v0 }
 0x5d8   :  { %6069 = vmatmul.mubr.msk.bf16.vlgmr.msra.gmra.mxu0 %vm153_vm1, %v6640_v20 }
 0x5d9   :  { %6080 = vmatprep.mubr.msk.bf16.mxu0 %vm6980_vm0, %v6979_v0 }
 0x65b   :  { %v1314_v10 = vpop.xlane.xlu1 %1313 }
 0x65c   :  { %v1319_v26 = vmul.f32 0.03125, %v1314_v10 }
 0x65e   :  { %v1321_v7 = vsub.f32 %v1310_v63, %v1319_v26 }
 0x65f   :  { %v1317_v30 = vpop.xlane.xlu0 %1316 }
 0x660   :  { %v1320_v11 = vmul.f32 0.03125, %v1317_v30  ;;  %v1323_v12 = vmul.f32 %v1321_v7, %v1321_v7 }
 0x662   :  { %v1322_v13 = vsub.f32 %v1311_v8, %v1320_v11  ;;  %v1325_v3 = vsel %vm153_vm1, %v1323_v12, 0.0 }
 0x663   :  { %1326 = vadd.xlane.f32.xlu0 %v1325_v3 }
 0x664   :  { %v1324_v14 = vmul.f32 %v1322_v13, %v1322_v13 }
 0x666   :  { %v1328_v15 = vsel %vm153_vm1, %v1324_v14, 0.0 }
 0x667   :  { %1329 = vadd.xlane.f32.xlu1 %v1328_v15 }
 0x698   :  { %v6070_v46 = vpop.f32.mrf.mxu0 }
 0x69a   :  { %v1498_v47 = vpop.f32.mrf.mxu0 }
 0x69c   :  { %v6071_v48 = vpop.f32.mrf.mxu0 }
 0x69d   :  { %v6535_v49 = vpack.i.bf16 %v6071_v48, %v6070_v46  ;;  %v7369_v50 = vpack.c.bf16 %v6071_v48, %v6070_v46 }
 0x69e   :  { %v1501_v51 = vpop.f32.mrf.mxu0 }
 0x69f   :  { %v6530_v52 = vpack.i.bf16 %v1501_v51, %v1498_v47  ;;  %6536 = vrot.lane.b32.xlu1 %v6535_v49, %s6982_s6  ;;  %v1561_v53 = vpack.c.bf16 %v1501_v51, %v1498_v47  ;;  %v1619_v54 = vsel %vm229_vm2, %v7369_v50, 0 }
 0x6a0   :  { %6079 = vmatpush3.bf16.xpose.msra.mxu0 %v1619_v54 }
 0x6a1   :  { %6531 = vrot.lane.b32.xlu0 %v6530_v52, %s6982_s6  ;;  %v1573_v25 = vsel %vm229_vm2, %v1561_v53, 0  ;;  %6090 = vmatprep.subr.bf16.mxu0 %v6979_v0 }
 0x6a5   :  { %6541 = vrot.lane.b32.xlu0 %v6530_v52, %s6984_s14 }
 0x6ec   :  { %v1327_v23 = vpop.xlane.xlu0 %1326 }
 0x6ed   :  { %v1331_v24 = vmul.f32 0.03125, %v1327_v23 }
 0x6ef   :  { %v1333_v27 = vadd.f32 1e-05, %v1331_v24 }
 0x6f0   :  { %v1330_v28 = vpop.xlane.xlu1 %1329 }
 0x6f1   :  { %6693 = vrsqrt.f32 %v1333_v27  ;;  %v1332_v29 = vmul.f32 0.03125, %v1330_v28 }
 0x6f3   :  { %v1334_v32 = vadd.f32 1e-05, %v1332_v29 }
 0x6f5   :  { %6695 = vrsqrt.f32 %v1334_v32 }
 0x6fe   :  { %v6694_v31 = vpop.eup %6693 }
 0x6ff   :  { %v1337_v37 = vmul.f32 %v6694_v31, %v1321_v7 }
 0x701   :  { %v1343_v42 = vmul.f32 %v1342_v38, %v1337_v37 }
 0x702   :  { %v6696_v40 = vpop.eup %6695 }
 0x703   :  { %v1338_v41 = vmul.f32 %v6696_v40, %v1322_v13  ;;  %v7360_v43 = vadd.f32 %v1348_v17, %v1343_v42 }
 0x705   :  { %v1344_v18 = vmul.f32 %v1342_v38, %v1338_v41 }
 0x707   :  { %v7362_v44 = vadd.f32 %v1348_v17, %v1344_v18 }
 0x709   :  { %v1355_v45 = vpack.c.bf16 %v7362_v44, %v7360_v43 }
 0x70b   :  { %6061 = vmatmul.mubr.msk.bf16.vlgmr.msra.gmra.mxu1 %vm153_vm1, %v1355_v45 }
 0x70c   :  { %6074 = vmatprep.mubr.msk.bf16.mxu1 %vm6980_vm0, %v6979_v0  ;;  %6073 = vmatpush3.bf16.xpose.msra.mxu1 %v1573_v25 }
 0x70d   :  { %6084 = vmatprep.subr.bf16.mxu1 %v6979_v0 }
 0x711   :  { %v6537_v58 = vpop.permute.xlu1 %6536 }
 0x712   :  { %v6539_v60 = vunpack.i.h.bf16 %v6537_v58  ;;  %v6538_v61 = vunpack.i.l.bf16 %v6537_v58 }
 0x713   :  { %v6532_v55 = vpop.permute.xlu0 %6531 }
 0x714   :  { %v6534_v56 = vunpack.i.h.bf16 %v6532_v55  ;;  %v6533_v57 = vunpack.i.l.bf16 %v6532_v55  ;;  %v7383_v5 = vpack.c.bf16 %v6539_v60, %v6538_v61 }
 0x716   :  { %v7379_v59 = vpack.c.bf16 %v6534_v56, %v6533_v57  ;;  %v1711_v26 = vsel %vm229_vm2, %v7383_v5, 0 }
 0x717   :  { %v6542_v7 = vpop.permute.xlu0 %6541 }
 0x718   :  { %v1665_v1 = vsel %vm229_vm2, %v7379_v59, 0  ;;  %v6544_v30 = vunpack.i.h.bf16 %v6542_v7  ;;  %v6543_v11 = vunpack.i.l.bf16 %v6542_v7 }
 0x71a   :  { %v7402_v15 = vpack.c.bf16 %v6544_v30, %v6543_v11 }
 0x71c   :  { %v1757_v23 = vsel %vm229_vm2, %v7402_v15, 0 }
 0x7cb   :  { %v1405_v62 = vpop.f32.mrf.mxu1 }
 0x7cc   :  { %v1553_v63 = vpack.c.bf16 %v1405_v62, %v1405_v62 }
 0x7cd   :  { %v6062_v2 = vpop.f32.mrf.mxu1 }
 0x7ce   :  { %6075 = vmatmul.mubr.msk.bf16.vlgmr.msra.gmra.mxu1 %vm229_vm2, %v1553_v63 }
 0x7cf   :  { %v1408_v6 = vpop.f32.mrf.mxu1  ;;  %6085 = vmatpush3.bf16.xpose.msra.mxu1 %v1665_v1  ;;  %6086 = vmatprep.mubr.msk.bf16.mxu1 %vm6980_vm0, %v6979_v0 }
 0x7d0   :  { %v1554_v8 = vpack.c.bf16 %v1408_v6, %v1408_v6  ;;  %v6560_v9 = vpack.i.bf16 %v1408_v6, %v1405_v62  ;;  %6096 = vmatprep.subr.bf16.mxu1 %v6979_v0 }
 0x7d1   :  { %v6063_v10 = vpop.f32.mrf.mxu1 }
 0x7d2   :  { %6561 = vrot.lane.b32.xlu0 %v6560_v9, %s6984_s14  ;;  %6546 = vrot.lane.b32.xlu1 %v6560_v9, %s6982_s6 }
 0x7d3   :  { %6081 = vmatmul.mubr.msk.bf16.vlgmr.msra.gmra.mxu0 %vm229_vm2, %v1554_v8 }
 0x7d4   :  { %6091 = vmatpush3.bf16.xpose.msra.mxu0 %v1711_v26  ;;  %6092 = vmatprep.mubr.msk.bf16.mxu0 %vm6980_vm0, %v6979_v0 }
 0x7d5   :  { %6102 = vmatprep.subr.bf16.mxu0 %v6979_v0 }
 0x7d6   :  { %6566 = vrot.lane.b32.xlu0 %v6535_v49, %s6981_s27  ;;  %6551 = vrot.lane.b32.xlu1 %v6535_v49, %s6984_s14 }
 0x7da   :  { %6556 = vrot.lane.b32.xlu1 %v6530_v52, %s6981_s27 }
 0x7de   :  { %6571 = vrot.lane.b32.xlu1 %v6560_v9, %s6981_s27 }
 0x7e2   :  { %2035 = vrot.lane.b32.xlu1 %v1561_v53, %s6983_s30 }
 0x844   :  { %v6562_v12 = vpop.permute.xlu0 %6561  ;;  %v6547_v13 = vpop.permute.xlu1 %6546 }
 0x845   :  { %v6549_v3 = vunpack.i.h.bf16 %v6547_v13  ;;  %v6548_v14 = vunpack.i.l.bf16 %v6547_v13  ;;  %v6563_v24 = vunpack.i.l.bf16 %v6562_v12  ;;  %v6564_v38 = vunpack.i.h.bf16 %v6562_v12 }
 0x847   :  { %v1556_v16 = vpack.c.bf16 %v6549_v3, %v6549_v3  ;;  %v1555_v4 = vpack.c.bf16 %v6548_v14, %v6548_v14  ;;  %v1557_v40 = vpack.c.bf16 %v6563_v24, %v6563_v24  ;;  %v1558_v45 = vpack.c.bf16 %v6564_v38, %v6564_v38 }
 0x848   :  { %v6552_v19 = vpop.permute.xlu1 %6551  ;;  %v6567_v20 = vpop.permute.xlu0 %6566 }
 0x849   :  { %v6554_v21 = vunpack.i.h.bf16 %v6552_v19  ;;  %v6553_v22 = vunpack.i.l.bf16 %v6552_v19  ;;  %6087 = vmatmul.mubr.msk.bf16.vlgmr.msra.gmra.mxu1 %vm229_vm2, %v1555_v4  ;;  %6093 = vmatmul.mubr.msk.bf16.vlgmr.msra.gmra.mxu0 %vm229_vm2, %v1556_v16  ;;  %v6569_v28 = vunpack.i.h.bf16 %v6567_v20  ;;  %v6568_v32 = vunpack.i.l.bf16 %v6567_v20 }
 0x84a   :  { %6097 = vmatpush3.bf16.xpose.msra.mxu1 %v1757_v23  ;;  %6098 = vmatprep.mubr.msk.bf16.mxu1 %vm6980_vm0, %v6979_v0 }
 0x84b   :  { %v7410_v27 = vpack.c.bf16 %v6554_v21, %v6553_v22  ;;  %6108 = vmatprep.subr.bf16.mxu1 %v6979_v0  ;;  %6104 = vmatprep.mubr.msk.bf16.mxu0 %vm6980_vm0, %v6979_v0  ;;  %v7423_v18 = vpack.c.bf16 %v6569_v28, %v6568_v32 }
 0x84c   :  { %v6557_v29 = vpop.permute.xlu1 %6556 }
 0x84d   :  { %v6559_v33 = vunpack.i.h.bf16 %v6557_v29  ;;  %v6558_v31 = vunpack.i.l.bf16 %v6557_v29  ;;  %v1803_v37 = vsel %vm229_vm2, %v7410_v27, 0  ;;  %v1895_v47 = vsel %vm229_vm2, %v7423_v18, 0 }
 0x84e   :  { %6103 = vmatpush3.bf16.xpose.msra.mxu0 %v1803_v37 }
 0x84f   :  { %v7417_v41 = vpack.c.bf16 %v6559_v33, %v6558_v31  ;;  %6114 = vmatprep.subr.bf16.mxu0 %v6979_v0 }
 0x850   :  { %v6572_v42 = vpop.permute.xlu1 %6571 }
 0x851   :  { %6099 = vmatmul.mubr.msk.bf16.vlgmr.msra.gmra.mxu1 %vm229_vm2, %v1557_v40  ;;  %v1849_v17 = vsel %vm229_vm2, %v7417_v41, 0  ;;  %v6573_v46 = vunpack.i.l.bf16 %v6572_v42  ;;  %v6574_v48 = vunpack.i.h.bf16 %v6572_v42 }
 0x852   :  { %6109 = vmatpush3.bf16.xpose.msra.mxu1 %v1849_v17  ;;  %6110 = vmatprep.mubr.msk.bf16.mxu1 %vm6980_vm0, %v6979_v0 }
 0x853   :  { %6120 = vmatprep.subr.bf16.mxu1 %v6979_v0  ;;  %v1559_v49 = vpack.c.bf16 %v6573_v46, %v6573_v46  ;;  %v1560_v52 = vpack.c.bf16 %v6574_v48, %v6574_v48 }
 0x854   :  { %v2036_v51 = vpop.permute.xlu1 %2035 }
 0x855   :  { %6105 = vmatmul.mubr.msk.bf16.vlgmr.msra.gmra.mxu0 %vm229_vm2, %v1558_v45 }
 0x856   :  { %6115 = vmatpush3.bf16.xpose.msra.mxu0 %v1895_v47  ;;  %6116 = vmatprep.mubr.msk.bf16.mxu0 %vm6980_vm0, %v6979_v0 }
 0x857   :  { %6126 = vmatprep.subr.bf16.mxu0 %v6979_v0 }
 0x859   :  { %6111 = vmatmul.mubr.msk.bf16.vlgmr.msra.gmra.mxu1 %vm229_vm2, %v1559_v49 }
 0x85a   :  { %6121 = vmatpush3.bf16.msra.mxu1 %v2036_v51  ;;  %6122 = vmatprep.mubr.msk.bf16.mxu1 %vm6980_vm0, %v6979_v0 }
 0x85b   :  { %6132 = vmatprep.subr.bf16.mxu1 %v6979_v0 }
 0x85d   :  { %6117 = vmatmul.mubr.msk.bf16.vlgmr.msra.gmra.mxu0 %vm229_vm2, %v1560_v52 }
 0x85e   :  { %6128 = vmatprep.mubr.msk.bf16.mxu0 %vm6980_vm0, %v6979_v0 }
 0x88e   :  { %v1609_v53 = vpop.f32.mrf.mxu1 }
 0x88f   :  { %v1938_v54 = vsel %vm1937_vm4, %v1609_v53, -inf }
 0x890   :  { %1939 = vmax.xlane.f32.xlu0 %v1938_v54  ;;  %v6076_v25 = vpop.f32.mrf.mxu1 }
 0x892   :  { %v1612_v55 = vpop.f32.mrf.mxu1 }
 0x893   :  { %v1655_v56 = vpop.f32.mrf.mxu0 }
 0x894   :  { %v1941_v57 = vsel %vm1937_vm4, %v1655_v56, -inf  ;;  %v6077_v58 = vpop.f32.mrf.mxu1 }
 0x895   :  { %1942 = vmax.xlane.f32.xlu1 %v1941_v57  ;;  %v6082_v60 = vpop.f32.mrf.mxu0 }
 0x897   :  { %v1658_v61 = vpop.f32.mrf.mxu0 }
 0x899   :  { %v6083_v62 = vpop.f32.mrf.mxu0 }
 0x909   :  { %v1701_v63 = vpop.f32.mrf.mxu1  ;;  %v1747_v1 = vpop.f32.mrf.mxu0 }
 0x90a   :  { %v1944_v2 = vsel %vm1937_vm4, %v1701_v63, -inf  ;;  %v1947_v26 = vsel %vm1937_vm4, %v1747_v1, -inf }
 0x90b   :  { %v6094_v6 = vpop.f32.mrf.mxu0  ;;  %1945 = vmax.xlane.f32.xlu0 %v1944_v2  ;;  %v6088_v8 = vpop.f32.mrf.mxu1 }
 0x90d   :  { %v1704_v9 = vpop.f32.mrf.mxu1  ;;  %v1750_v10 = vpop.f32.mrf.mxu0 }
 0x90f   :  { %v6095_v7 = vpop.f32.mrf.mxu0  ;;  %1948 = vmax.xlane.f32.xlu0 %v1947_v26  ;;  %v6089_v30 = vpop.f32.mrf.mxu1 }
 0x911   :  { %v7445_v11 = vpop.f32.mrf.mxu1 }
 0x912   :  { %v1950_v12 = vsel %vm1937_vm4, %v7445_v11, -inf }
 0x913   :  { %1951 = vmax.xlane.f32.xlu1 %v1950_v12  ;;  %v6100_v13 = vpop.f32.mrf.mxu1 }
 0x915   :  { %v1796_v3 = vpop.f32.mrf.mxu1  ;;  %v7449_v14 = vpop.f32.mrf.mxu0 }
 0x916   :  { %v1953_v16 = vsel %vm1937_vm4, %v7449_v14, -inf }
 0x917   :  { %v6106_v4 = vpop.f32.mrf.mxu0  ;;  %1954 = vmax.xlane.f32.xlu0 %v1953_v16  ;;  %v6101_v19 = vpop.f32.mrf.mxu1 }
 0x919   :  { %v1842_v20 = vpop.f32.mrf.mxu0  ;;  %v1885_v21 = vpop.f32.mrf.mxu1 }
 0x91a   :  { %v1956_v23 = vsel %vm1937_vm4, %v1885_v21, -inf  ;;  %v1940_v42 = vpop.xlane.xlu0 %1939 }
 0x91b   :  { %v6107_v22 = vpop.f32.mrf.mxu0  ;;  %1957 = vmax.xlane.f32.xlu1 %v1956_v23  ;;  %v6112_v24 = vpop.f32.mrf.mxu1  ;;  %v1962_v45 = vsub.f32 %v1609_v53, %v1940_v42 }
 0x91d   :  { %v1931_v28 = vpop.f32.mrf.mxu0  ;;  %v1888_v29 = vpop.f32.mrf.mxu1  ;;  %v1970_v47 = vmul.f32 1.442695, %v1962_v45 }
 0x91e   :  { %v1959_v32 = vsel %vm1937_vm4, %v1931_v28, -inf  ;;  %v1943_v40 = vpop.xlane.xlu1 %1942 }
 0x91f   :  { %v6118_v33 = vpop.f32.mrf.mxu0  ;;  %1960 = vmax.xlane.f32.xlu0 %v1959_v32  ;;  %v6113_v31 = vpop.f32.mrf.mxu1  ;;  %v1963_v17 = vsub.f32 %v1655_v56, %v1943_v40 }
 0x921   :  { %v1934_v37 = vpop.f32.mrf.mxu0  ;;  %v1972_v46 = vmul.f32 1.442695, %v1963_v17 }
 0x923   :  { %v6119_v38 = vpop.f32.mrf.mxu0  ;;  %6697 = vpow2.f32 %v1972_v46 }
 0x924   :  { %6699 = vpow2.f32 %v1970_v47 }
 0x92c   :  { %2129 = vrot.lane.b32.xlu1 %v7379_v59, %s6983_s30 }
 0x930   :  { %2176 = vrot.lane.b32.xlu1 %v7383_v5, %s6983_s30  ;;  %v6698_v48 = vpop.eup %6697 }
 0x931   :  { %v6700_v49 = vpop.eup %6699  ;;  %v1989_v51 = vsel %vm1937_vm4, %v6698_v48, 0.0 }
 0x932   :  { %v1986_v59 = vsel %vm1937_vm4, %v6700_v49, 0.0 }
 0x935   :  { %2082 = vrot.lane.b32.xlu0 %v7369_v50, %s6983_s30 }
 0x954   :  { %1990 = vadd.xlane.f32.xlu0 %v1989_v51  ;;  %1987 = vadd.xlane.f32.xlu1 %v1986_v59 }
 0x994   :  { %v1946_v5 = vpop.xlane.xlu0 %1945 }
 0x995   :  { %v1964_v52 = vsub.f32 %v1701_v63, %v1946_v5 }
 0x997   :  { %v1974_v54 = vmul.f32 1.442695, %v1964_v52 }
 0x998   :  { %v1949_v50 = vpop.xlane.xlu0 %1948 }
 0x999   :  { %6701 = vpow2.f32 %v1974_v54  ;;  %v1965_v25 = vsub.f32 %v1747_v1, %v1949_v50 }
 0x99b   :  { %v1976_v55 = vmul.f32 1.442695, %v1965_v25 }
 0x99c   :  { %v1952_v63 = vpop.xlane.xlu1 %1951 }
 0x99d   :  { %6703 = vpow2.f32 %v1976_v55  ;;  %v1966_v1 = vsub.f32 %v7445_v11, %v1952_v63 }
 0x99f   :  { %v1978_v8 = vmul.f32 1.442695, %v1966_v1  ;;  %v2411_v1 = vld [vmem:[#allocation8 + $0x4] sm:$0xf] }
 0x9a0   :  { %v1955_v53 = vpop.xlane.xlu0 %1954 }
 0x9a1   :  { %v1967_v6 = vsub.f32 %v7449_v14, %v1955_v53  ;;  %6705 = vpow2.f32 %v1978_v8 }
 0x9a3   :  { %v1980_v10 = vmul.f32 1.442695, %v1967_v6 }
 0x9a4   :  { %v1958_v2 = vpop.xlane.xlu1 %1957 }
 0x9a5   :  { %v1968_v9 = vsub.f32 %v1885_v21, %v1958_v2  ;;  %6707 = vpow2.f32 %v1980_v10  ;;  %v2469_v2 = vsel %vm720_vm3, %v2411_v1, 0 }
 0x9a6   :  { %v7463_v56 = vpop.eup %6701 }
 0x9a7   :  { %v1992_v57 = vsel %vm1937_vm4, %v7463_v56, 0.0  ;;  %v1982_v26 = vmul.f32 1.442695, %v1968_v9 }
 0x9a8   :  { %v1961_v58 = vpop.xlane.xlu0 %1960  ;;  %1993 = vadd.xlane.f32.xlu1 %v1992_v57  ;;  %v2410_v57 = vld [vmem:[#allocation8] sm:$0xf] }
 0x9a9   :  { %v1969_v7 = vsub.f32 %v1931_v28, %v1961_v58  ;;  %6709 = vpow2.f32 %v1982_v26 }
 0x9aa   :  { %v7467_v60 = vpop.eup %6703 }
 0x9ab   :  { %v1995_v61 = vsel %vm1937_vm4, %v7467_v60, 0.0  ;;  %v1984_v30 = vmul.f32 1.442695, %v1969_v7 }
 0x9ac   :  { %1996 = vadd.xlane.f32.xlu0 %v1995_v61  ;;  %v2083_v62 = vpop.permute.xlu0 %2082 }
 0x9ad   :  { %6127 = vmatpush3.bf16.msra.mxu0 %v2083_v62  ;;  %6711 = vpow2.f32 %v1984_v30  ;;  %v2422_v62 = vsel %vm720_vm3, %v2410_v57, 0 }
 0x9ae   :  { %6138 = vmatprep.subr.bf16.mxu0 %v6979_v0  ;;  %v6706_v12 = vpop.eup %6705 }
 0x9b2   :  { %v7478_v3 = vpop.eup %6707 }
 0x9b3   :  { %v2001_v4 = vsel %vm1937_vm4, %v7478_v3, 0.0 }
 0x9b6   :  { %v7481_v11 = vpop.eup %6709 }
 0x9b7   :  { %v2004_v19 = vsel %vm1937_vm4, %v7481_v11, 0.0 }
 0x9b9   :  { %2270 = vrot.lane.b32.xlu1 %v7410_v27, %s6983_s30  ;;  %v2130_v27 = vpop.permute.xlu1 %2129 }
 0x9ba   :  { %v7487_v20 = vpop.eup %6711 }
 0x9bb   :  { %v2007_v21 = vsel %vm1937_vm4, %v7487_v20, 0.0 }
 0x9bd   :  { %v2177_v13 = vpop.permute.xlu1 %2176 }
 0x9c2   :  { %2223 = vrot.lane.b32.xlu0 %v7402_v15, %s6983_s30  ;;  %v1998_v15 = vsel %vm1937_vm4, %v6706_v12, 0.0 }
 0x9dd   :  { %v1991_v14 = vpop.xlane.xlu0 %1990  ;;  %1999 = vadd.xlane.f32.xlu1 %v1998_v15  ;;  %v1988_v16 = vpop.xlane.xlu1 %1987 }
 0x9de   :  { %6713 = vrcp.f32 %v1991_v14  ;;  %v2413_v14 = vld [vmem:[#allocation8 + $0xc] sm:$0xf] }
 0x9df   :  { %6715 = vrcp.f32 %v1988_v16 }
 0x9e1   :  { %2002 = vadd.xlane.f32.xlu0 %v2001_v4  ;;  %2005 = vadd.xlane.f32.xlu1 %v2004_v19 }
 0x9e5   :  { %2008 = vadd.xlane.f32.xlu0 %v2007_v21 }
 0x9eb   :  { %v6714_v22 = vpop.eup %6713 }
 0x9ec   :  { %v6716_v23 = vpop.eup %6715  ;;  %v2019_v24 = vmul.f32 %v6714_v22, %v6698_v48 }
 0x9ed   :  { %v2018_v28 = vmul.f32 %v6716_v23, %v6700_v49 }
 0x9ee   :  { %v2027_v29 = vpack.c.bf16 %v2019_v24, %v2019_v24 }
 0x9ef   :  { %v2026_v32 = vpack.c.bf16 %v2018_v28, %v2018_v28 }
 0x9f0   :  { %6129 = vmatmul.mubr.msk.bf16.vlgmr.msra.gmra.mxu0 %vm1937_vm4, %v2027_v29 }
 0x9f1   :  { %6123 = vmatmul.mubr.msk.bf16.vlgmr.msra.gmra.mxu1 %vm1937_vm4, %v2026_v32  ;;  %6139 = vmatpush3.bf16.msra.mxu0 %v2177_v13  ;;  %v2412_v13 = vld [vmem:[#allocation8 + $0x8] sm:$0xf] }
 0x9f2   :  { %6133 = vmatpush3.bf16.msra.mxu1 %v2130_v27  ;;  %2364 = vrot.lane.b32.xlu1 %v7423_v18, %s6983_s30 }
 0x9f3   :  { %6134 = vmatprep.mubr.msk.bf16.mxu1 %vm6980_vm0, %v6979_v0  ;;  %6144 = vmatprep.subr.bf16.mxu1 %v6979_v0 }
 0x9f4   :  { %6140 = vmatprep.mubr.msk.bf16.mxu0 %vm6980_vm0, %v6979_v0  ;;  %6150 = vmatprep.subr.bf16.mxu0 %v6979_v0 }
 0x9fb   :  { %2317 = vrot.lane.b32.xlu0 %v7417_v41, %s6983_s30 }
 0xa31   :  { %v1994_v33 = vpop.xlane.xlu1 %1993 }
 0xa32   :  { %6717 = vrcp.f32 %v1994_v33 }
 0xa35   :  { %v1997_v31 = vpop.xlane.xlu0 %1996  ;;  %v2271_v41 = vpop.permute.xlu1 %2270 }
 0xa36   :  { %6719 = vrcp.f32 %v1997_v31 }
 0xa39   :  { %v2224_v42 = vpop.permute.xlu0 %2223 }
 0xa3f   :  { %v6718_v37 = vpop.eup %6717 }
 0xa40   :  { %v2020_v18 = vmul.f32 %v6718_v37, %v7463_v56 }
 0xa42   :  { %v2028_v38 = vpack.c.bf16 %v2020_v18, %v2020_v18 }
 0xa43   :  { %v6720_v40 = vpop.eup %6719 }
 0xa44   :  { %6135 = vmatmul.mubr.msk.bf16.vlgmr.msra.gmra.mxu1 %vm1937_vm4, %v2028_v38  ;;  %v2021_v17 = vmul.f32 %v6720_v40, %v7467_v60 }
 0xa45   :  { %6145 = vmatpush3.bf16.msra.mxu1 %v2224_v42  ;;  %6146 = vmatprep.mubr.msk.bf16.mxu1 %vm6980_vm0, %v6979_v0 }
 0xa46   :  { %v2029_v45 = vpack.c.bf16 %v2021_v17, %v2021_v17  ;;  %6156 = vmatprep.subr.bf16.mxu1 %v6979_v0 }
 0xa48   :  { %6141 = vmatmul.mubr.msk.bf16.vlgmr.msra.gmra.mxu0 %vm1937_vm4, %v2029_v45 }
 0xa49   :  { %6151 = vmatpush3.bf16.msra.mxu0 %v2271_v41  ;;  %6152 = vmatprep.mubr.msk.bf16.mxu0 %vm6980_vm0, %v6979_v0 }
 0xa4a   :  { %6162 = vmatprep.subr.bf16.mxu0 %v6979_v0 }
 0xa66   :  { %v2000_v46 = vpop.xlane.xlu1 %1999 }
 0xa67   :  { %6721 = vrcp.f32 %v2000_v46 }
 0xa6a   :  { %v2003_v47 = vpop.xlane.xlu0 %2002  ;;  %v2006_v48 = vpop.xlane.xlu1 %2005 }
 0xa6b   :  { %6723 = vrcp.f32 %v2003_v47 }
 0xa6c   :  { %6725 = vrcp.f32 %v2006_v48 }
 0xa6e   :  { %v2009_v49 = vpop.xlane.xlu0 %2008  ;;  %v2365_v58 = vpop.permute.xlu1 %2364 }
 0xa6f   :  { %6727 = vrcp.f32 %v2009_v49 }
 0xa72   :  { %v2318_v50 = vpop.permute.xlu0 %2317 }
 0xa74   :  { %v6722_v51 = vpop.eup %6721 }
 0xa75   :  { %v2022_v59 = vmul.f32 %v6722_v51, %v6706_v12 }
 0xa77   :  { %v2030_v5 = vpack.c.bf16 %v2022_v59, %v2022_v59 }
 0xa78   :  { %v6724_v52 = vpop.eup %6723 }
 0xa79   :  { %v6726_v54 = vpop.eup %6725  ;;  %6147 = vmatmul.mubr.msk.bf16.vlgmr.msra.gmra.mxu1 %vm1937_vm4, %v2030_v5  ;;  %v2023_v25 = vmul.f32 %v6724_v52, %v7478_v3  ;;  %v2516_v3 = vsel %vm720_vm3, %v2412_v13, 0 }
 0xa7a   :  { %6157 = vmatpush3.bf16.msra.mxu1 %v2318_v50  ;;  %6158 = vmatprep.mubr.msk.bf16.mxu1 %vm6980_vm0, %v6979_v0  ;;  %v2024_v53 = vmul.f32 %v6726_v54, %v7481_v11 }
 0xa7b   :  { %v2031_v55 = vpack.c.bf16 %v2023_v25, %v2023_v25  ;;  %6168 = vmatprep.subr.bf16.mxu1 %v6979_v0 }
 0xa7c   :  { %v6728_v56 = vpop.eup %6727  ;;  %v2032_v60 = vpack.c.bf16 %v2024_v53, %v2024_v53 }
 0xa7d   :  { %6153 = vmatmul.mubr.msk.bf16.vlgmr.msra.gmra.mxu0 %vm1937_vm4, %v2031_v55  ;;  %v2025_v61 = vmul.f32 %v6728_v56, %v7487_v20  ;;  %v2563_v20 = vsel %vm720_vm3, %v2413_v14, 0 }
 0xa7e   :  { %6163 = vmatpush3.bf16.msra.mxu0 %v2365_v58  ;;  %6164 = vmatprep.mubr.msk.bf16.mxu0 %vm6980_vm0, %v6979_v0 }
 0xa7f   :  { %6174 = vmatprep.subr.bf16.mxu0 %v6979_v0  ;;  %v2033_v63 = vpack.c.bf16 %v2025_v61, %v2025_v61 }
 0xa81   :  { %6159 = vmatmul.mubr.msk.bf16.vlgmr.msra.gmra.mxu1 %vm1937_vm4, %v2032_v60 }
 0xa82   :  { %6169 = vmatpush3.bf16.msra.mxu1 %v2422_v62  ;;  %6170 = vmatprep.mubr.msk.bf16.mxu1 %vm6980_vm0, %v6979_v0 }
 0xa83   :  { %6180 = vmatprep.subr.bf16.mxu1 %v6979_v0 }
 0xa85   :  { %6165 = vmatmul.mubr.msk.bf16.vlgmr.msra.gmra.mxu0 %vm1937_vm4, %v2033_v63 }
 0xa86   :  { %6176 = vmatprep.mubr.msk.bf16.mxu0 %vm6980_vm0, %v6979_v0  ;;  %6175 = vmatpush3.bf16.msra.mxu0 %v2469_v2 }
 0xa87   :  { %6186 = vmatprep.subr.bf16.mxu0 %v6979_v0 }
 0xab0   :  { %v2122_v6 = vpop.f32.mrf.mxu0 }
 0xab1   :  { %v2075_v8 = vpop.f32.mrf.mxu1 }
 0xab2   :  { %v2414_v9 = vpack.c.bf16 %v2122_v6, %v2075_v8  ;;  %v6130_v10 = vpop.f32.mrf.mxu0 }
 0xab3   :  { %v6124_v26 = vpop.f32.mrf.mxu1 }
 0xab4   :  { %6171 = vmatmul.mubr.msk.bf16.vlgmr.msra.gmra.mxu1 %vm229_vm2, %v2414_v9  ;;  %v2125_v7 = vpop.f32.mrf.mxu0 }
 0xab5   :  { %v2078_v30 = vpop.f32.mrf.mxu1  ;;  %6182 = vmatprep.mubr.msk.bf16.mxu1 %vm6980_vm0, %v6979_v0  ;;  %6181 = vmatpush3.bf16.msra.mxu1 %v2516_v3 }
 0xab6   :  { %v6131_v27 = vpop.f32.mrf.mxu0  ;;  %6192 = vmatprep.subr.bf16.mxu1 %v6979_v0 }
 0xab7   :  { %v6125_v12 = vpop.f32.mrf.mxu1 }
 0xb04   :  { %v2169_v15 = vpop.f32.mrf.mxu1 }
 0xb06   :  { %v6136_v11 = vpop.f32.mrf.mxu1 }
 0xb08   :  { %v2172_v16 = vpop.f32.mrf.mxu1  ;;  %v2216_v4 = vpop.f32.mrf.mxu0 }
 0xb09   :  { %v2415_v19 = vpack.c.bf16 %v2216_v4, %v2169_v15 }
 0xb0a   :  { %v6137_v21 = vpop.f32.mrf.mxu1  ;;  %v6142_v22 = vpop.f32.mrf.mxu0 }
 0xb0b   :  { %6177 = vmatmul.mubr.msk.bf16.vlgmr.msra.gmra.mxu0 %vm229_vm2, %v2415_v19 }
 0xb0c   :  { %v2219_v23 = vpop.f32.mrf.mxu0  ;;  %6187 = vmatpush3.bf16.msra.mxu0 %v2563_v20  ;;  %6188 = vmatprep.mubr.msk.bf16.mxu0 %vm6980_vm0, %v6979_v0 }
 0xb0d   :  { %6200 = vmatprep.subr.bf16.mxu0 %v6979_v0 }
 0xb0e   :  { %v6143_v24 = vpop.f32.mrf.mxu0 }
 0xb39   :  { %v2263_v28 = vpop.f32.mrf.mxu1 }
 0xb3b   :  { %v6148_v29 = vpop.f32.mrf.mxu1 }
 0xb3d   :  { %v2266_v32 = vpop.f32.mrf.mxu1  ;;  %v2310_v33 = vpop.f32.mrf.mxu0 }
 0xb3e   :  { %v2416_v31 = vpack.c.bf16 %v2310_v33, %v2263_v28 }
 0xb3f   :  { %v6149_v37 = vpop.f32.mrf.mxu1  ;;  %v6154_v18 = vpop.f32.mrf.mxu0 }
 0xb40   :  { %6183 = vmatmul.mubr.msk.bf16.vlgmr.msra.gmra.mxu1 %vm229_vm2, %v2416_v31  ;;  %v6643_v31 = vld [vmem:[#allocation10 + $0x8] sm:$0xff]   ;;  %v6645_v37 = vld [vmem:[%s8123_s9 + $0x18] sm:$0xff]  }
 0xb41   :  { %v2313_v38 = vpop.f32.mrf.mxu0  ;;  %v2357_v40 = vpop.f32.mrf.mxu1  ;;  %6196 = vmatprep.mubr.msk.bf16.mxu1 %vm6980_vm0, %v6979_v0  ;;  %6193 = vmatpush3.bf16.msra.mxu1 %v6643_v31 }
 0xb42   :  { %6194 = vmatprep.subr.bf16.mxu1 %v6979_v0 }
 0xb43   :  { %v6155_v42 = vpop.f32.mrf.mxu0  ;;  %v6160_v17 = vpop.f32.mrf.mxu1 }
 0xb45   :  { %v2360_v45 = vpop.f32.mrf.mxu1  ;;  %v2404_v41 = vpop.f32.mrf.mxu0 }
 0xb46   :  { %v2417_v46 = vpack.c.bf16 %v2404_v41, %v2357_v40  ;;  %v7571_v41 = vsub.s32 1, %v7341_v34 }
 0xb47   :  { %v6161_v47 = vpop.f32.mrf.mxu1  ;;  %v6166_v48 = vpop.f32.mrf.mxu0 }
 0xb48   :  { %6189 = vmatmul.mubr.msk.bf16.vlgmr.msra.gmra.mxu0 %vm229_vm2, %v2417_v46  ;;  %v2651_v48 = vrot.slane %v7349_v36, %v7571_v41  ;;  %v6647_v36 = vld [vmem:[%s8123_s9 + $0x8] sm:$0xff]  }
 0xb49   :  { %v2407_v49 = vpop.f32.mrf.mxu0  ;;  %6208 = vmatprep.mubr.msk.bf16.mxu0 %vm6980_vm0, %v6979_v0  ;;  %6201 = vmatpush3.bf16.msra.mxu0 %v6645_v37  ;;  %v7611_v37 = vsub.s32 2, %v7341_v34 }
 0xb4a   :  { %6202 = vmatprep.subr.bf16.mxu0 %v6979_v0 }
 0xb4b   :  { %v6167_v51 = vpop.f32.mrf.mxu0 }
 0xb74   :  { %v2458_v59 = vpop.f32.mrf.mxu1 }
 0xb75   :  { %v2606_v61 = vsel %vm153_vm1, %v2458_v59, 0.0 }
 0xb76   :  { %v6172_v5 = vpop.f32.mrf.mxu1 }
 0xb77   :  { %v2657_v5 = vrot.slane %v7356_v39, %v7571_v41  ;;  %v6648_v39 = vld [vmem:[%s8123_s9] sm:$0xff]  }
 0xb78   :  { %v2461_v52 = vpop.f32.mrf.mxu1 }
 0xb79   :  { %v2613_v9 = vsel %vm153_vm1, %v2461_v52, 0.0 }
 0xb7a   :  { %v6173_v54 = vpop.f32.mrf.mxu1 }
 0xbcb   :  { %v2505_v50 = vpop.f32.mrf.mxu0 }
 0xbcc   :  { %v2607_v58 = vsel %vm153_vm1, %v2505_v50, 0.0 }
 0xbcd   :  { %v6178_v25 = vpop.f32.mrf.mxu0  ;;  %v2608_v63 = vadd.f32 %v2607_v58, %v2606_v61 }
 0xbcf   :  { %v2508_v55 = vpop.f32.mrf.mxu0 }
 0xbd0   :  { %v2614_v2 = vsel %vm153_vm1, %v2508_v55, 0.0  ;;  %v6646_v55 = vld [vmem:[%s8123_s9 + $0x10] sm:$0xff]  }
 0xbd1   :  { %v6179_v53 = vpop.f32.mrf.mxu0  ;;  %v2615_v7 = vadd.f32 %v2614_v2, %v2613_v9  ;;  %6203 = vmatpush3.bf16.msra.mxu0 %v6646_v55 }
 0xbd2   :  { %6204 = vmatprep.subr.bf16.mxu0 %v6979_v0  ;;  %v5639_v53 = vld [vmem:[%s8122_s8] ss:$0 sm:$0xff] }
 0xbd5   :  { %6205 = vmatpush3.bf16.msra.mxu0 %v6647_v36 }
 0xbd6   :  { %6206 = vmatprep.subr.bf16.mxu0 %v6979_v0 }
 0xbd9   :  { %6207 = vmatpush3.bf16.msra.mxu0 %v6648_v39 }
 0xbda   :  { %6226 = vmatprep.subr.bf16.mxu0 %v6979_v0 }
 0xc00   :  { %v2552_v56 = vpop.f32.mrf.mxu1 }
 0xc01   :  { %v2609_v62 = vsel %vm153_vm1, %v2552_v56, 0.0 }
 0xc02   :  { %v6184_v57 = vpop.f32.mrf.mxu1  ;;  %v2610_v6 = vadd.f32 %v2609_v62, %v2608_v63 }
 0xc04   :  { %v2555_v60 = vpop.f32.mrf.mxu1 }
 0xc05   :  { %v2616_v10 = vsel %vm153_vm1, %v2555_v60, 0.0 }
 0xc06   :  { %v6185_v1 = vpop.f32.mrf.mxu1  ;;  %v2617_v12 = vadd.f32 %v2616_v10, %v2615_v7 }
 0xc08   :  { %v2599_v8 = vpop.f32.mrf.mxu0 }
 0xc09   :  { %v2611_v26 = vsel %vm153_vm1, %v2599_v8, 0.0 }
 0xc0a   :  { %v2612_v30 = vadd.f32 %v2611_v26, %v2610_v6  ;;  %v6190_v27 = vpop.f32.mrf.mxu0  ;;  %v5643_v6 = vld [vmem:[#allocation11] ss:$0 sm:$0xff] }
 0xc0c   :  { %v2602_v13 = vpop.f32.mrf.mxu0  ;;  %v2620_v3 = vadd.f32 %v2612_v30, %v7360_v43 }
 0xc0d   :  { %v2618_v15 = vsel %vm153_vm1, %v2602_v13, 0.0 }
 0xc0e   :  { %v2619_v11 = vadd.f32 %v2618_v15, %v2617_v12  ;;  %v6191_v14 = vpop.f32.mrf.mxu0  ;;  %v2622_v16 = vsel %vm153_vm1, %v2620_v3, 0.0 }
 0xc0f   :  { %2623 = vadd.xlane.f32.xlu0 %v2622_v16 }
 0xc10   :  { %v2621_v4 = vadd.f32 %v2619_v11, %v7362_v44  ;;  %v6644_v44 = vld [vmem:[#allocation10] sm:$0xff]  }
 0xc11   :  { %6195 = vmatpush3.bf16.msra.mxu1 %v6644_v44 }
 0xc12   :  { %v2625_v19 = vsel %vm153_vm1, %v2621_v4, 0.0  ;;  %6212 = vmatprep.subr.bf16.mxu1 %v6979_v0 }
 0xc13   :  { %2626 = vadd.xlane.f32.xlu1 %v2625_v19 }
 0xc98   :  { %v2624_v20 = vpop.xlane.xlu0 %2623 }
 0xc99   :  { %v2628_v21 = vmul.f32 0.03125, %v2624_v20 }
 0xc9b   :  { %v2630_v22 = vsub.f32 %v2620_v3, %v2628_v21 }
 0xc9c   :  { %v2627_v23 = vpop.xlane.xlu1 %2626 }
 0xc9d   :  { %v2629_v24 = vmul.f32 0.03125, %v2627_v23  ;;  %v2632_v28 = vmul.f32 %v2630_v22, %v2630_v22 }
 0xc9f   :  { %v2631_v29 = vsub.f32 %v2621_v4, %v2629_v24  ;;  %v2634_v43 = vsel %vm153_vm1, %v2632_v28, 0.0  ;;  %v6649_v24 = vld [vmem:[%s8116_s2 + $0x18] sm:$0xff]   ;;  %v6650_v28 = vld [vmem:[%s8116_s2 + $0x10] sm:$0xff]  }
 0xca0   :  { %2635 = vadd.xlane.f32.xlu0 %v2634_v43 }
 0xca1   :  { %v2633_v32 = vmul.f32 %v2631_v29, %v2631_v29 }
 0xca3   :  { %v2637_v33 = vsel %vm153_vm1, %v2633_v32, 0.0 }
 0xca4   :  { %2638 = vadd.xlane.f32.xlu0 %v2637_v33 }
 0xd29   :  { %v2636_v18 = vpop.xlane.xlu0 %2635 }
 0xd2a   :  { %v2640_v38 = vmul.f32 0.03125, %v2636_v18 }
 0xd2c   :  { %v2642_v40 = vadd.f32 1e-05, %v2640_v38 }
 0xd2d   :  { %v2639_v42 = vpop.xlane.xlu0 %2638 }
 0xd2e   :  { %6729 = vrsqrt.f32 %v2642_v40  ;;  %v2641_v17 = vmul.f32 0.03125, %v2639_v42  ;;  %v6813_v40 = vld [vmem:[%s8125_s11] sm:$0x7] }
 0xd2f   :  { %v2846_v42 = vrot.slane %v6813_v40, %v7611_v37 }
 0xd30   :  { %v2643_v45 = vadd.f32 1e-05, %v2641_v17 }
 0xd32   :  { %6731 = vrsqrt.f32 %v2643_v45 }
 0xd3b   :  { %v6730_v46 = vpop.eup %6729 }
 0xd3c   :  { %v2646_v47 = vmul.f32 %v6730_v46, %v2630_v22 }
 0xd3e   :  { %v2652_v59 = vmul.f32 %v2651_v48, %v2646_v47  ;;  %v6814_v47 = vld [vmem:[%s8126_s12] sm:$0x7] }
 0xd3f   :  { %v6732_v49 = vpop.eup %6731 }
 0xd40   :  { %v2647_v51 = vmul.f32 %v6732_v49, %v2631_v29  ;;  %v2658_v54 = vadd.f32 %v2657_v5, %v2652_v59 }
 0xd42   :  { %v2653_v52 = vmul.f32 %v2651_v48, %v2647_v51  ;;  %v2852_v48 = vrot.slane %v6814_v47, %v7611_v37 }
 0xd44   :  { %v2659_v50 = vadd.f32 %v2657_v5, %v2653_v52 }
 0xd46   :  { %v2664_v25 = vpack.c.bf16 %v2659_v50, %v2658_v54 }
 0xd48   :  { %6197 = vmatmul.mubr.msk.bf16.vlgmr.msra.gmra.mxu1 %vm153_vm1, %v2664_v25 }
 0xd49   :  { %6216 = vmatprep.mubr.msk.bf16.mxu1 %vm6980_vm0, %v6979_v0  ;;  %6213 = vmatpush3.bf16.msra.mxu1 %v6649_v24 }
 0xd4a   :  { %6214 = vmatprep.subr.bf16.mxu1 %v6979_v0 }
 0xd4d   :  { %6215 = vmatpush3.bf16.msra.mxu1 %v6650_v28 }
 0xd4e   :  { %6220 = vmatprep.subr.bf16.mxu1 %v6979_v0 }
 0xe08   :  { %v2721_v56 = vpop.f32.mrf.mxu1 }
 0xe09   :  { %v2722_v58 = vadd.f32 %v5639_v53, %v2721_v56 }
 0xe0a   :  { %v6198_v57 = vpop.f32.mrf.mxu1 }
 0xe0b   :  { %v2728_v63 = vmax.f32 %v2722_v58, 0.0 }
 0xe0c   :  { %v2724_v60 = vpop.f32.mrf.mxu1 }
 0xe0d   :  { %v2725_v61 = vadd.f32 %v5639_v53, %v2724_v60 }
 0xe0e   :  { %v6199_v62 = vpop.f32.mrf.mxu1 }
 0xe0f   :  { %v2729_v1 = vmax.f32 %v2725_v61, 0.0 }
 0xe11   :  { %v2738_v2 = vpack.c.bf16 %v2729_v1, %v2728_v63 }
 0xe13   :  { %6209 = vmatmul.mubr.msk.bf16.vlgmr.msra.gmra.mxu0 %vm2770_vm5, %v2738_v2 }
 0xe14   :  { %6228 = vmatprep.mubr.msk.bf16.mxu0 %vm6980_vm0, %v6979_v0 }
 0xed3   :  { %v2808_v8 = vpop.f32.mrf.mxu0 }
 0xed4   :  { %v2809_v9 = vadd.f32 %v5643_v6, %v2808_v8 }
 0xed5   :  { %v6210_v10 = vpop.f32.mrf.mxu0 }
 0xed6   :  { %v2815_v26 = vadd.f32 %v2809_v9, %v2658_v54 }
 0xed7   :  { %v2811_v7 = vpop.f32.mrf.mxu0 }
 0xed8   :  { %v2812_v30 = vadd.f32 %v5643_v6, %v2811_v7  ;;  %v2817_v27 = vsel %vm153_vm1, %v2815_v26, 0.0 }
 0xed9   :  { %2818 = vadd.xlane.f32.xlu1 %v2817_v27  ;;  %v6211_v12 = vpop.f32.mrf.mxu0 }
 0xeda   :  { %v2816_v13 = vadd.f32 %v2812_v30, %v2659_v50 }
 0xedc   :  { %v2820_v3 = vsel %vm153_vm1, %v2816_v13, 0.0 }
 0xedd   :  { %2821 = vadd.xlane.f32.xlu0 %v2820_v3 }
 0xf62   :  { %v2819_v15 = vpop.xlane.xlu1 %2818 }
 0xf63   :  { %v2823_v11 = vmul.f32 0.03125, %v2819_v15 }
 0xf65   :  { %v2825_v14 = vsub.f32 %v2815_v26, %v2823_v11 }
 0xf66   :  { %v2822_v16 = vpop.xlane.xlu0 %2821 }
 0xf67   :  { %v2824_v4 = vmul.f32 0.03125, %v2822_v16  ;;  %v2827_v19 = vmul.f32 %v2825_v14, %v2825_v14 }
 0xf69   :  { %v2826_v20 = vsub.f32 %v2816_v13, %v2824_v4  ;;  %v2829_v21 = vsel %vm153_vm1, %v2827_v19, 0.0 }
 0xf6a   :  { %2830 = vadd.xlane.f32.xlu1 %v2829_v21 }
 0xf6b   :  { %v2828_v22 = vmul.f32 %v2826_v20, %v2826_v20 }
 0xf6d   :  { %v2832_v23 = vsel %vm153_vm1, %v2828_v22, 0.0 }
 0xf6e   :  { %2833 = vadd.xlane.f32.xlu0 %v2832_v23 }
 0xff3   :  { %v2831_v29 = vpop.xlane.xlu1 %2830 }
 0xff4   :  { %v2835_v43 = vmul.f32 0.03125, %v2831_v29 }
 0xff6   :  { %v2837_v32 = vadd.f32 1e-05, %v2835_v43 }
 0xff7   :  { %v2834_v33 = vpop.xlane.xlu0 %2833 }
 0xff8   :  { %6733 = vrsqrt.f32 %v2837_v32  ;;  %v2836_v31 = vmul.f32 0.03125, %v2834_v33 }
 0xffa   :  { %v2838_v44 = vadd.f32 1e-05, %v2836_v31 }
 0xffc   :  { %6735 = vrsqrt.f32 %v2838_v44 }
0x1005   :  { %v6734_v18 = vpop.eup %6733 }
0x1006   :  { %v2841_v38 = vmul.f32 %v6734_v18, %v2825_v14 }
0x1008   :  { %v2847_v46 = vmul.f32 %v2846_v42, %v2841_v38 }
0x1009   :  { %v6736_v17 = vpop.eup %6735 }
0x100a   :  { %v2842_v45 = vmul.f32 %v6736_v17, %v2826_v20  ;;  %v7621_v34 = vadd.f32 %v2852_v48, %v2847_v46 }
0x100c   :  { %v2848_v49 = vmul.f32 %v2846_v42, %v2842_v45 }
0x100e   :  { %v7623_v51 = vadd.f32 %v2852_v48, %v2848_v49 }
0x1010   :  { %v2864_v59 = vpack.c.bf16 %v7623_v51, %v7621_v34 }
0x1012   :  { %6217 = vmatmul.mubr.msk.bf16.vlgmr.msra.gmra.mxu1 %vm153_vm1, %v2864_v59 }
0x1013   :  { %6222 = vmatprep.mubr.msk.bf16.mxu1 %vm6980_vm0, %v6979_v0 }
0x10d2   :  { %v2914_v5 = vpop.f32.mrf.mxu1 }
0x10d3   :  { %v2941_v36 = vpack.c.bf16 %v2914_v5, %v2914_v5 }
0x10d4   :  { %v6218_v52 = vpop.f32.mrf.mxu1 }
0x10d6   :  { %v2917_v54 = vpop.f32.mrf.mxu1 }
0x10d7   :  { %v6580_v50 = vpack.i.bf16 %v2917_v54, %v2914_v5  ;;  %v2942_v55 = vpack.c.bf16 %v2917_v54, %v2917_v54 }
0x10d8   :  { %v6219_v25 = vpop.f32.mrf.mxu1 }
0x10d9   :  { %6581 = vrot.lane.b32.xlu0 %v6580_v50, %s6984_s14  ;;  %6576 = vrot.lane.b32.xlu1 %v6580_v50, %s6982_s6 }
0x10dd   :  { %6586 = vrot.lane.b32.xlu1 %v6580_v50, %s6981_s27  ;;  %2999 = vrot.lane.b32.xlu0 %v2942_v55, %s6983_s30 }
0x10e1   :  { %2950 = vrot.lane.b32.xlu1 %v2941_v36, %s6983_s30 }
0x114b   :  { %v6582_v39 = vpop.permute.xlu0 %6581  ;;  %v6577_v53 = vpop.permute.xlu1 %6576 }
0x114c   :  { %v6579_v56 = vunpack.i.h.bf16 %v6577_v53  ;;  %v6578_v57 = vunpack.i.l.bf16 %v6577_v53  ;;  %v6584_v58 = vunpack.i.h.bf16 %v6582_v39  ;;  %v6583_v60 = vunpack.i.l.bf16 %v6582_v39 }
0x114e   :  { %v7635_v61 = vpack.c.bf16 %v6579_v56, %v6579_v56  ;;  %v7637_v62 = vpack.c.bf16 %v6578_v57, %v6578_v57  ;;  %v7644_v6 = vpack.c.bf16 %v6584_v58, %v6584_v58  ;;  %v7646_v8 = vpack.c.bf16 %v6583_v60, %v6583_v60 }
0x114f   :  { %v6587_v63 = vpop.permute.xlu1 %6586  ;;  %v3000_v1 = vpop.permute.xlu0 %2999 }
0x1150   :  { %v3005_v2 = vsel %vm229_vm2, %v3000_v1, 0  ;;  %3048 = vrot.lane.b32.xlu1 %v7637_v62, %s6983_s30  ;;  %3097 = vrot.lane.b32.xlu0 %v7635_v61, %s6983_s30  ;;  %v6589_v9 = vunpack.i.h.bf16 %v6587_v63  ;;  %v6588_v10 = vunpack.i.l.bf16 %v6587_v63 }
0x1151   :  { %6227 = vmatpush3.bf16.xpose.msra.mxu0 %v3005_v2 }
0x1152   :  { %6238 = vmatprep.subr.bf16.mxu0 %v6979_v0  ;;  %v7654_v30 = vpack.c.bf16 %v6589_v9, %v6589_v9  ;;  %v7656_v27 = vpack.c.bf16 %v6588_v10, %v6588_v10 }
0x1153   :  { %v2951_v26 = vpop.permute.xlu1 %2950 }
0x1154   :  { %v2956_v7 = vsel %vm229_vm2, %v2951_v26, 0  ;;  %3146 = vrot.lane.b32.xlu1 %v7646_v8, %s6983_s30  ;;  %3195 = vrot.lane.b32.xlu0 %v7644_v6, %s6983_s30 }
0x1155   :  { %6221 = vmatpush3.bf16.xpose.msra.mxu1 %v2956_v7 }
0x1156   :  { %6232 = vmatprep.subr.bf16.mxu1 %v6979_v0 }
0x1158   :  { %3244 = vrot.lane.b32.xlu1 %v7656_v27, %s6983_s30  ;;  %3293 = vrot.lane.b32.xlu0 %v7654_v30, %s6983_s30 }
0x1159   :  { %6229 = vmatmul.mubr.msk.bf16.vlgmr.msra.gmra.mxu0 %vm229_vm2, %v2942_v55 }
0x115a   :  { %6240 = vmatprep.mubr.msk.bf16.mxu0 %vm6980_vm0, %v6979_v0 }
0x115c   :  { %6223 = vmatmul.mubr.msk.bf16.vlgmr.msra.gmra.mxu1 %vm229_vm2, %v2941_v36  ;;  %3485 = vrot.lane.b32.xlu1 %v2942_v55, %s6968_s28 }
0x115d   :  { %3437 = vrot.lane.b32.xlu0 %v2941_v36, %s6968_s28  ;;  %6234 = vmatprep.mubr.msk.bf16.mxu1 %vm6980_vm0, %v6979_v0 }
0x11c2   :  { %v3049_v12 = vpop.permute.xlu1 %3048  ;;  %v3098_v13 = vpop.permute.xlu0 %3097 }
0x11c3   :  { %v3054_v3 = vsel %vm229_vm2, %v3049_v12, 0  ;;  %v3103_v15 = vsel %vm229_vm2, %v3098_v13, 0 }
0x11c4   :  { %6233 = vmatpush3.bf16.xpose.msra.mxu1 %v3054_v3  ;;  %6239 = vmatpush3.bf16.xpose.msra.mxu0 %v3103_v15 }
0x11c5   :  { %6244 = vmatprep.subr.bf16.mxu1 %v6979_v0  ;;  %6250 = vmatprep.subr.bf16.mxu0 %v6979_v0 }
0x11c6   :  { %v3147_v11 = vpop.permute.xlu1 %3146  ;;  %v3196_v14 = vpop.permute.xlu0 %3195 }
0x11c7   :  { %v3152_v16 = vsel %vm229_vm2, %v3147_v11, 0  ;;  %v3201_v4 = vsel %vm229_vm2, %v3196_v14, 0 }
0x11ca   :  { %v3245_v19 = vpop.permute.xlu1 %3244  ;;  %v3294_v20 = vpop.permute.xlu0 %3293 }
0x11cb   :  { %6235 = vmatmul.mubr.msk.bf16.vlgmr.msra.gmra.mxu1 %vm229_vm2, %v7637_v62  ;;  %6241 = vmatmul.mubr.msk.bf16.vlgmr.msra.gmra.mxu0 %vm229_vm2, %v7635_v61  ;;  %v3250_v21 = vsel %vm229_vm2, %v3245_v19, 0  ;;  %v3299_v22 = vsel %vm229_vm2, %v3294_v20, 0 }
0x11cc   :  { %6245 = vmatpush3.bf16.xpose.msra.mxu1 %v3152_v16  ;;  %6251 = vmatpush3.bf16.xpose.msra.mxu0 %v3201_v4 }
0x11cd   :  { %6246 = vmatprep.mubr.msk.bf16.mxu1 %vm6980_vm0, %v6979_v0  ;;  %6252 = vmatprep.mubr.msk.bf16.mxu0 %vm6980_vm0, %v6979_v0 }
0x11ce   :  { %6256 = vmatprep.subr.bf16.mxu1 %v6979_v0  ;;  %6262 = vmatprep.subr.bf16.mxu0 %v6979_v0  ;;  %v3486_v23 = vpop.permute.xlu1 %3485 }
0x11cf   :  { %v3438_v24 = vpop.permute.xlu0 %3437  ;;  %v3491_v28 = vsel %vm720_vm3, %v3486_v23, 0 }
0x11d0   :  { %v3443_v29 = vsel %vm720_vm3, %v3438_v24, 0 }
0x11d3   :  { %6247 = vmatmul.mubr.msk.bf16.vlgmr.msra.gmra.mxu1 %vm229_vm2, %v7646_v8  ;;  %6253 = vmatmul.mubr.msk.bf16.vlgmr.msra.gmra.mxu0 %vm229_vm2, %v7644_v6 }
0x11d4   :  { %6257 = vmatpush3.bf16.xpose.msra.mxu1 %v3250_v21  ;;  %6263 = vmatpush3.bf16.xpose.msra.mxu0 %v3299_v22 }
0x11d5   :  { %6258 = vmatprep.mubr.msk.bf16.mxu1 %vm6980_vm0, %v6979_v0  ;;  %6264 = vmatprep.mubr.msk.bf16.mxu0 %vm6980_vm0, %v6979_v0 }
0x11d6   :  { %6268 = vmatprep.subr.bf16.mxu1 %v6979_v0  ;;  %6274 = vmatprep.subr.bf16.mxu0 %v6979_v0 }
0x11db   :  { %6259 = vmatmul.mubr.msk.bf16.vlgmr.msra.gmra.mxu1 %vm229_vm2, %v7656_v27  ;;  %6265 = vmatmul.mubr.msk.bf16.vlgmr.msra.gmra.mxu0 %vm229_vm2, %v7654_v30 }
0x11dc   :  { %6269 = vmatpush3.bf16.msra.mxu1 %v3443_v29  ;;  %6275 = vmatpush3.bf16.msra.mxu0 %v3491_v28 }
0x11dd   :  { %6270 = vmatprep.mubr.msk.bf16.mxu1 %vm6980_vm0, %v6979_v0  ;;  %6276 = vmatprep.mubr.msk.bf16.mxu0 %vm6980_vm0, %v6979_v0 }
0x11de   :  { %6280 = vmatprep.subr.bf16.mxu1 %v6979_v0  ;;  %6286 = vmatprep.subr.bf16.mxu0 %v6979_v0 }
0x1219   :  { %v3041_v43 = vpop.f32.mrf.mxu0 }
0x121a   :  { %v3344_v32 = vsel %vm229_vm2, %v3041_v43, -inf }
0x121b   :  { %3345 = vmax.xlane.f32.xlu0 %v3344_v32  ;;  %v6230_v33 = vpop.f32.mrf.mxu0 }
0x121c   :  { %v2992_v31 = vpop.f32.mrf.mxu1 }
0x121d   :  { %v3044_v44 = vpop.f32.mrf.mxu0  ;;  %v3341_v18 = vsel %vm229_vm2, %v2992_v31, -inf }
0x121e   :  { %3342 = vmax.xlane.f32.xlu1 %v3341_v18  ;;  %v6224_v38 = vpop.f32.mrf.mxu1 }
0x121f   :  { %v6231_v40 = vpop.f32.mrf.mxu0 }
0x1220   :  { %v2995_v42 = vpop.f32.mrf.mxu1 }
0x1222   :  { %v6225_v17 = vpop.f32.mrf.mxu1 }
0x128b   :  { %v3090_v45 = vpop.f32.mrf.mxu1  ;;  %v3139_v46 = vpop.f32.mrf.mxu0 }
0x128c   :  { %v3350_v47 = vsel %vm229_vm2, %v3139_v46, -inf  ;;  %v3347_v48 = vsel %vm229_vm2, %v3090_v45, -inf }
0x128d   :  { %v6242_v49 = vpop.f32.mrf.mxu0  ;;  %3351 = vmax.xlane.f32.xlu1 %v3350_v47  ;;  %3348 = vmax.xlane.f32.xlu0 %v3347_v48  ;;  %v6236_v59 = vpop.f32.mrf.mxu1 }
0x128f   :  { %v3093_v5 = vpop.f32.mrf.mxu1  ;;  %v3142_v52 = vpop.f32.mrf.mxu0 }
0x1291   :  { %v6237_v54 = vpop.f32.mrf.mxu1  ;;  %v6243_v50 = vpop.f32.mrf.mxu0 }
0x1293   :  { %v7715_v25 = vpop.f32.mrf.mxu1  ;;  %v3237_v55 = vpop.f32.mrf.mxu0 }
0x1294   :  { %v3356_v36 = vsel %vm229_vm2, %v3237_v55, -inf  ;;  %v3353_v39 = vsel %vm229_vm2, %v7715_v25, -inf }
0x1295   :  { %v6254_v53 = vpop.f32.mrf.mxu0  ;;  %3357 = vmax.xlane.f32.xlu1 %v3356_v36  ;;  %3354 = vmax.xlane.f32.xlu0 %v3353_v39  ;;  %v6248_v56 = vpop.f32.mrf.mxu1 }
0x1297   :  { %v3191_v57 = vpop.f32.mrf.mxu1  ;;  %v3240_v58 = vpop.f32.mrf.mxu0 }
0x1299   :  { %v6249_v60 = vpop.f32.mrf.mxu1  ;;  %v6255_v63 = vpop.f32.mrf.mxu0 }
0x129b   :  { %v7720_v1 = vpop.f32.mrf.mxu1  ;;  %v3335_v2 = vpop.f32.mrf.mxu0 }
0x129c   :  { %v3362_v9 = vsel %vm229_vm2, %v3335_v2, -inf  ;;  %v3359_v10 = vsel %vm229_vm2, %v7720_v1, -inf }
0x129d   :  { %v6266_v26 = vpop.f32.mrf.mxu0  ;;  %3363 = vmax.xlane.f32.xlu1 %v3362_v9  ;;  %3360 = vmax.xlane.f32.xlu0 %v3359_v10  ;;  %v6260_v7 = vpop.f32.mrf.mxu1 }
0x129f   :  { %v3289_v12 = vpop.f32.mrf.mxu1  ;;  %v3338_v13 = vpop.f32.mrf.mxu0 }
0x12a1   :  { %v6261_v3 = vpop.f32.mrf.mxu1  ;;  %v6267_v15 = vpop.f32.mrf.mxu0 }
0x12a4   :  { %v3346_v11 = vpop.xlane.xlu0 %3345 }
0x12a5   :  { %v3366_v16 = vsub.f32 %v3041_v43, %v3346_v11 }
0x12a7   :  { %v3343_v14 = vpop.xlane.xlu1 %3342  ;;  %v3375_v19 = vmul.f32 1.442695, %v3366_v16 }
0x12a8   :  { %v3365_v4 = vsub.f32 %v2992_v31, %v3343_v14 }
0x12a9   :  { %6737 = vpow2.f32 %v3375_v19 }
0x12aa   :  { %v3373_v20 = vmul.f32 1.442695, %v3365_v4 }
0x12ac   :  { %6739 = vpow2.f32 %v3373_v20 }
0x12ae   :  { %3533 = vrot.lane.b32.xlu1 %v7637_v62, %s6968_s28 }
0x12b3   :  { %3581 = vrot.lane.b32.xlu0 %v7635_v61, %s6968_s28 }
0x12b6   :  { %v6738_v21 = vpop.eup %6737 }
0x12b7   :  { %v3392_v23 = vsel %vm229_vm2, %v6738_v21, 0.0 }
0x12b9   :  { %v6740_v22 = vpop.eup %6739 }
0x12ba   :  { %v3389_v24 = vsel %vm229_vm2, %v6740_v22, 0.0 }
0x12d2   :  { %3393 = vadd.xlane.f32.xlu1 %v3392_v23  ;;  %3390 = vadd.xlane.f32.xlu0 %v3389_v24 }
0x12e3   :  { %3629 = vrot.lane.b32.xlu1 %v7646_v8, %s6968_s28 }
0x1316   :  { %v3352_v61 = vpop.xlane.xlu1 %3351  ;;  %v3349_v62 = vpop.xlane.xlu0 %3348 }
0x1317   :  { %v3368_v28 = vsub.f32 %v3139_v46, %v3352_v61  ;;  %v3367_v29 = vsub.f32 %v3090_v45, %v3349_v62 }
0x1319   :  { %v3379_v43 = vmul.f32 1.442695, %v3368_v28  ;;  %v3377_v32 = vmul.f32 1.442695, %v3367_v29 }
0x131b   :  { %6741 = vpow2.f32 %v3379_v43 }
0x131c   :  { %6743 = vpow2.f32 %v3377_v32 }
0x131e   :  { %v3358_v33 = vpop.xlane.xlu1 %3357  ;;  %v3355_v59 = vpop.xlane.xlu0 %3354 }
0x131f   :  { %v3370_v31 = vsub.f32 %v3237_v55, %v3358_v33  ;;  %v3369_v5 = vsub.f32 %v7715_v25, %v3355_v59 }
0x1321   :  { %v3383_v44 = vmul.f32 1.442695, %v3370_v31  ;;  %v3381_v54 = vmul.f32 1.442695, %v3369_v5 }
0x1323   :  { %6745 = vpow2.f32 %v3383_v44 }
0x1326   :  { %v3364_v18 = vpop.xlane.xlu1 %3363  ;;  %v3361_v52 = vpop.xlane.xlu0 %3360 }
0x1327   :  { %v3372_v38 = vsub.f32 %v3335_v2, %v3364_v18  ;;  %v3371_v50 = vsub.f32 %v7720_v1, %v3361_v52 }
0x1328   :  { %v6742_v40 = vpop.eup %6741 }
0x1329   :  { %v6744_v42 = vpop.eup %6743  ;;  %v3387_v17 = vmul.f32 1.442695, %v3372_v38  ;;  %v3398_v47 = vsel %vm229_vm2, %v6742_v40, 0.0  ;;  %v3385_v55 = vmul.f32 1.442695, %v3371_v50 }
0x132a   :  { %3399 = vadd.xlane.f32.xlu1 %v3398_v47  ;;  %v3395_v8 = vsel %vm229_vm2, %v6744_v42, 0.0  ;;  %v3534_v36 = vpop.permute.xlu1 %3533  ;;  %v3582_v39 = vpop.permute.xlu0 %3581 }
0x132b   :  { %6747 = vpow2.f32 %v3387_v17  ;;  %3396 = vadd.xlane.f32.xlu0 %v3395_v8  ;;  %v3587_v10 = vsel %vm720_vm3, %v3582_v39, 0  ;;  %v3539_v26 = vsel %vm720_vm3, %v3534_v36, 0  ;;  %v5674_v8 = vld [vmem:[%s8117_s3 + $0x10] sm:$0xf] }
0x132c   :  { %6749 = vpow2.f32 %v3381_v54 }
0x132d   :  { %6751 = vpow2.f32 %v3385_v55 }
0x1330   :  { %v7735_v45 = vpop.eup %6745 }
0x1331   :  { %v3404_v46 = vsel %vm229_vm2, %v7735_v45, 0.0 }
0x1332   :  { %3405 = vadd.xlane.f32.xlu1 %v3404_v46  ;;  %v3834_v46 = vsel %vm720_vm3, %v5674_v8, 0 }
0x1338   :  { %v7739_v48 = vpop.eup %6747 }
0x1339   :  { %v3410_v49 = vsel %vm229_vm2, %v7739_v48, 0.0  ;;  %v7749_v57 = vpop.eup %6749 }
0x133a   :  { %3411 = vadd.xlane.f32.xlu1 %v3410_v49  ;;  %v7753_v25 = vpop.eup %6751 }
0x1341   :  { %3677 = vrot.lane.b32.xlu0 %v7644_v6, %s6968_s28  ;;  %v3401_v6 = vsel %vm229_vm2, %v7749_v57, 0.0 }
0x134b   :  { %3725 = vrot.lane.b32.xlu1 %v7656_v27, %s6968_s28  ;;  %v3407_v27 = vsel %vm229_vm2, %v7753_v25, 0.0 }
0x135b   :  { %v3394_v53 = vpop.xlane.xlu1 %3393  ;;  %v3391_v56 = vpop.xlane.xlu0 %3390 }
0x135c   :  { %6753 = vrcp.f32 %v3394_v53 }
0x135d   :  { %6755 = vrcp.f32 %v3391_v56  ;;  %v5676_v56 = vld [vmem:[%s8117_s3 + $0x18] sm:$0xf] }
0x135f   :  { %v3630_v7 = vpop.permute.xlu1 %3629 }
0x1360   :  { %3402 = vadd.xlane.f32.xlu0 %v3401_v6  ;;  %v5677_v6 = vld [vmem:[%s8117_s3 + $0x1c] sm:$0xf] }
0x1364   :  { %3408 = vadd.xlane.f32.xlu0 %v3407_v27 }
0x1369   :  { %v6754_v58 = vpop.eup %6753 }
0x136a   :  { %v6756_v60 = vpop.eup %6755  ;;  %v3422_v63 = vmul.f32 %v6754_v58, %v6738_v21 }
0x136b   :  { %v3421_v1 = vmul.f32 %v6756_v60, %v6740_v22 }
0x136c   :  { %v3430_v2 = vpack.c.bf16 %v3422_v63, %v3422_v63  ;;  %v3975_v63 = vsel %vm720_vm3, %v5677_v6, 0 }
0x136d   :  { %v3429_v9 = vpack.c.bf16 %v3421_v1, %v3421_v1 }
0x136e   :  { %6277 = vmatmul.mubr.msk.bf16.vlgmr.msra.gmra.mxu0 %vm229_vm2, %v3430_v2 }
0x136f   :  { %6271 = vmatmul.mubr.msk.bf16.vlgmr.msra.gmra.mxu1 %vm229_vm2, %v3429_v9  ;;  %6287 = vmatpush3.bf16.msra.mxu0 %v3587_v10 }
0x1370   :  { %6281 = vmatpush3.bf16.msra.mxu1 %v3539_v26  ;;  %6282 = vmatprep.mubr.msk.bf16.mxu1 %vm6980_vm0, %v6979_v0 }
0x1371   :  { %6288 = vmatprep.mubr.msk.bf16.mxu0 %vm6980_vm0, %v6979_v0  ;;  %6292 = vmatprep.subr.bf16.mxu1 %v6979_v0 }
0x1372   :  { %6298 = vmatprep.subr.bf16.mxu0 %v6979_v0 }
0x137a   :  { %3773 = vrot.lane.b32.xlu0 %v7654_v30, %s6968_s28  ;;  %v3635_v30 = vsel %vm720_vm3, %v3630_v7, 0 }
0x13b3   :  { %v3400_v12 = vpop.xlane.xlu1 %3399 }
0x13b4   :  { %6757 = vrcp.f32 %v3400_v12  ;;  %v3397_v13 = vpop.xlane.xlu0 %3396 }
0x13b5   :  { %6759 = vrcp.f32 %v3397_v13 }
0x13b8   :  { %v3678_v4 = vpop.permute.xlu0 %3677 }
0x13b9   :  { %v3683_v21 = vsel %vm720_vm3, %v3678_v4, 0 }
0x13bb   :  { %v3406_v3 = vpop.xlane.xlu1 %3405 }
0x13bc   :  { %6761 = vrcp.f32 %v3406_v3 }
0x13c1   :  { %v6758_v15 = vpop.eup %6757 }
0x13c2   :  { %v6760_v11 = vpop.eup %6759  ;;  %v3424_v14 = vmul.f32 %v6758_v15, %v6742_v40 }
0x13c3   :  { %v3423_v16 = vmul.f32 %v6760_v11, %v6744_v42  ;;  %v3412_v61 = vpop.xlane.xlu1 %3411 }
0x13c4   :  { %v3432_v19 = vpack.c.bf16 %v3424_v14, %v3424_v14  ;;  %6763 = vrcp.f32 %v3412_v61 }
0x13c5   :  { %v3431_v20 = vpack.c.bf16 %v3423_v16, %v3423_v16 }
0x13c6   :  { %6289 = vmatmul.mubr.msk.bf16.vlgmr.msra.gmra.mxu0 %vm229_vm2, %v3432_v19 }
0x13c7   :  { %6283 = vmatmul.mubr.msk.bf16.vlgmr.msra.gmra.mxu1 %vm229_vm2, %v3431_v20  ;;  %6299 = vmatpush3.bf16.msra.mxu0 %v3683_v21  ;;  %v3726_v38 = vpop.permute.xlu1 %3725 }
0x13c8   :  { %6293 = vmatpush3.bf16.msra.mxu1 %v3635_v30  ;;  %6300 = vmatprep.mubr.msk.bf16.mxu0 %vm6980_vm0, %v6979_v0  ;;  %v3731_v17 = vsel %vm720_vm3, %v3726_v38, 0 }
0x13c9   :  { %v6762_v22 = vpop.eup %6761  ;;  %6310 = vmatprep.subr.bf16.mxu0 %v6979_v0  ;;  %6294 = vmatprep.mubr.msk.bf16.mxu1 %vm6980_vm0, %v6979_v0 }
0x13ca   :  { %v3426_v23 = vmul.f32 %v6762_v22, %v7735_v45  ;;  %6304 = vmatprep.subr.bf16.mxu1 %v6979_v0 }
0x13cc   :  { %v3434_v24 = vpack.c.bf16 %v3426_v23, %v3426_v23 }
0x13ce   :  { %6301 = vmatmul.mubr.msk.bf16.vlgmr.msra.gmra.mxu0 %vm229_vm2, %v3434_v24 }
0x13cf   :  { %6312 = vmatprep.mubr.msk.bf16.mxu0 %vm6980_vm0, %v6979_v0 }
0x13d1   :  { %v6764_v28 = vpop.eup %6763 }
0x13d2   :  { %v3428_v43 = vmul.f32 %v6764_v28, %v7739_v48  ;;  %v5675_v48 = vld [vmem:[%s8117_s3 + $0x14] sm:$0xf] }
0x13d3   :  { %v3881_v49 = vsel %vm720_vm3, %v5675_v48, 0 }
0x13d4   :  { %v3436_v31 = vpack.c.bf16 %v3428_v43, %v3428_v43 }
0x13e9   :  { %v3403_v62 = vpop.xlane.xlu0 %3402 }
0x13ea   :  { %6765 = vrcp.f32 %v3403_v62  ;;  %v6815_v62 = vld [vmem:[#allocation5] sm:$0xff]  }
0x13ed   :  { %v3409_v29 = vpop.xlane.xlu0 %3408 }
0x13ee   :  { %6767 = vrcp.f32 %v3409_v29 }
0x13f1   :  { %v3774_v32 = vpop.permute.xlu0 %3773 }
0x13f2   :  { %v3779_v33 = vsel %vm720_vm3, %v3774_v32, 0 }
0x13f3   :  { %6311 = vmatpush3.bf16.msra.mxu0 %v3779_v33 }
0x13f4   :  { %6322 = vmatprep.subr.bf16.mxu0 %v6979_v0 }
0x13f6   :  { %6313 = vmatmul.mubr.msk.bf16.vlgmr.msra.gmra.mxu0 %vm229_vm2, %v3436_v31 }
0x13f7   :  { %v6766_v44 = vpop.eup %6765  ;;  %6324 = vmatprep.mubr.msk.bf16.mxu0 %vm6980_vm0, %v6979_v0  ;;  %6323 = vmatpush3.bf16.msra.mxu0 %v3881_v49 }
0x13f8   :  { %v3425_v18 = vmul.f32 %v6766_v44, %v7749_v57  ;;  %6334 = vmatprep.subr.bf16.mxu0 %v6979_v0  ;;  %v3928_v57 = vsel %vm720_vm3, %v5676_v56, 0 }
0x13fa   :  { %v3433_v40 = vpack.c.bf16 %v3425_v18, %v3425_v18 }
0x13fb   :  { %v6768_v42 = vpop.eup %6767 }
0x13fc   :  { %6295 = vmatmul.mubr.msk.bf16.vlgmr.msra.gmra.mxu1 %vm229_vm2, %v3433_v40  ;;  %v3427_v47 = vmul.f32 %v6768_v42, %v7753_v25 }
0x13fd   :  { %6305 = vmatpush3.bf16.msra.mxu1 %v3731_v17  ;;  %6306 = vmatprep.mubr.msk.bf16.mxu1 %vm6980_vm0, %v6979_v0 }
0x13fe   :  { %6316 = vmatprep.subr.bf16.mxu1 %v6979_v0  ;;  %v3435_v45 = vpack.c.bf16 %v3427_v47, %v3427_v47 }
0x1404   :  { %6307 = vmatmul.mubr.msk.bf16.vlgmr.msra.gmra.mxu1 %vm229_vm2, %v3435_v45 }
0x1405   :  { %6317 = vmatpush3.bf16.msra.mxu1 %v3834_v46  ;;  %6318 = vmatprep.mubr.msk.bf16.mxu1 %vm6980_vm0, %v6979_v0 }
0x1406   :  { %6328 = vmatprep.subr.bf16.mxu1 %v6979_v0 }
0x142e   :  { %v3527_v59 = vpop.f32.mrf.mxu0 }
0x142f   :  { %v3479_v5 = vpop.f32.mrf.mxu1 }
0x1430   :  { %v3826_v52 = vpack.c.bf16 %v3527_v59, %v3479_v5  ;;  %v6278_v54 = vpop.f32.mrf.mxu0 }
0x1431   :  { %v6272_v50 = vpop.f32.mrf.mxu1 }
0x1432   :  { %6319 = vmatmul.mubr.msk.bf16.vlgmr.msra.gmra.mxu1 %vm229_vm2, %v3826_v52  ;;  %v3530_v55 = vpop.f32.mrf.mxu0 }
0x1433   :  { %v3482_v36 = vpop.f32.mrf.mxu1  ;;  %6330 = vmatprep.mubr.msk.bf16.mxu1 %vm6980_vm0, %v6979_v0  ;;  %6329 = vmatpush3.bf16.msra.mxu1 %v3928_v57 }
0x1434   :  { %v6279_v39 = vpop.f32.mrf.mxu0  ;;  %6340 = vmatprep.subr.bf16.mxu1 %v6979_v0 }
0x1435   :  { %v6273_v53 = vpop.f32.mrf.mxu1 }
0x1486   :  { %v3623_v25 = vpop.f32.mrf.mxu0 }
0x1487   :  { %v3575_v27 = vpop.f32.mrf.mxu1 }
0x1488   :  { %v3827_v58 = vpack.c.bf16 %v3623_v25, %v3575_v27  ;;  %v6290_v60 = vpop.f32.mrf.mxu0 }
0x1489   :  { %v6284_v1 = vpop.f32.mrf.mxu1 }
0x148a   :  { %6325 = vmatmul.mubr.msk.bf16.vlgmr.msra.gmra.mxu0 %vm229_vm2, %v3827_v58  ;;  %v3626_v2 = vpop.f32.mrf.mxu0 }
0x148b   :  { %v3578_v9 = vpop.f32.mrf.mxu1  ;;  %6335 = vmatpush3.bf16.msra.mxu0 %v3975_v63  ;;  %6336 = vmatprep.mubr.msk.bf16.mxu0 %vm6980_vm0, %v6979_v0 }
0x148c   :  { %v6291_v10 = vpop.f32.mrf.mxu0 }
0x148d   :  { %v6285_v26 = vpop.f32.mrf.mxu1 }
0x148e   :  { %v3719_v7 = vpop.f32.mrf.mxu0 }
0x1490   :  { %v6302_v12 = vpop.f32.mrf.mxu0 }
0x1492   :  { %v3722_v13 = vpop.f32.mrf.mxu0 }
0x1494   :  { %v6303_v3 = vpop.f32.mrf.mxu0 }
0x14b6   :  { %v3815_v15 = vpop.f32.mrf.mxu0 }
0x14b8   :  { %v6314_v11 = vpop.f32.mrf.mxu0 }
0x14b9   :  { %v6816_v11 = vld [vmem:[#allocation5 + $0x8] sm:$0xff]  }
0x14ba   :  { %v3818_v14 = vpop.f32.mrf.mxu0 }
0x14bb   :  { %v6653_v14 = vld [vmem:[%s8118_s4 + $0x18] sm:$0xff]  }
0x14bc   :  { %v3671_v16 = vpop.f32.mrf.mxu1  ;;  %v6315_v4 = vpop.f32.mrf.mxu0 }
0x14bd   :  { %v3828_v19 = vpack.c.bf16 %v3719_v7, %v3671_v16  ;;  %v6654_v16 = vld [vmem:[%s8118_s4 + $0x10] sm:$0xff]  }
0x14be   :  { %v6296_v20 = vpop.f32.mrf.mxu1 }
0x14bf   :  { %6331 = vmatmul.mubr.msk.bf16.vlgmr.msra.gmra.mxu1 %vm229_vm2, %v3828_v19 }
0x14c0   :  { %v3674_v21 = vpop.f32.mrf.mxu1  ;;  %6344 = vmatprep.mubr.msk.bf16.mxu1 %vm6980_vm0, %v6979_v0  ;;  %6341 = vmatpush3.bf16.msra.mxu1 %v6653_v14 }
0x14c1   :  { %6342 = vmatprep.subr.bf16.mxu1 %v6979_v0 }
0x14c2   :  { %v6297_v30 = vpop.f32.mrf.mxu1 }
0x14c4   :  { %v3767_v22 = vpop.f32.mrf.mxu1  ;;  %6343 = vmatpush3.bf16.msra.mxu1 %v6654_v16 }
0x14c5   :  { %v3829_v23 = vpack.c.bf16 %v3815_v15, %v3767_v22  ;;  %v6651_v15 = vld [vmem:[#allocation7 + $0x18] sm:$0xff]   ;;  %6356 = vmatprep.subr.bf16.mxu1 %v6979_v0 }
0x14c6   :  { %v6308_v24 = vpop.f32.mrf.mxu1  ;;  %6348 = vmatprep.subr.bf16.mxu0 %v6651_v15 }
0x14c7   :  { %6337 = vmatmul.mubr.msk.bf16.vlgmr.msra.gmra.mxu0 %vm229_vm2, %v3829_v23  ;;  %v7858_v23 = vld [vmem:[%s8125_s11 + $0x4] sm:$0x7] }
0x14c8   :  { %v3770_v61 = vpop.f32.mrf.mxu1  ;;  %6352 = vmatprep.mubr.msk.bf16.mxu0 %vm153_vm1, %v6815_v62  ;;  %6349 = vmatpush3.bf16.msra.mxu0 %v6651_v15 }
0x14c9   :  { %v4063_v61 = vrot.slane %v7858_v23, %v7344_v35 }
0x14ca   :  { %v6309_v28 = vpop.f32.mrf.mxu1 }
0x14cb   :  { %v7865_v28 = vld [vmem:[%s8126_s12 + $0x4] sm:$0x7] }
0x14f2   :  { %v3870_v29 = vpop.f32.mrf.mxu1 }
0x14f3   :  { %v4018_v8 = vsel %vm153_vm1, %v3870_v29, 0.0 }
0x14f4   :  { %v6320_v43 = vpop.f32.mrf.mxu1 }
0x14f6   :  { %v3873_v32 = vpop.f32.mrf.mxu1 }
0x14f7   :  { %v4025_v52 = vsel %vm153_vm1, %v3873_v32, 0.0 }
0x14f8   :  { %v6321_v33 = vpop.f32.mrf.mxu1 }
0x14f9   :  { %v4069_v33 = vrot.slane %v7865_v28, %v7344_v35 }
0x154a   :  { %v3917_v31 = vpop.f32.mrf.mxu0 }
0x154b   :  { %v4019_v17 = vsel %vm153_vm1, %v3917_v31, 0.0 }
0x154c   :  { %v6326_v44 = vpop.f32.mrf.mxu0  ;;  %v4020_v46 = vadd.f32 %v4019_v17, %v4018_v8 }
0x154e   :  { %v3920_v18 = vpop.f32.mrf.mxu0 }
0x154f   :  { %v4026_v49 = vsel %vm153_vm1, %v3920_v18, 0.0 }
0x1550   :  { %v6327_v38 = vpop.f32.mrf.mxu0  ;;  %v4027_v55 = vadd.f32 %v4026_v49, %v4025_v52 }
0x157f   :  { %v3964_v40 = vpop.f32.mrf.mxu1 }
0x1580   :  { %v4021_v45 = vsel %vm153_vm1, %v3964_v40, 0.0 }
0x1581   :  { %v6332_v42 = vpop.f32.mrf.mxu1  ;;  %v4022_v59 = vadd.f32 %v4021_v45, %v4020_v46 }
0x1583   :  { %v3967_v47 = vpop.f32.mrf.mxu1 }
0x1584   :  { %v4028_v54 = vsel %vm153_vm1, %v3967_v47, 0.0 }
0x1585   :  { %v6333_v48 = vpop.f32.mrf.mxu1  ;;  %v4029_v53 = vadd.f32 %v4028_v54, %v4027_v55 }
0x1587   :  { %v4011_v5 = vpop.f32.mrf.mxu0 }
0x1588   :  { %v4023_v50 = vsel %vm153_vm1, %v4011_v5, 0.0 }
0x1589   :  { %v4024_v36 = vadd.f32 %v4023_v50, %v4022_v59  ;;  %v6338_v39 = vpop.f32.mrf.mxu0 }
0x158b   :  { %v4032_v56 = vadd.f32 %v4024_v36, %v7621_v34  ;;  %v4014_v57 = vpop.f32.mrf.mxu0 }
0x158c   :  { %v4030_v6 = vsel %vm153_vm1, %v4014_v57, 0.0 }
0x158d   :  { %v4031_v25 = vadd.f32 %v4030_v6, %v4029_v53  ;;  %v6339_v27 = vpop.f32.mrf.mxu0  ;;  %v4034_v58 = vsel %vm153_vm1, %v4032_v56, 0.0 }
0x158e   :  { %4035 = vadd.xlane.f32.xlu1 %v4034_v58 }
0x158f   :  { %v4033_v60 = vadd.f32 %v4031_v25, %v7623_v51  ;;  %v6652_v51 = vld [vmem:[#allocation7 + $0x10] sm:$0xff]  }
0x1590   :  { %6350 = vmatprep.subr.bf16.mxu0 %v6652_v51 }
0x1591   :  { %v4037_v63 = vsel %vm153_vm1, %v4033_v60, 0.0  ;;  %6351 = vmatpush3.bf16.msra.mxu0 %v6652_v51 }
0x1592   :  { %4038 = vadd.xlane.f32.xlu0 %v4037_v63  ;;  %6362 = vmatprep.subr.bf16.mxu0 %v6979_v0 }
0x1594   :  { %6353 = vmatmul.mubr.msk.bf16.vlgmr.msra.gmra.mxu0 %vm153_vm1, %v6816_v11 }
0x1595   :  { %6364 = vmatprep.mubr.msk.bf16.mxu0 %vm6980_vm0, %v6979_v0 }
0x1617   :  { %v4036_v1 = vpop.xlane.xlu1 %4035 }
0x1618   :  { %v4040_v2 = vmul.f32 0.03125, %v4036_v1 }
0x161a   :  { %v4042_v9 = vsub.f32 %v4032_v56, %v4040_v2 }
0x161b   :  { %v4039_v10 = vpop.xlane.xlu0 %4038 }
0x161c   :  { %v4041_v26 = vmul.f32 0.03125, %v4039_v10  ;;  %v4044_v7 = vmul.f32 %v4042_v9, %v4042_v9 }
0x161e   :  { %v4043_v34 = vsub.f32 %v4033_v60, %v4041_v26  ;;  %v4046_v12 = vsel %vm153_vm1, %v4044_v7, 0.0 }
0x161f   :  { %4047 = vadd.xlane.f32.xlu0 %v4046_v12 }
0x1620   :  { %v4045_v13 = vmul.f32 %v4043_v34, %v4043_v34 }
0x1622   :  { %v4049_v3 = vsel %vm153_vm1, %v4045_v13, 0.0 }
0x1623   :  { %4050 = vadd.xlane.f32.xlu1 %v4049_v3 }
0x1654   :  { %v6354_v40 = vpop.f32.mrf.mxu0 }
0x1656   :  { %v4205_v42 = vpop.f32.mrf.mxu0 }
0x1658   :  { %v6355_v17 = vpop.f32.mrf.mxu0 }
0x1659   :  { %v6625_v47 = vpack.i.bf16 %v6355_v17, %v6354_v40  ;;  %v7878_v8 = vpack.c.bf16 %v6355_v17, %v6354_v40 }
0x165a   :  { %v4208_v35 = vpop.f32.mrf.mxu0 }
0x165b   :  { %v6590_v45 = vpack.i.bf16 %v4208_v35, %v4205_v42  ;;  %6596 = vrot.lane.b32.xlu1 %v6625_v47, %s6982_s6  ;;  %v4268_v46 = vpack.c.bf16 %v4208_v35, %v4205_v42  ;;  %v4326_v48 = vsel %vm229_vm2, %v7878_v8, 0 }
0x165c   :  { %6363 = vmatpush3.bf16.xpose.msra.mxu0 %v4326_v48 }
0x165d   :  { %6591 = vrot.lane.b32.xlu0 %v6590_v45, %s6982_s6  ;;  %v4280_v49 = vsel %vm229_vm2, %v4268_v46, 0  ;;  %6374 = vmatprep.subr.bf16.mxu0 %v6979_v0 }
0x1661   :  { %6601 = vrot.lane.b32.xlu0 %v6590_v45, %s6984_s14 }
0x16a8   :  { %v4048_v4 = vpop.xlane.xlu0 %4047 }
0x16a9   :  { %v4052_v19 = vmul.f32 0.03125, %v4048_v4 }
0x16ab   :  { %v4054_v20 = vadd.f32 1e-05, %v4052_v19 }
0x16ac   :  { %v4051_v21 = vpop.xlane.xlu1 %4050 }
0x16ad   :  { %6769 = vrsqrt.f32 %v4054_v20  ;;  %v4053_v30 = vmul.f32 0.03125, %v4051_v21 }
0x16af   :  { %v4055_v22 = vadd.f32 1e-05, %v4053_v30 }
0x16b1   :  { %6771 = vrsqrt.f32 %v4055_v22 }
0x16ba   :  { %v6770_v24 = vpop.eup %6769 }
0x16bb   :  { %v4058_v62 = vmul.f32 %v6770_v24, %v4042_v9 }
0x16bd   :  { %v4064_v43 = vmul.f32 %v4063_v61, %v4058_v62 }
0x16be   :  { %v6772_v29 = vpop.eup %6771 }
0x16bf   :  { %v4059_v32 = vmul.f32 %v6772_v29, %v4043_v34  ;;  %v7869_v44 = vadd.f32 %v4069_v33, %v4064_v43 }
0x16c1   :  { %v4065_v31 = vmul.f32 %v4063_v61, %v4059_v32 }
0x16c3   :  { %v7871_v18 = vadd.f32 %v4069_v33, %v4065_v31 }
0x16c5   :  { %v4077_v38 = vpack.c.bf16 %v7871_v18, %v7869_v44 }
0x16c7   :  { %6345 = vmatmul.mubr.msk.bf16.vlgmr.msra.gmra.mxu1 %vm153_vm1, %v4077_v38 }
0x16c8   :  { %6358 = vmatprep.mubr.msk.bf16.mxu1 %vm6980_vm0, %v6979_v0  ;;  %6357 = vmatpush3.bf16.xpose.msra.mxu1 %v4280_v49 }
0x16c9   :  { %6368 = vmatprep.subr.bf16.mxu1 %v6979_v0 }
0x16cd   :  { %v6597_v54 = vpop.permute.xlu1 %6596 }
0x16ce   :  { %v6599_v55 = vunpack.i.h.bf16 %v6597_v54  ;;  %v6598_v36 = vunpack.i.l.bf16 %v6597_v54 }
0x16cf   :  { %v6592_v59 = vpop.permute.xlu0 %6591 }
0x16d0   :  { %v6594_v5 = vunpack.i.h.bf16 %v6592_v59  ;;  %v6593_v52 = vunpack.i.l.bf16 %v6592_v59  ;;  %v7892_v6 = vpack.c.bf16 %v6599_v55, %v6598_v36 }
0x16d2   :  { %v7888_v50 = vpack.c.bf16 %v6594_v5, %v6593_v52  ;;  %v4418_v63 = vsel %vm229_vm2, %v7892_v6, 0 }
0x16d3   :  { %v6602_v1 = vpop.permute.xlu0 %6601 }
0x16d4   :  { %v4372_v56 = vsel %vm229_vm2, %v7888_v50, 0  ;;  %v6604_v2 = vunpack.i.h.bf16 %v6602_v1  ;;  %v6603_v9 = vunpack.i.l.bf16 %v6602_v1 }
0x16d6   :  { %v7911_v7 = vpack.c.bf16 %v6604_v2, %v6603_v9 }
0x16d8   :  { %v4464_v16 = vsel %vm229_vm2, %v7911_v7, 0 }
0x1787   :  { %v4127_v39 = vpop.f32.mrf.mxu1 }
0x1788   :  { %v4260_v53 = vpack.c.bf16 %v4127_v39, %v4127_v39 }
0x1789   :  { %v6346_v57 = vpop.f32.mrf.mxu1 }
0x178a   :  { %6359 = vmatmul.mubr.msk.bf16.vlgmr.msra.gmra.mxu1 %vm229_vm2, %v4260_v53 }
0x178b   :  { %v4130_v25 = vpop.f32.mrf.mxu1  ;;  %6369 = vmatpush3.bf16.xpose.msra.mxu1 %v4372_v56  ;;  %6370 = vmatprep.mubr.msk.bf16.mxu1 %vm6980_vm0, %v6979_v0 }
0x178c   :  { %v6620_v27 = vpack.i.bf16 %v4130_v25, %v4127_v39  ;;  %v4261_v58 = vpack.c.bf16 %v4130_v25, %v4130_v25  ;;  %6380 = vmatprep.subr.bf16.mxu1 %v6979_v0 }
0x178d   :  { %v6347_v60 = vpop.f32.mrf.mxu1 }
0x178e   :  { %6621 = vrot.lane.b32.xlu0 %v6620_v27, %s6984_s14  ;;  %6606 = vrot.lane.b32.xlu1 %v6620_v27, %s6982_s6 }
0x178f   :  { %6365 = vmatmul.mubr.msk.bf16.vlgmr.msra.gmra.mxu0 %vm229_vm2, %v4261_v58 }
0x1790   :  { %6375 = vmatpush3.bf16.xpose.msra.mxu0 %v4418_v63  ;;  %6376 = vmatprep.mubr.msk.bf16.mxu0 %vm6980_vm0, %v6979_v0 }
0x1791   :  { %6386 = vmatprep.subr.bf16.mxu0 %v6979_v0 }
0x1792   :  { %6626 = vrot.lane.b32.xlu0 %v6625_v47, %s6981_s27  ;;  %6611 = vrot.lane.b32.xlu1 %v6625_v47, %s6984_s14 }
0x1796   :  { %6616 = vrot.lane.b32.xlu1 %v6590_v45, %s6981_s27 }
0x179a   :  { %6631 = vrot.lane.b32.xlu1 %v6620_v27, %s6981_s27 }
0x179e   :  { %4741 = vrot.lane.b32.xlu1 %v4268_v46, %s6983_s30 }
0x1800   :  { %v6622_v10 = vpop.permute.xlu0 %6621  ;;  %v6607_v26 = vpop.permute.xlu1 %6606 }
0x1801   :  { %v6609_v34 = vunpack.i.h.bf16 %v6607_v26  ;;  %v6608_v12 = vunpack.i.l.bf16 %v6607_v26  ;;  %v6623_v4 = vunpack.i.l.bf16 %v6622_v10  ;;  %v6624_v62 = vunpack.i.h.bf16 %v6622_v10 }
0x1803   :  { %v4263_v13 = vpack.c.bf16 %v6609_v34, %v6609_v34  ;;  %v4262_v3 = vpack.c.bf16 %v6608_v12, %v6608_v12  ;;  %v4264_v29 = vpack.c.bf16 %v6623_v4, %v6623_v4  ;;  %v4265_v38 = vpack.c.bf16 %v6624_v62, %v6624_v62 }
0x1804   :  { %v6612_v15 = vpop.permute.xlu1 %6611  ;;  %v6627_v51 = vpop.permute.xlu0 %6626 }
0x1805   :  { %v6614_v11 = vunpack.i.h.bf16 %v6612_v15  ;;  %v6613_v14 = vunpack.i.l.bf16 %v6612_v15  ;;  %6371 = vmatmul.mubr.msk.bf16.vlgmr.msra.gmra.mxu1 %vm229_vm2, %v4262_v3  ;;  %6377 = vmatmul.mubr.msk.bf16.vlgmr.msra.gmra.mxu0 %vm229_vm2, %v4263_v13  ;;  %v6629_v20 = vunpack.i.h.bf16 %v6627_v51  ;;  %v6628_v30 = vunpack.i.l.bf16 %v6627_v51 }
0x1806   :  { %6381 = vmatpush3.bf16.xpose.msra.mxu1 %v4464_v16  ;;  %6382 = vmatprep.mubr.msk.bf16.mxu1 %vm6980_vm0, %v6979_v0 }
0x1807   :  { %v7919_v19 = vpack.c.bf16 %v6614_v11, %v6613_v14  ;;  %6392 = vmatprep.subr.bf16.mxu1 %v6979_v0  ;;  %6388 = vmatprep.mubr.msk.bf16.mxu0 %vm6980_vm0, %v6979_v0  ;;  %v7929_v33 = vpack.c.bf16 %v6629_v20, %v6628_v30 }
0x1808   :  { %v6617_v21 = vpop.permute.xlu1 %6616 }
0x1809   :  { %v6619_v22 = vunpack.i.h.bf16 %v6617_v21  ;;  %v6618_v24 = vunpack.i.l.bf16 %v6617_v21  ;;  %v4510_v61 = vsel %vm229_vm2, %v7919_v19, 0  ;;  %v4602_v42 = vsel %vm229_vm2, %v7929_v33, 0 }
0x180a   :  { %6387 = vmatpush3.bf16.xpose.msra.mxu0 %v4510_v61 }
0x180b   :  { %v7926_v43 = vpack.c.bf16 %v6619_v22, %v6618_v24  ;;  %6398 = vmatprep.subr.bf16.mxu0 %v6979_v0 }
0x180c   :  { %v6632_v32 = vpop.permute.xlu1 %6631 }
0x180d   :  { %6383 = vmatmul.mubr.msk.bf16.vlgmr.msra.gmra.mxu1 %vm229_vm2, %v4264_v29  ;;  %v4556_v31 = vsel %vm229_vm2, %v7926_v43, 0  ;;  %v6633_v40 = vunpack.i.l.bf16 %v6632_v32  ;;  %v6634_v17 = vunpack.i.h.bf16 %v6632_v32 }
0x180e   :  { %6393 = vmatpush3.bf16.xpose.msra.mxu1 %v4556_v31  ;;  %6394 = vmatprep.mubr.msk.bf16.mxu1 %vm6980_vm0, %v6979_v0 }
0x180f   :  { %6404 = vmatprep.subr.bf16.mxu1 %v6979_v0  ;;  %v4266_v47 = vpack.c.bf16 %v6633_v40, %v6633_v40  ;;  %v4267_v45 = vpack.c.bf16 %v6634_v17, %v6634_v17 }
0x1810   :  { %v4742_v35 = vpop.permute.xlu1 %4741 }
0x1811   :  { %6389 = vmatmul.mubr.msk.bf16.vlgmr.msra.gmra.mxu0 %vm229_vm2, %v4265_v38 }
0x1812   :  { %6399 = vmatpush3.bf16.xpose.msra.mxu0 %v4602_v42  ;;  %6400 = vmatprep.mubr.msk.bf16.mxu0 %vm6980_vm0, %v6979_v0 }
0x1813   :  { %6410 = vmatprep.subr.bf16.mxu0 %v6979_v0 }
0x1815   :  { %6395 = vmatmul.mubr.msk.bf16.vlgmr.msra.gmra.mxu1 %vm229_vm2, %v4266_v47 }
0x1816   :  { %6405 = vmatpush3.bf16.msra.mxu1 %v4742_v35  ;;  %6406 = vmatprep.mubr.msk.bf16.mxu1 %vm6980_vm0, %v6979_v0 }
0x1817   :  { %6416 = vmatprep.subr.bf16.mxu1 %v6979_v0 }
0x1819   :  { %6401 = vmatmul.mubr.msk.bf16.vlgmr.msra.gmra.mxu0 %vm229_vm2, %v4267_v45 }
0x181a   :  { %6412 = vmatprep.mubr.msk.bf16.mxu0 %vm6980_vm0, %v6979_v0 }
0x184a   :  { %v4316_v46 = vpop.f32.mrf.mxu1 }
0x184b   :  { %v4644_v48 = vsel %vm1937_vm4, %v4316_v46, -inf }
0x184c   :  { %4645 = vmax.xlane.f32.xlu0 %v4644_v48  ;;  %v6360_v49 = vpop.f32.mrf.mxu1 }
0x184e   :  { %v4319_v59 = vpop.f32.mrf.mxu1 }
0x184f   :  { %v4362_v5 = vpop.f32.mrf.mxu0 }
0x1850   :  { %v4647_v52 = vsel %vm1937_vm4, %v4362_v5, -inf  ;;  %v6361_v54 = vpop.f32.mrf.mxu1 }
0x1851   :  { %4648 = vmax.xlane.f32.xlu1 %v4647_v52  ;;  %v6366_v55 = vpop.f32.mrf.mxu0 }
0x1853   :  { %v4365_v36 = vpop.f32.mrf.mxu0 }
0x1855   :  { %v6367_v39 = vpop.f32.mrf.mxu0 }
0x18c5   :  { %v4408_v53 = vpop.f32.mrf.mxu1  ;;  %v4454_v56 = vpop.f32.mrf.mxu0 }
0x18c6   :  { %v4650_v57 = vsel %vm1937_vm4, %v4408_v53, -inf  ;;  %v4653_v63 = vsel %vm1937_vm4, %v4454_v56, -inf }
0x18c7   :  { %v6378_v25 = vpop.f32.mrf.mxu0  ;;  %4651 = vmax.xlane.f32.xlu0 %v4650_v57  ;;  %v6372_v27 = vpop.f32.mrf.mxu1 }
0x18c9   :  { %v4411_v58 = vpop.f32.mrf.mxu1  ;;  %v4457_v60 = vpop.f32.mrf.mxu0 }
0x18cb   :  { %v6379_v1 = vpop.f32.mrf.mxu0  ;;  %4654 = vmax.xlane.f32.xlu0 %v4653_v63  ;;  %v6373_v2 = vpop.f32.mrf.mxu1 }
0x18cd   :  { %v7954_v9 = vpop.f32.mrf.mxu1 }
0x18ce   :  { %v4656_v10 = vsel %vm1937_vm4, %v7954_v9, -inf }
0x18cf   :  { %4657 = vmax.xlane.f32.xlu1 %v4656_v10  ;;  %v6384_v26 = vpop.f32.mrf.mxu1 }
0x18d1   :  { %v4503_v34 = vpop.f32.mrf.mxu1  ;;  %v7958_v12 = vpop.f32.mrf.mxu0 }
0x18d2   :  { %v4659_v13 = vsel %vm1937_vm4, %v7958_v12, -inf }
0x18d3   :  { %v6390_v3 = vpop.f32.mrf.mxu0  ;;  %4660 = vmax.xlane.f32.xlu0 %v4659_v13  ;;  %v6385_v15 = vpop.f32.mrf.mxu1 }
0x18d5   :  { %v4549_v51 = vpop.f32.mrf.mxu0  ;;  %v4592_v11 = vpop.f32.mrf.mxu1 }
0x18d6   :  { %v4662_v16 = vsel %vm1937_vm4, %v4592_v11, -inf  ;;  %v4646_v32 = vpop.xlane.xlu0 %4645 }
0x18d7   :  { %v6391_v14 = vpop.f32.mrf.mxu0  ;;  %4663 = vmax.xlane.f32.xlu1 %v4662_v16  ;;  %v6396_v4 = vpop.f32.mrf.mxu1  ;;  %v4668_v38 = vsub.f32 %v4316_v46, %v4646_v32 }
0x18d9   :  { %v4638_v20 = vpop.f32.mrf.mxu0  ;;  %v4595_v21 = vpop.f32.mrf.mxu1  ;;  %v4676_v42 = vmul.f32 1.442695, %v4668_v38 }
0x18da   :  { %v4665_v30 = vsel %vm1937_vm4, %v4638_v20, -inf  ;;  %v4649_v29 = vpop.xlane.xlu1 %4648 }
0x18db   :  { %v6402_v22 = vpop.f32.mrf.mxu0  ;;  %4666 = vmax.xlane.f32.xlu0 %v4665_v30  ;;  %v6397_v24 = vpop.f32.mrf.mxu1  ;;  %v4669_v31 = vsub.f32 %v4362_v5, %v4649_v29 }
0x18dd   :  { %v4641_v61 = vpop.f32.mrf.mxu0  ;;  %v4678_v40 = vmul.f32 1.442695, %v4669_v31 }
0x18df   :  { %v6403_v62 = vpop.f32.mrf.mxu0  ;;  %6773 = vpow2.f32 %v4678_v40 }
0x18e0   :  { %6775 = vpow2.f32 %v4676_v42 }
0x18e8   :  { %4835 = vrot.lane.b32.xlu1 %v7888_v50, %s6983_s30 }
0x18ec   :  { %4882 = vrot.lane.b32.xlu1 %v7892_v6, %s6983_s30  ;;  %v6774_v17 = vpop.eup %6773 }
0x18ed   :  { %v6776_v47 = vpop.eup %6775  ;;  %v4695_v35 = vsel %vm1937_vm4, %v6774_v17, 0.0 }
0x18ee   :  { %v4692_v50 = vsel %vm1937_vm4, %v6776_v47, 0.0 }
0x18f1   :  { %4788 = vrot.lane.b32.xlu0 %v7878_v8, %s6983_s30 }
0x1910   :  { %4696 = vadd.xlane.f32.xlu0 %v4695_v35  ;;  %4693 = vadd.xlane.f32.xlu1 %v4692_v50 }
0x1950   :  { %v4652_v6 = vpop.xlane.xlu0 %4651 }
0x1951   :  { %v4670_v45 = vsub.f32 %v4408_v53, %v4652_v6 }
0x1953   :  { %v4680_v48 = vmul.f32 1.442695, %v4670_v45 }
0x1954   :  { %v4655_v8 = vpop.xlane.xlu0 %4654 }
0x1955   :  { %6777 = vpow2.f32 %v4680_v48  ;;  %v4671_v49 = vsub.f32 %v4454_v56, %v4655_v8 }
0x1957   :  { %v4682_v59 = vmul.f32 1.442695, %v4671_v49 }
0x1958   :  { %v4658_v53 = vpop.xlane.xlu1 %4657 }
0x1959   :  { %6779 = vpow2.f32 %v4682_v59  ;;  %v4672_v56 = vsub.f32 %v7954_v9, %v4658_v53 }
0x195b   :  { %v4684_v27 = vmul.f32 1.442695, %v4672_v56  ;;  %v5118_v56 = vld [vmem:[#allocation8 + $0x14] sm:$0xf] }
0x195c   :  { %v4661_v46 = vpop.xlane.xlu0 %4660 }
0x195d   :  { %v4673_v25 = vsub.f32 %v7958_v12, %v4661_v46  ;;  %6781 = vpow2.f32 %v4684_v27 }
0x195f   :  { %v4686_v60 = vmul.f32 1.442695, %v4673_v25 }
0x1960   :  { %v4664_v57 = vpop.xlane.xlu1 %4663 }
0x1961   :  { %v4674_v58 = vsub.f32 %v4592_v11, %v4664_v57  ;;  %6783 = vpow2.f32 %v4686_v60  ;;  %v5176_v57 = vsel %vm720_vm3, %v5118_v56, 0 }
0x1962   :  { %v7972_v5 = vpop.eup %6777 }
0x1963   :  { %v4698_v52 = vsel %vm1937_vm4, %v7972_v5, 0.0  ;;  %v4688_v63 = vmul.f32 1.442695, %v4674_v58 }
0x1964   :  { %v4667_v54 = vpop.xlane.xlu0 %4666  ;;  %4699 = vadd.xlane.f32.xlu1 %v4698_v52  ;;  %v5117_v52 = vld [vmem:[#allocation8 + $0x10] sm:$0xf] }
0x1965   :  { %v4675_v1 = vsub.f32 %v4638_v20, %v4667_v54  ;;  %6785 = vpow2.f32 %v4688_v63 }
0x1966   :  { %v7976_v55 = vpop.eup %6779 }
0x1967   :  { %v4701_v36 = vsel %vm1937_vm4, %v7976_v55, 0.0  ;;  %v4690_v2 = vmul.f32 1.442695, %v4675_v1 }
0x1968   :  { %4702 = vadd.xlane.f32.xlu0 %v4701_v36  ;;  %v4789_v39 = vpop.permute.xlu0 %4788 }
0x1969   :  { %6411 = vmatpush3.bf16.msra.mxu0 %v4789_v39  ;;  %6787 = vpow2.f32 %v4690_v2  ;;  %v5129_v39 = vsel %vm720_vm3, %v5117_v52, 0 }
0x196a   :  { %6422 = vmatprep.subr.bf16.mxu0 %v6979_v0  ;;  %v6782_v10 = vpop.eup %6781 }
0x196e   :  { %v7987_v34 = vpop.eup %6783 }
0x196f   :  { %v4707_v3 = vsel %vm1937_vm4, %v7987_v34, 0.0 }
0x1972   :  { %v7990_v9 = vpop.eup %6785 }
0x1973   :  { %v4710_v15 = vsel %vm1937_vm4, %v7990_v9, 0.0 }
0x1975   :  { %4976 = vrot.lane.b32.xlu1 %v7919_v19, %s6983_s30  ;;  %v4836_v19 = vpop.permute.xlu1 %4835 }
0x1976   :  { %v7996_v51 = vpop.eup %6787 }
0x1977   :  { %v4713_v11 = vsel %vm1937_vm4, %v7996_v51, 0.0 }
0x1979   :  { %v4883_v26 = vpop.permute.xlu1 %4882 }
0x197e   :  { %4929 = vrot.lane.b32.xlu0 %v7911_v7, %s6983_s30  ;;  %v4704_v7 = vsel %vm1937_vm4, %v6782_v10, 0.0 }
0x1999   :  { %v4697_v12 = vpop.xlane.xlu0 %4696  ;;  %4705 = vadd.xlane.f32.xlu1 %v4704_v7  ;;  %v4694_v13 = vpop.xlane.xlu1 %4693 }
0x199a   :  { %6789 = vrcp.f32 %v4697_v12  ;;  %v5120_v12 = vld [vmem:[#allocation8 + $0x1c] sm:$0xf] }
0x199b   :  { %6791 = vrcp.f32 %v4694_v13 }
0x199d   :  { %4708 = vadd.xlane.f32.xlu0 %v4707_v3  ;;  %4711 = vadd.xlane.f32.xlu1 %v4710_v15 }
0x19a1   :  { %4714 = vadd.xlane.f32.xlu0 %v4713_v11 }
0x19a7   :  { %v6790_v14 = vpop.eup %6789 }
0x19a8   :  { %v6792_v16 = vpop.eup %6791  ;;  %v4725_v4 = vmul.f32 %v6790_v14, %v6774_v17 }
0x19a9   :  { %v4724_v20 = vmul.f32 %v6792_v16, %v6776_v47 }
0x19aa   :  { %v4733_v21 = vpack.c.bf16 %v4725_v4, %v4725_v4 }
0x19ab   :  { %v4732_v30 = vpack.c.bf16 %v4724_v20, %v4724_v20 }
0x19ac   :  { %6413 = vmatmul.mubr.msk.bf16.vlgmr.msra.gmra.mxu0 %vm1937_vm4, %v4733_v21 }
0x19ad   :  { %6407 = vmatmul.mubr.msk.bf16.vlgmr.msra.gmra.mxu1 %vm1937_vm4, %v4732_v30  ;;  %6423 = vmatpush3.bf16.msra.mxu0 %v4883_v26  ;;  %v5119_v26 = vld [vmem:[#allocation8 + $0x18] sm:$0xf] }
0x19ae   :  { %6417 = vmatpush3.bf16.msra.mxu1 %v4836_v19  ;;  %5070 = vrot.lane.b32.xlu1 %v7929_v33, %s6983_s30 }
0x19af   :  { %6418 = vmatprep.mubr.msk.bf16.mxu1 %vm6980_vm0, %v6979_v0  ;;  %6428 = vmatprep.subr.bf16.mxu1 %v6979_v0 }
0x19b0   :  { %6424 = vmatprep.mubr.msk.bf16.mxu0 %vm6980_vm0, %v6979_v0  ;;  %6434 = vmatprep.subr.bf16.mxu0 %v6979_v0 }
0x19b7   :  { %5023 = vrot.lane.b32.xlu0 %v7926_v43, %s6983_s30 }
0x19ed   :  { %v4700_v22 = vpop.xlane.xlu1 %4699 }
0x19ee   :  { %6793 = vrcp.f32 %v4700_v22 }
0x19f1   :  { %v4703_v24 = vpop.xlane.xlu0 %4702  ;;  %v4977_v43 = vpop.permute.xlu1 %4976 }
0x19f2   :  { %6795 = vrcp.f32 %v4703_v24 }
0x19f5   :  { %v4930_v31 = vpop.permute.xlu0 %4929 }
0x19fb   :  { %v6794_v61 = vpop.eup %6793 }
0x19fc   :  { %v4726_v33 = vmul.f32 %v6794_v61, %v7972_v5 }
0x19fe   :  { %v4734_v62 = vpack.c.bf16 %v4726_v33, %v4726_v33 }
0x19ff   :  { %v6796_v29 = vpop.eup %6795 }
0x1a00   :  { %v4727_v32 = vmul.f32 %v6796_v29, %v7976_v55  ;;  %6419 = vmatmul.mubr.msk.bf16.vlgmr.msra.gmra.mxu1 %vm1937_vm4, %v4734_v62 }
0x1a01   :  { %6429 = vmatpush3.bf16.msra.mxu1 %v4930_v31  ;;  %6430 = vmatprep.mubr.msk.bf16.mxu1 %vm6980_vm0, %v6979_v0 }
0x1a02   :  { %v4735_v38 = vpack.c.bf16 %v4727_v32, %v4727_v32  ;;  %6440 = vmatprep.subr.bf16.mxu1 %v6979_v0 }
0x1a04   :  { %6425 = vmatmul.mubr.msk.bf16.vlgmr.msra.gmra.mxu0 %vm1937_vm4, %v4735_v38 }
0x1a05   :  { %6435 = vmatpush3.bf16.msra.mxu0 %v4977_v43  ;;  %6436 = vmatprep.mubr.msk.bf16.mxu0 %vm6980_vm0, %v6979_v0 }
0x1a06   :  { %6446 = vmatprep.subr.bf16.mxu0 %v6979_v0 }
0x1a22   :  { %v4706_v40 = vpop.xlane.xlu1 %4705 }
0x1a23   :  { %6797 = vrcp.f32 %v4706_v40 }
0x1a26   :  { %v4709_v42 = vpop.xlane.xlu0 %4708  ;;  %v4712_v17 = vpop.xlane.xlu1 %4711 }
0x1a27   :  { %6799 = vrcp.f32 %v4709_v42 }
0x1a28   :  { %6801 = vrcp.f32 %v4712_v17 }
0x1a2a   :  { %v4715_v47 = vpop.xlane.xlu0 %4714  ;;  %v5071_v54 = vpop.permute.xlu1 %5070 }
0x1a2b   :  { %6803 = vrcp.f32 %v4715_v47 }
0x1a2e   :  { %v5024_v49 = vpop.permute.xlu0 %5023 }
0x1a30   :  { %v6798_v35 = vpop.eup %6797 }
0x1a31   :  { %v4728_v50 = vmul.f32 %v6798_v35, %v6782_v10 }
0x1a33   :  { %v4736_v6 = vpack.c.bf16 %v4728_v50, %v4728_v50 }
0x1a34   :  { %v6800_v45 = vpop.eup %6799 }
0x1a35   :  { %v6802_v48 = vpop.eup %6801  ;;  %v4729_v8 = vmul.f32 %v6800_v45, %v7987_v34  ;;  %6431 = vmatmul.mubr.msk.bf16.vlgmr.msra.gmra.mxu1 %vm1937_vm4, %v4736_v6  ;;  %v5223_v34 = vsel %vm720_vm3, %v5119_v26, 0 }
0x1a36   :  { %6441 = vmatpush3.bf16.msra.mxu1 %v5024_v49  ;;  %6442 = vmatprep.mubr.msk.bf16.mxu1 %vm6980_vm0, %v6979_v0  ;;  %v4730_v46 = vmul.f32 %v6802_v48, %v7990_v9 }
0x1a37   :  { %v4737_v59 = vpack.c.bf16 %v4729_v8, %v4729_v8  ;;  %6452 = vmatprep.subr.bf16.mxu1 %v6979_v0 }
0x1a38   :  { %v6804_v5 = vpop.eup %6803  ;;  %v4738_v55 = vpack.c.bf16 %v4730_v46, %v4730_v46 }
0x1a39   :  { %6437 = vmatmul.mubr.msk.bf16.vlgmr.msra.gmra.mxu0 %vm1937_vm4, %v4737_v59  ;;  %v4731_v36 = vmul.f32 %v6804_v5, %v7996_v51  ;;  %v5270_v51 = vsel %vm720_vm3, %v5120_v12, 0 }
0x1a3a   :  { %6447 = vmatpush3.bf16.msra.mxu0 %v5071_v54  ;;  %6448 = vmatprep.mubr.msk.bf16.mxu0 %vm6980_vm0, %v6979_v0 }
0x1a3b   :  { %6458 = vmatprep.subr.bf16.mxu0 %v6979_v0  ;;  %v4739_v53 = vpack.c.bf16 %v4731_v36, %v4731_v36 }
0x1a3d   :  { %6443 = vmatmul.mubr.msk.bf16.vlgmr.msra.gmra.mxu1 %vm1937_vm4, %v4738_v55 }
0x1a3e   :  { %6453 = vmatpush3.bf16.msra.mxu1 %v5129_v39  ;;  %6454 = vmatprep.mubr.msk.bf16.mxu1 %vm6980_vm0, %v6979_v0 }
0x1a3f   :  { %6464 = vmatprep.subr.bf16.mxu1 %v6979_v0 }
0x1a41   :  { %6449 = vmatmul.mubr.msk.bf16.vlgmr.msra.gmra.mxu0 %vm1937_vm4, %v4739_v53 }
0x1a42   :  { %6460 = vmatprep.mubr.msk.bf16.mxu0 %vm6980_vm0, %v6979_v0  ;;  %6459 = vmatpush3.bf16.msra.mxu0 %v5176_v57 }
0x1a43   :  { %6470 = vmatprep.subr.bf16.mxu0 %v6979_v0 }
0x1a6c   :  { %v4828_v25 = vpop.f32.mrf.mxu0 }
0x1a6d   :  { %v4781_v27 = vpop.f32.mrf.mxu1 }
0x1a6e   :  { %v5121_v58 = vpack.c.bf16 %v4828_v25, %v4781_v27  ;;  %v6414_v60 = vpop.f32.mrf.mxu0 }
0x1a6f   :  { %v6408_v63 = vpop.f32.mrf.mxu1 }
0x1a70   :  { %6455 = vmatmul.mubr.msk.bf16.vlgmr.msra.gmra.mxu1 %vm229_vm2, %v5121_v58  ;;  %v4831_v1 = vpop.f32.mrf.mxu0 }
0x1a71   :  { %v4784_v2 = vpop.f32.mrf.mxu1  ;;  %6466 = vmatprep.mubr.msk.bf16.mxu1 %vm6980_vm0, %v6979_v0  ;;  %6465 = vmatpush3.bf16.msra.mxu1 %v5223_v34 }
0x1a72   :  { %v6415_v19 = vpop.f32.mrf.mxu0  ;;  %6476 = vmatprep.subr.bf16.mxu1 %v6979_v0 }
0x1a73   :  { %v6409_v10 = vpop.f32.mrf.mxu1 }
0x1ac0   :  { %v4875_v7 = vpop.f32.mrf.mxu1 }
0x1ac2   :  { %v6420_v9 = vpop.f32.mrf.mxu1 }
0x1ac4   :  { %v4878_v13 = vpop.f32.mrf.mxu1  ;;  %v4922_v3 = vpop.f32.mrf.mxu0 }
0x1ac5   :  { %v5122_v15 = vpack.c.bf16 %v4922_v3, %v4875_v7 }
0x1ac6   :  { %v6421_v11 = vpop.f32.mrf.mxu1  ;;  %v6426_v14 = vpop.f32.mrf.mxu0 }
0x1ac7   :  { %6461 = vmatmul.mubr.msk.bf16.vlgmr.msra.gmra.mxu0 %vm229_vm2, %v5122_v15 }
0x1ac8   :  { %v4925_v16 = vpop.f32.mrf.mxu0  ;;  %6471 = vmatpush3.bf16.msra.mxu0 %v5270_v51  ;;  %6472 = vmatprep.mubr.msk.bf16.mxu0 %vm6980_vm0, %v6979_v0 }
0x1ac9   :  { %6484 = vmatprep.subr.bf16.mxu0 %v6979_v0 }
0x1aca   :  { %v6427_v4 = vpop.f32.mrf.mxu0 }
0x1af5   :  { %v4969_v20 = vpop.f32.mrf.mxu1 }
0x1af7   :  { %v6432_v21 = vpop.f32.mrf.mxu1 }
0x1af9   :  { %v4972_v30 = vpop.f32.mrf.mxu1  ;;  %v5016_v22 = vpop.f32.mrf.mxu0 }
0x1afa   :  { %v5123_v24 = vpack.c.bf16 %v5016_v22, %v4969_v20 }
0x1afb   :  { %v6433_v61 = vpop.f32.mrf.mxu1  ;;  %v6438_v33 = vpop.f32.mrf.mxu0 }
0x1afc   :  { %6467 = vmatmul.mubr.msk.bf16.vlgmr.msra.gmra.mxu1 %vm229_vm2, %v5123_v24  ;;  %v6655_v24 = vld [vmem:[#allocation10 + $0x18] sm:$0xff]  }
0x1afd   :  { %v5019_v62 = vpop.f32.mrf.mxu0  ;;  %v5063_v29 = vpop.f32.mrf.mxu1  ;;  %6480 = vmatprep.mubr.msk.bf16.mxu1 %vm6980_vm0, %v6979_v0  ;;  %6477 = vmatpush3.bf16.msra.mxu1 %v6655_v24  ;;  %v6657_v61 = vld [vmem:[%s8123_s9 + $0x38] sm:$0xff]  }
0x1afe   :  { %6478 = vmatprep.subr.bf16.mxu1 %v6979_v0 }
0x1aff   :  { %v6439_v32 = vpop.f32.mrf.mxu0  ;;  %v6444_v31 = vpop.f32.mrf.mxu1 }
0x1b01   :  { %v5066_v38 = vpop.f32.mrf.mxu1  ;;  %v5110_v43 = vpop.f32.mrf.mxu0 }
0x1b02   :  { %v5124_v40 = vpack.c.bf16 %v5110_v43, %v5063_v29 }
0x1b03   :  { %v6445_v42 = vpop.f32.mrf.mxu1  ;;  %v6450_v17 = vpop.f32.mrf.mxu0 }
0x1b04   :  { %6473 = vmatmul.mubr.msk.bf16.vlgmr.msra.gmra.mxu0 %vm229_vm2, %v5124_v40  ;;  %v5358_v40 = vrot.slane %v7858_v23, %v7571_v41 }
0x1b05   :  { %v5113_v47 = vpop.f32.mrf.mxu0  ;;  %6492 = vmatprep.mubr.msk.bf16.mxu0 %vm6980_vm0, %v6979_v0  ;;  %6485 = vmatpush3.bf16.msra.mxu0 %v6657_v61  ;;  %v5562_v61 = vrot.slane %v7865_v28, %v7611_v37 }
0x1b06   :  { %6486 = vmatprep.subr.bf16.mxu0 %v6979_v0 }
0x1b07   :  { %v6451_v35 = vpop.f32.mrf.mxu0 }
0x1b30   :  { %v5165_v50 = vpop.f32.mrf.mxu1 }
0x1b31   :  { %v5313_v36 = vsel %vm153_vm1, %v5165_v50, 0.0  ;;  %v5364_v50 = vrot.slane %v7865_v28, %v7571_v41  ;;  %v6660_v41 = vld [vmem:[%s8123_s9 + $0x20] sm:$0xff]  }
0x1b32   :  { %v6456_v6 = vpop.f32.mrf.mxu1 }
0x1b34   :  { %v5168_v45 = vpop.f32.mrf.mxu1 }
0x1b35   :  { %v5320_v58 = vsel %vm153_vm1, %v5168_v45, 0.0 }
0x1b36   :  { %v6457_v48 = vpop.f32.mrf.mxu1 }
0x1b87   :  { %v5212_v8 = vpop.f32.mrf.mxu0 }
0x1b88   :  { %v5314_v54 = vsel %vm153_vm1, %v5212_v8, 0.0 }
0x1b89   :  { %v6462_v49 = vpop.f32.mrf.mxu0  ;;  %v5315_v53 = vadd.f32 %v5314_v54, %v5313_v36 }
0x1b8a   :  { %v6658_v49 = vld [vmem:[%s8123_s9 + $0x30] sm:$0xff]  }
0x1b8b   :  { %v5215_v59 = vpop.f32.mrf.mxu0  ;;  %6487 = vmatpush3.bf16.msra.mxu0 %v6658_v49 }
0x1b8c   :  { %v5321_v57 = vsel %vm153_vm1, %v5215_v59, 0.0  ;;  %6488 = vmatprep.subr.bf16.mxu0 %v6979_v0  ;;  %v6659_v59 = vld [vmem:[%s8123_s9 + $0x28] sm:$0xff]  }
0x1b8d   :  { %v6463_v46 = vpop.f32.mrf.mxu0  ;;  %v5322_v1 = vadd.f32 %v5321_v57, %v5320_v58 }
0x1b8e   :  { %v5714_v46 = vld [vmem:[%s8122_s8 + $0x1] ss:$0 sm:$0xff]  ;;  %s6985_s8 = smov [#allocation13]  }
0x1b8f   :  { %6489 = vmatpush3.bf16.msra.mxu0 %v6659_v59  ;;  %s5572_s9 = sshll.u32 %s6985_s8, 4  ;;  %s5573_s9 = int_to_ptr.vmem [resolvable:$true] %s5572_s9 }
0x1b90   :  { %6490 = vmatprep.subr.bf16.mxu0 %v6979_v0  ;;  %v5726_v0 = vld [vmem:[#allocation11 + $0x1] ss:$0 sm:$0xff]  ;;  %s6937_s28 = scalar_lea.vmem %s5573_s9, 256  ;;  %p6942_p3 = scmp.lt.s32.totalorder %s5573_s9, %s5573_s9 }
0x1b91   :  { %p6938_p2 = scmp.ne.s32.totalorder %s5573_s9, %s6937_s28  ;;  %p6943_p4 = scmp.lt.s32.totalorder %s6937_s28, %s6937_s28 }
0x1b93   :  { %6491 = vmatpush3.bf16.msra.mxu0 %v6660_v41  ;;  %p6944_p5 = por %p6943_p4, %p6942_p3 }
0x1b95   :  { %p6945_p6 = pnand %p6944_p5, %p6938_p2 }
0x1bbc   :  { %v5259_v5 = vpop.f32.mrf.mxu1 }
0x1bbd   :  { %v5316_v39 = vsel %vm153_vm1, %v5259_v5, 0.0 }
0x1bbe   :  { %v6468_v52 = vpop.f32.mrf.mxu1  ;;  %v5317_v25 = vadd.f32 %v5316_v39, %v5315_v53 }
0x1bc0   :  { %v5262_v55 = vpop.f32.mrf.mxu1 }
0x1bc1   :  { %v5323_v60 = vsel %vm153_vm1, %v5262_v55, 0.0 }
0x1bc2   :  { %v6469_v56 = vpop.f32.mrf.mxu1  ;;  %v5324_v10 = vadd.f32 %v5323_v60, %v5322_v1 }
0x1bc4   :  { %v5306_v27 = vpop.f32.mrf.mxu0 }
0x1bc5   :  { %v5318_v63 = vsel %vm153_vm1, %v5306_v27, 0.0 }
0x1bc6   :  { %v5319_v2 = vadd.f32 %v5318_v63, %v5317_v25  ;;  %v6474_v19 = vpop.f32.mrf.mxu0 }
0x1bc8   :  { %v5327_v26 = vadd.f32 %v5319_v2, %v7869_v44  ;;  %v5309_v34 = vpop.f32.mrf.mxu0 }
0x1bc9   :  { %v5325_v7 = vsel %vm153_vm1, %v5309_v34, 0.0 }
0x1bca   :  { %v5326_v9 = vadd.f32 %v5325_v7, %v5324_v10  ;;  %v6475_v12 = vpop.f32.mrf.mxu0  ;;  %v5329_v13 = vsel %vm153_vm1, %v5327_v26, 0.0 }
0x1bcb   :  { %5330 = vadd.xlane.f32.xlu0 %v5329_v13 }
0x1bcc   :  { %v5328_v3 = vadd.f32 %v5326_v9, %v7871_v18  ;;  %v6656_v18 = vld [vmem:[#allocation10 + $0x10] sm:$0xff]  }
0x1bcd   :  { %6479 = vmatpush3.bf16.msra.mxu1 %v6656_v18 }
0x1bce   :  { %v5332_v15 = vsel %vm153_vm1, %v5328_v3, 0.0 }
0x1bcf   :  { %5333 = vadd.xlane.f32.xlu1 %v5332_v15 }
0x1c54   :  { %v5331_v51 = vpop.xlane.xlu0 %5330 }
0x1c55   :  { %v5335_v11 = vmul.f32 0.03125, %v5331_v51 }
0x1c57   :  { %v5337_v14 = vsub.f32 %v5327_v26, %v5335_v11 }
0x1c58   :  { %v5334_v16 = vpop.xlane.xlu1 %5333 }
0x1c59   :  { %v5336_v4 = vmul.f32 0.03125, %v5334_v16  ;;  %v5339_v20 = vmul.f32 %v5337_v14, %v5337_v14 }
0x1c5b   :  { %v5338_v44 = vsub.f32 %v5328_v3, %v5336_v4  ;;  %v5341_v21 = vsel %vm153_vm1, %v5339_v20, 0.0 }
0x1c5c   :  { %5342 = vadd.xlane.f32.xlu0 %v5341_v21 }
0x1c5d   :  { %v5340_v30 = vmul.f32 %v5338_v44, %v5338_v44 }
0x1c5f   :  { %v5344_v22 = vsel %vm153_vm1, %v5340_v30, 0.0 }
0x1c60   :  { %5345 = vadd.xlane.f32.xlu0 %v5344_v22  ;;  %v5556_v22 = vrot.slane %v7858_v23, %v7611_v37 }
0x1ce5   :  { %v5343_v33 = vpop.xlane.xlu0 %5342 }
0x1ce6   :  { %v5347_v62 = vmul.f32 0.03125, %v5343_v33 }
0x1ce8   :  { %v5349_v29 = vadd.f32 1e-05, %v5347_v62 }
0x1ce9   :  { %v5346_v32 = vpop.xlane.xlu0 %5345 }
0x1cea   :  { %6805 = vrsqrt.f32 %v5349_v29  ;;  %v5348_v31 = vmul.f32 0.03125, %v5346_v32 }
0x1cec   :  { %v5350_v38 = vadd.f32 1e-05, %v5348_v31 }
0x1cee   :  { %6807 = vrsqrt.f32 %v5350_v38 }
0x1cf7   :  { %v6806_v43 = vpop.eup %6805 }
0x1cf8   :  { %v5353_v42 = vmul.f32 %v6806_v43, %v5337_v14 }
0x1cfa   :  { %v5359_v47 = vmul.f32 %v5358_v40, %v5353_v42 }
0x1cfb   :  { %v6808_v17 = vpop.eup %6807 }
0x1cfc   :  { %v5354_v35 = vmul.f32 %v6808_v17, %v5338_v44  ;;  %v5365_v45 = vadd.f32 %v5364_v50, %v5359_v47 }
0x1cfe   :  { %v5360_v6 = vmul.f32 %v5358_v40, %v5354_v35 }
0x1d00   :  { %v5366_v48 = vadd.f32 %v5364_v50, %v5360_v6 }
0x1d02   :  { %v5372_v8 = vpack.c.bf16 %v5366_v48, %v5365_v45 }
0x1d04   :  { %6481 = vmatmul.mubr.msk.bf16.vlgmr.msra.gmra.mxu1 %vm153_vm1, %v5372_v8 }
0x1dc4   :  { %v5430_v5 = vpop.f32.mrf.mxu1 }
0x1dc5   :  { %v5431_v54 = vadd.f32 %v5714_v46, %v5430_v5 }
0x1dc6   :  { %v6482_v52 = vpop.f32.mrf.mxu1 }
0x1dc7   :  { %v5437_v53 = vmax.f32 %v5431_v54, 0.0 }
0x1dc8   :  { %v5433_v55 = vpop.f32.mrf.mxu1 }
0x1dc9   :  { %v5434_v36 = vadd.f32 %v5714_v46, %v5433_v55 }
0x1dca   :  { %v6483_v39 = vpop.f32.mrf.mxu1 }
0x1dcb   :  { %v5438_v56 = vmax.f32 %v5434_v36, 0.0 }
0x1dcd   :  { %v5448_v57 = vpack.c.bf16 %v5438_v56, %v5437_v53 }
0x1dcf   :  { %6493 = vmatmul.mubr.msk.bf16.vlgmr.msra.gmra.mxu0 %vm2770_vm5, %v5448_v57 }
0x1e8f   :  { %v5518_v25 = vpop.f32.mrf.mxu0 }
0x1e90   :  { %v5519_v27 = vadd.f32 %v5726_v0, %v5518_v25 }
0x1e91   :  { %v6494_v58 = vpop.f32.mrf.mxu0 }
0x1e92   :  { %v5525_v60 = vadd.f32 %v5519_v27, %v5365_v45 }
0x1e93   :  { %v5521_v63 = vpop.f32.mrf.mxu0 }
0x1e94   :  { %v5522_v1 = vadd.f32 %v5726_v0, %v5521_v63  ;;  %v5527_v2 = vsel %vm153_vm1, %v5525_v60, 0.0 }
0x1e95   :  { %5528 = vadd.xlane.f32.xlu1 %v5527_v2  ;;  %v6495_v19 = vpop.f32.mrf.mxu0 }
0x1e96   :  { %v5526_v10 = vadd.f32 %v5522_v1, %v5366_v48 }
0x1e98   :  { %v5530_v26 = vsel %vm153_vm1, %v5526_v10, 0.0 }
0x1e99   :  { %5531 = vadd.xlane.f32.xlu0 %v5530_v26 }
0x1f1e   :  { %v5529_v34 = vpop.xlane.xlu1 %5528 }
0x1f1f   :  { %v5533_v7 = vmul.f32 0.03125, %v5529_v34 }
0x1f21   :  { %v5535_v9 = vsub.f32 %v5525_v60, %v5533_v7 }
0x1f22   :  { %v5532_v12 = vpop.xlane.xlu0 %5531 }
0x1f23   :  { %v5534_v13 = vmul.f32 0.03125, %v5532_v12  ;;  %v5537_v3 = vmul.f32 %v5535_v9, %v5535_v9 }
0x1f25   :  { %v5536_v15 = vsub.f32 %v5526_v10, %v5534_v13  ;;  %v5539_v51 = vsel %vm153_vm1, %v5537_v3, 0.0 }
0x1f26   :  { %5540 = vadd.xlane.f32.xlu1 %v5539_v51 }
0x1f27   :  { %v5538_v11 = vmul.f32 %v5536_v15, %v5536_v15 }
0x1f29   :  { %v5542_v14 = vsel %vm153_vm1, %v5538_v11, 0.0 }
0x1f2a   :  { %5543 = vadd.xlane.f32.xlu0 %v5542_v14 }
0x1faf   :  { %v5541_v16 = vpop.xlane.xlu1 %5540 }
0x1fb0   :  { %v5545_v4 = vmul.f32 0.03125, %v5541_v16 }
0x1fb2   :  { %v5547_v20 = vadd.f32 1e-05, %v5545_v4 }
0x1fb3   :  { %v5544_v44 = vpop.xlane.xlu0 %5543 }
0x1fb4   :  { %6809 = vrsqrt.f32 %v5547_v20  ;;  %v5546_v21 = vmul.f32 0.03125, %v5544_v44 }
0x1fb6   :  { %v5548_v30 = vadd.f32 1e-05, %v5546_v21 }
0x1fb8   :  { %6811 = vrsqrt.f32 %v5548_v30 }
0x1fc1   :  { %v6810_v24 = vpop.eup %6809 }
0x1fc2   :  { %v5551_v18 = vmul.f32 %v6810_v24, %v5535_v9 }
0x1fc4   :  { %v5557_v33 = vmul.f32 %v5556_v22, %v5551_v18 }
0x1fc5   :  { %v6812_v62 = vpop.eup %6811 }
0x1fc6   :  { %v5552_v29 = vmul.f32 %v6812_v62, %v5536_v15  ;;  %v5563_v32 = vadd.f32 %v5562_v61, %v5557_v33 }
0x1fc8   :  { %v5558_v31 = vmul.f32 %v5556_v22, %v5552_v29  ;;  %5565 = vst.msk [vmem:[#allocation13] sm:$0xff] %vm153_vm1, %v5563_v32 }
0x1fca   :  { %v5564_v38 = vadd.f32 %v5562_v61, %v5558_v31 }
0x1fcc   :  { %5566 = vst.msk [vmem:[#allocation13 + $0x8] sm:$0xff] %vm153_vm1, %v5564_v38 }
0x1fcd   :  { %6948 = shalt.err (!%p6945_p6)
}
0x1fce   :  { %5578 = dma.vmem_to_hbm [thread:$0]  %s5573_s9, 256, %s8127_s13, [#allocation4], %s6972_s22, %s6972_s22, %s6973_s23  }
0x1fcf   :  { %6965 = dma.done.wait [#allocation4], 256  }
0x1fd0   :  { %6966 = vsyncadd [#allocation4], 4294967040 }
0x1fd1   :  { %5582 = vsyncpa [#allocation3], 1 }
0x1fd2   :  { %5583 = vsyncpa [#allocation6], 1 }
0x1fd3   :  { %5584 = vsyncpa [#allocation9], 1 }
0x1fd4   :  { %5585 = vsyncpa [#allocation12], 1 }
0x1fd5   :  { %5586 = vsyncpa [#allocation4], 1 }

</bundles_post_ra>
